<compile_context>
chip_gen: v7x
topology: tpu7x:2x2x1
jax: 0.10.0
libtpu: 0.0.40
codegen_flags: <defaults>
</compile_context>

<pallas_src>
import functools
import math

import jax
import jax.numpy as jnp
from jax.experimental import pallas as pl
from jax.experimental.pallas import tpu as pltpu

EPS = 1e-6


# --------------------------- per-generation budgets ---------------------------

def _vmem_capacity_bytes():
    try:
        cap = getattr(pltpu.get_tpu_info(), "vmem_capacity_bytes", None)
        if cap:
            return int(cap)
    except Exception:
        pass
    try:
        kind = jax.devices()[0].device_kind.lower()
        return (64 << 20) if "7" in kind else (128 << 20)
    except Exception:
        return 64 << 20


_VMEM_CAP = _vmem_capacity_bytes()
# Explicit scoped-VMEM budget: generous on 128-MiB chips (v5e/v6e), <= ~56 MiB on v7x.
VMEM_LIMIT = int(max(min(_VMEM_CAP - (8 << 20), 100 << 20), 32 << 20))
# Row tile for the HBM-bound LN / LN+proj / LN+FFN kernels (clamped to M at call time).
ROW_TILE = 512 if _VMEM_CAP >= (128 << 20) else 256
# Query tile for attention (gives parallel grid steps and bounds the (tq,Tk) score slab).
Q_TILE = 128


def _cparams(n_parallel):
    return pltpu.CompilerParams(
        dimension_semantics=("parallel",) * n_parallel,
        vmem_limit_bytes=VMEM_LIMIT)


# ----------------------------- Pallas kernels -----------------------------

def _ln_stats(x):
    d = x.shape[-1]
    mean = jnp.mean(x, axis=-1, keepdims=True)
    xc = x - mean
    # torch.Tensor.std() is unbiased (divides by d-1); eps is added to std, not var.
    std = jnp.sqrt(jnp.sum(xc * xc, axis=-1, keepdims=True) / (d - 1))
    return xc, std


def _ln_kernel(x_ref, a_ref, b_ref, o_ref, *, eps):
    xc, std = _ln_stats(x_ref[...])
    o_ref[...] = a_ref[...] * xc / (std + eps) + b_ref[...]


def _ln_proj_kernel(x_ref, a_ref, b_ref, w_ref, bias_ref, *out_refs, eps):
    """LayerNorm (f32 stats) fused with a bf16 projection by a concatenated weight;
    result is split across the output refs (e.g. Q|K|V)."""
    xc, std = _ln_stats(x_ref[...])
    n = (a_ref[...] * xc / (std + eps) + b_ref[...]).astype(jnp.bfloat16)
    y = jnp.dot(n, w_ref[...], preferred_element_type=jnp.float32) + bias_ref[...]
    off = 0
    for o in out_refs:
        width = o.shape[-1]
        o[...] = y[:, off:off + width].astype(o.dtype)
        off += width


def _proj_kernel(x_ref, w_ref, bias_ref, *out_refs):
    """Plain bf16 projection by a concatenated weight, split across output refs (K|V)."""
    y = jnp.dot(x_ref[...].astype(jnp.bfloat16), w_ref[...],
                preferred_element_type=jnp.float32) + bias_ref[...]
    off = 0
    for o in out_refs:
        width = o.shape[-1]
        o[...] = y[:, off:off + width].astype(o.dtype)
        off += width


def _attn_out_kernel(q_ref, k_ref, v_ref, m_ref, x_ref, wo_ref, bo_ref, o_ref, *, h):
    """Multi-head attention for one (batch, query-tile), fused with the output projection
    and the residual add.  q/k/v/wo are bf16; softmax statistics and accumulation are f32.
    1/sqrt(dk) is pre-folded into the Q projection, so no per-head scaling here."""
    q = q_ref[0]          # (tq, D) bf16
    k = k_ref[0]          # (Tk, D) bf16
    v = v_ref[0]          # (Tk, D) bf16
    # Additive mask bias computed once per tile (shared across heads): 0 keep, -1e9 masked.
    neg = jnp.where(m_ref[0] != 0, 0.0, -1e9).astype(jnp.float32)   # (1 or tq, Tk)
    wo = wo_ref[...]      # (D, D) bf16
    d = q.shape[-1]
    dk = d // h

    ctx = []
    for hi in range(h):                   # static unroll over heads
        lo = hi * dk
        qh = q[:, lo:lo + dk]
        kh = k[:, lo:lo + dk]
        vh = v[:, lo:lo + dk]
        s = jax.lax.dot_general(qh, kh, (((1,), (1,)), ((), ())),
                                preferred_element_type=jnp.float32)
        s = s + neg                                  # masked_fill(mask == 0, -1e9)
        s = s - jnp.max(s, axis=-1, keepdims=True)   # stable softmax
        p = jnp.exp(s)
        p = p * pl.reciprocal(jnp.sum(p, axis=-1, keepdims=True), approx=True)
        ctx.append(jnp.dot(p.astype(jnp.bfloat16), vh,
                           preferred_element_type=jnp.float32))   # (tq, dk)

    # Single full-K output projection: concat_h(ctx_h) @ Wo  (one MXU matmul, not h tiny ones)
    ctx_all = jnp.concatenate(ctx, axis=-1).astype(jnp.bfloat16)   # (tq, D)
    o_ref[0] = x_ref[0] + bo_ref[...] + jnp.dot(ctx_all, wo,
                                                preferred_element_type=jnp.float32)


def _ln_ffn_resid_kernel(x_ref, a_ref, b_ref, w1_ref, b1_ref, w2_ref, b2_ref, o_ref, *, eps):
    """LayerNorm + position-wise FFN (ReLU) + residual in one kernel; bf16 matmuls."""
    x = x_ref[...]
    xc, std = _ln_stats(x)
    n = (a_ref[...] * xc / (std + eps) + b_ref[...]).astype(jnp.bfloat16)
    hdn = jnp.maximum(
        jnp.dot(n, w1_ref[...], preferred_element_type=jnp.float32) + b1_ref[...], 0.0)
    o_ref[...] = x + jnp.dot(hdn.astype(jnp.bfloat16), w2_ref[...],
                             preferred_element_type=jnp.float32) + b2_ref[...]


# ----------------------------- pallas_call wrappers -----------------------------

def _row_block(tm, cols):
    return pl.BlockSpec((tm, cols), lambda i: (i, 0))


def _full_block(shape):
    # TODO(synk): mark constant-index weight blocks single-buffered (pl.Buffered(1)) once
    # that pipeline_mode is universally available, to halve resident-weight VMEM on v7x.
    return pl.BlockSpec(shape, lambda i: (0,) * len(shape))


def pallas_layernorm(x2d, a, b, *, eps=EPS):
    M, D = x2d.shape
    tm = min(ROW_TILE, M)
    return pl.pallas_call(
        functools.partial(_ln_kernel, eps=eps),
        out_shape=jax.ShapeDtypeStruct((M, D), jnp.float32),
        grid=(pl.cdiv(M, tm),),
        in_specs=[_row_block(tm, D), _full_block((1, D)), _full_block((1, D))],
        out_specs=_row_block(tm, D),
        compiler_params=_cparams(1),
    )(x2d, a.reshape(1, D), b.reshape(1, D))


def pallas_ln_proj(x2d, a, b, w, bias, out_widths, *, eps=EPS):
    """x2d f32 (M,D); w bf16 (D,sum(out_widths)); outputs emitted in bf16."""
    M, D = x2d.shape
    Dout = w.shape[1]
    tm = min(ROW_TILE, M)
    outs = pl.pallas_call(
        functools.partial(_ln_proj_kernel, eps=eps),
        out_shape=tuple(jax.ShapeDtypeStruct((M, wd), jnp.bfloat16) for wd in out_widths),
        grid=(pl.cdiv(M, tm),),
        in_specs=[_row_block(tm, D), _full_block((1, D)), _full_block((1, D)),
                  _full_block((D, Dout)), _full_block((1, Dout))],
        out_specs=tuple(_row_block(tm, wd) for wd in out_widths),
        compiler_params=_cparams(1),
    )(x2d, a.reshape(1, D), b.reshape(1, D), w, bias.reshape(1, Dout))
    return tuple(outs)


def pallas_proj(x2d, w, bias, out_widths):
    """x2d bf16 (M,D); w bf16; outputs bf16 (K|V of memory)."""
    M, D = x2d.shape
    Dout = w.shape[1]
    tm = min(ROW_TILE, M)
    outs = pl.pallas_call(
        _proj_kernel,
        out_shape=tuple(jax.ShapeDtypeStruct((M, wd), jnp.bfloat16) for wd in out_widths),
        grid=(pl.cdiv(M, tm),),
        in_specs=[_row_block(tm, D), _full_block((D, Dout)), _full_block((1, Dout))],
        out_specs=tuple(_row_block(tm, wd) for wd in out_widths),
        compiler_params=_cparams(1),
    )(x2d, w, bias.reshape(1, Dout))
    return tuple(outs)


def pallas_attention_out(q, k, v, mask, x_res, wo, bo, n_heads):
    """q,v (B,Tq,D) / k (B,Tk,D) in bf16; mask (B,1,Tk) or (B,Tq,Tk); x_res f32 (B,Tq,D).
    Returns x_res + MHA(q,k,v) @ Wo + bo, aliasing x_res's buffer for the output."""
    B, Tq, D = q.shape
    Tk = k.shape[1]
    mq = mask.shape[1]                    # 1 (broadcast over queries) or Tq
    tq = min(Q_TILE, Tq)
    row = lambda t: pl.BlockSpec((1, t, D), lambda b, i: (b, i, 0))
    kvs = pl.BlockSpec((1, Tk, D), lambda b, i: (b, 0, 0))
    if mq == 1:
        mspec = pl.BlockSpec((1, 1, Tk), lambda b, i: (b, 0, 0))
    else:
        mspec = pl.BlockSpec((1, tq, Tk), lambda b, i: (b, i, 0))
    return pl.pallas_call(
        functools.partial(_attn_out_kernel, h=n_heads),
        out_shape=jax.ShapeDtypeStruct((B, Tq, D), jnp.float32),
        grid=(B, pl.cdiv(Tq, tq)),
        in_specs=[row(tq), kvs, kvs, mspec, row(tq),
                  pl.BlockSpec((D, D), lambda b, i: (0, 0)),
                  pl.BlockSpec((1, D), lambda b, i: (0, 0))],
        out_specs=row(tq),
        input_output_aliases={4: 0},      # reuse x_res's buffer for the output
        compiler_params=_cparams(2),
    )(q, k, v, mask, x_res, wo, bo.reshape(1, D))


def _ffn_call(x2d, fp, *, eps=EPS):
    M, D = x2d.shape
    ff = fp["ff"]
    Dff = ff["w1"].shape[1]
    tm = min(ROW_TILE, M)
    return pl.pallas_call(
        functools.partial(_ln_ffn_resid_kernel, eps=eps),
        out_shape=jax.ShapeDtypeStruct((M, D), jnp.float32),
        grid=(pl.cdiv(M, tm),),
        in_specs=[_row_block(tm, D), _full_block((1, D)), _full_block((1, D)),
                  _full_block((D, Dff)), _full_block((1, Dff)),
                  _full_block((Dff, D)), _full_block((1, D))],
        out_specs=_row_block(tm, D),
        input_output_aliases={0: 0},      # residual in-place
        compiler_params=_cparams(1),
    )(x2d, fp["ln"][2]["a"].reshape(1, D), fp["ln"][2]["b"].reshape(1, D),
      ff["w1"], ff["b1"].reshape(1, Dff), ff["w2"], ff["b2"].reshape(1, D))


# ----------------------------- Model glue -----------------------------

def _fuse_layer_params(p, h):
    """Concatenate Q|K|V (and K|V) weights, fold 1/sqrt(dk) into the Q projection,
    and cast all matmul weights to bf16.  Constant-folded under jit."""
    sa, ca = p["self_attn"], p["src_attn"]
    d = sa["wq"].shape[0]
    scale = 1.0 / math.sqrt(d // h)
    bf = lambda t: t.astype(jnp.bfloat16)
    return dict(
        ln=p["ln"],
        ff=dict(w1=bf(p["ff"]["w1"]), b1=p["ff"]["b1"],
                w2=bf(p["ff"]["w2"]), b2=p["ff"]["b2"]),
        self_wqkv=bf(jnp.concatenate([sa["wq"] * scale, sa["wk"], sa["wv"]], axis=1)),
        self_bqkv=jnp.concatenate([sa["bq"] * scale, sa["bk"], sa["bv"]]),
        self_wo=bf(sa["wo"]), self_bo=sa["bo"],
        cross_wq=bf(ca["wq"] * scale), cross_bq=ca["bq"] * scale,
        cross_wkv=bf(jnp.concatenate([ca["wk"], ca["wv"]], axis=1)),
        cross_bkv=jnp.concatenate([ca["bk"], ca["bv"]]),
        cross_wo=bf(ca["wo"]), cross_bo=ca["bo"],
    )


def decoder_layer(x, memory_bf16, src_mask, tgt_mask, fp, h):
    B, T, d = x.shape
    S = memory_bf16.shape[1]

    # sublayer 0: pre-LN + fused QKV + self-attention + out-proj + residual
    q, k, v = pallas_ln_proj(x.reshape(B * T, d), fp["ln"][0]["a"], fp["ln"][0]["b"],
                             fp["self_wqkv"], fp["self_bqkv"], (d, d, d))
    x = pallas_attention_out(q.reshape(B, T, d), k.reshape(B, T, d), v.reshape(B, T, d),
                             tgt_mask, x, fp["self_wo"], fp["self_bo"], h)

    # sublayer 1: pre-LN (query only) + cross-attention over memory + out-proj + residual
    q = pallas_ln_proj(x.reshape(B * T, d), fp["ln"][1]["a"], fp["ln"][1]["b"],
                       fp["cross_wq"], fp["cross_bq"], (d,))[0]
    k, v = pallas_proj(memory_bf16.reshape(B * S, d), fp["cross_wkv"], fp["cross_bkv"], (d, d))
    x = pallas_attention_out(q.reshape(B, T, d), k.reshape(B, S, d), v.reshape(B, S, d),
                             src_mask, x, fp["cross_wo"], fp["cross_bo"], h)

    # sublayer 2: pre-LN + FFN + residual (single kernel)
    return _ffn_call(x.reshape(B * T, d), fp).reshape(B, T, d)


def decoder(x, memory, src_mask, tgt_mask, params, h):
    B, T, d = x.shape
    # Masks are NOT broadcast in HBM; kernels broadcast (B,1,S) over query rows in-kernel.
    src_mask = src_mask.astype(jnp.float32)           # (B, 1, S) or (B, T, S)
    tgt_mask = tgt_mask.astype(jnp.float32)           # (B, T, T)
    memory_bf16 = memory.astype(jnp.bfloat16)         # cast once; read per layer
    for p in params["layers"]:
        fp = _fuse_layer_params(p, h)                 # constant-folded under jit
        x = decoder_layer(x, memory_bf16, src_mask, tgt_mask, fp, h)
    return pallas_layernorm(x.reshape(B * T, d), params["norm_a"],
                            params["norm_b"]).reshape(B, T, d)


# ----------------------------- Parameter init -----------------------------

def init_params(key, n_layers, d_model, d_ff):
    def dense(k, din, dout):
        kw, kb = jax.random.split(k)
        return (jax.random.normal(kw, (din, dout), jnp.float32) * 0.05,
                jax.random.normal(kb, (dout,), jnp.float32) * 0.05)

    def mk_attn(keys):
        wq, bq = dense(keys[0], d_model, d_model)
        wk, bk = dense(keys[1], d_model, d_model)
        wv, bv = dense(keys[2], d_model, d_model)
        wo, bo = dense(keys[3], d_model, d_model)
        return dict(wq=wq, bq=bq, wk=wk, bk=bk, wv=wv, bv=bv, wo=wo, bo=bo)

    layers = []
    for _ in range(n_layers):
        key, *ks = jax.random.split(key, 11)
        self_attn = mk_attn(ks[0:4])
        src_attn = mk_attn(ks[4:8])
        w1, b1 = dense(ks[8], d_model, d_ff)
        w2, b2 = dense(ks[9], d_ff, d_model)
        lns = [dict(a=jnp.ones((d_model,), jnp.float32),
                    b=jnp.zeros((d_model,), jnp.float32)) for _ in range(3)]
        layers.append(dict(self_attn=self_attn, src_attn=src_attn,
                           ff=dict(w1=w1, b1=b1, w2=w2, b2=b2), ln=lns))
    return dict(layers=layers,
                norm_a=jnp.ones((d_model,), jnp.float32),
                norm_b=jnp.zeros((d_model,), jnp.float32))


# ----------------------------- Pure-JAX reference -----------------------------

def _ref_ln(x, a, b, eps=EPS):
    mean = x.mean(-1, keepdims=True)
    std = jnp.sqrt(((x - mean) ** 2).sum(-1, keepdims=True) / (x.shape[-1] - 1))
    return a * (x - mean) / (std + eps) + b


def _ref_mha(x_q, x_kv, mask, p, h):
    B, Tq, d = x_q.shape
    Tk = x_kv.shape[1]
    dk = d // h

    def proj(x, w, b, T):
        return (x.reshape(B * T, d) @ w + b).reshape(B, T, h, dk).transpose(0, 2, 1, 3)

    q, k, v = (proj(x_q, p["wq"], p["bq"], Tq),
               proj(x_kv, p["wk"], p["bk"], Tk),
               proj(x_kv, p["wv"], p["bv"], Tk))
    s = jnp.einsum("bhqd,bhkd->bhqk", q, k) / jnp.sqrt(jnp.float32(dk))
    m = jnp.broadcast_to(mask[:, None, :, :], s.shape)
    s = jnp.where(m != 0, s, -1e9)
    pa = jax.nn.softmax(s, axis=-1)
    o = jnp.einsum("bhqk,bhkd->bhqd", pa, v).transpose(0, 2, 1, 3).reshape(B * Tq, d)
    return (o @ p["wo"] + p["bo"]).reshape(B, Tq, d)


def ref_decoder(x, memory, src_mask, tgt_mask, params, h):
    for p in params["layers"]:
        B, T, d = x.shape
        n0 = _ref_ln(x, p["ln"][0]["a"], p["ln"][0]["b"])
        x = x + _ref_mha(n0, n0, tgt_mask, p["self_attn"], h)
        n1 = _ref_ln(x, p["ln"][1]["a"], p["ln"][1]["b"])
        x = x + _ref_mha(n1, memory, src_mask, p["src_attn"], h)
        n2 = _ref_ln(x, p["ln"][2]["a"], p["ln"][2]["b"])
        hdn = jnp.maximum(n2.reshape(B * T, d) @ p["ff"]["w1"] + p["ff"]["b1"], 0.0)
        x = x + (hdn @ p["ff"]["w2"] + p["ff"]["b2"]).reshape(B, T, d)
    return _ref_ln(x, params["norm_a"], params["norm_b"])


# ----------------------------- Main -----------------------------

if __name__ == "__main__":
    B, T, S = 2, 8, 8
    d_model, n_heads, d_ff, N_layers = 32, 4, 64, 2

    key = jax.random.PRNGKey(0)
    kp, kx, km = jax.random.split(key, 3)
    params = init_params(kp, N_layers, d_model, d_ff)

    x = jax.random.normal(kx, (B, T, d_model), jnp.float32)
    memory = jax.random.normal(km, (B, S, d_model), jnp.float32)
    src_mask = jnp.ones((B, 1, S), jnp.float32)                       # attend to all memory
    tgt_mask = jnp.broadcast_to(jnp.tril(jnp.ones((T, T), jnp.float32)), (B, T, T))

    decoder_fn = jax.jit(decoder, static_argnums=(5,))
    out = decoder_fn(x, memory, src_mask, tgt_mask, params, n_heads)
    out = jax.block_until_ready(out)

    ref = ref_decoder(x, memory, src_mask, tgt_mask, params, n_heads)
    assert out.shape == (B, T, d_model)
    assert bool(jnp.all(jnp.isfinite(out))), "non-finite values in Pallas output"
    # bf16 MXU operands (f32 accumulation) => slightly looser tolerance than pure f32.
    assert jnp.allclose(out, ref, atol=2e-2, rtol=2e-2), "Pallas output mismatch vs reference"

    print("KERNEL_OK")
</pallas_src>

<mosaic_0001>
module attributes {stable_mosaic.version = 11 : i64} {
  func.func @_ln_proj_kernel(%arg0: i32, %arg1: memref<16x32xf32, #tpu.memory_space<vmem>>, %arg2: memref<1x32xf32, #tpu.memory_space<vmem>>, %arg3: memref<1x32xf32, #tpu.memory_space<vmem>>, %arg4: memref<32x96xbf16, #tpu.memory_space<vmem>>, %arg5: memref<1x96xf32, #tpu.memory_space<vmem>>, %arg6: memref<16x32xbf16, #tpu.memory_space<vmem>>, %arg7: memref<16x32xbf16, #tpu.memory_space<vmem>>, %arg8: memref<16x32xbf16, #tpu.memory_space<vmem>>) attributes {dimension_semantics = [#tpu.dimension_semantics<parallel>], iteration_bounds = array<i64: 1>, scalar_prefetch = 0 : i64, scratch_operands = 0 : i64, tpu.core_type = #tpu.core_type<tc>, window_params = [{transform_indices = @transform_0, window_bounds = array<i64: 16, 32>}, {pipeline_mode = #tpu.pipeline_mode<synchronous>, transform_indices = @transform_1, window_bounds = array<i64: 1, 32>}, {pipeline_mode = #tpu.pipeline_mode<synchronous>, transform_indices = @transform_2, window_bounds = array<i64: 1, 32>}, {pipeline_mode = #tpu.pipeline_mode<synchronous>, transform_indices = @transform_3, window_bounds = array<i64: 32, 96>}, {pipeline_mode = #tpu.pipeline_mode<synchronous>, transform_indices = @transform_4, window_bounds = array<i64: 1, 96>}, {transform_indices = @transform_5, window_bounds = array<i64: 16, 32>}, {transform_indices = @transform_6, window_bounds = array<i64: 16, 32>}, {transform_indices = @transform_7, window_bounds = array<i64: 16, 32>}]} {
    %c0 = arith.constant 0 : index
    %c0_0 = arith.constant 0 : index
    %0 = vector.load %arg1[%c0, %c0_0] : memref<16x32xf32, #tpu.memory_space<vmem>>, vector<16x32xf32>
    %cst = arith.constant dense<0.000000e+00> : vector<16xf32>
    %1 = vector.multi_reduction <add>, %0, %cst [1] : vector<16x32xf32> to vector<16xf32>
    %2 = vector.shape_cast %1 : vector<16xf32> to vector<16x1xf32>
    %cst_1 = arith.constant 3.200000e+01 : f32
    %3 = vector.broadcast %cst_1 : f32 to vector<16x1xf32>
    %4 = arith.divf %2, %3 : vector<16x1xf32>
    %5 = vector.broadcast %4 : vector<16x1xf32> to vector<16x32xf32>
    %6 = arith.subf %0, %5 : vector<16x32xf32>
    %7 = arith.mulf %6, %6 : vector<16x32xf32>
    %cst_2 = arith.constant dense<0.000000e+00> : vector<16xf32>
    %8 = vector.multi_reduction <add>, %7, %cst_2 [1] : vector<16x32xf32> to vector<16xf32>
    %9 = vector.shape_cast %8 : vector<16xf32> to vector<16x1xf32>
    %cst_3 = arith.constant 3.100000e+01 : f32
    %10 = vector.broadcast %cst_3 : f32 to vector<16x1xf32>
    %11 = arith.divf %9, %10 : vector<16x1xf32>
    %12 = math.sqrt %11 : vector<16x1xf32>
    %c0_4 = arith.constant 0 : index
    %c0_5 = arith.constant 0 : index
    %13 = vector.load %arg2[%c0_4, %c0_5] : memref<1x32xf32, #tpu.memory_space<vmem>>, vector<1x32xf32>
    %14 = vector.broadcast %13 : vector<1x32xf32> to vector<16x32xf32>
    %15 = arith.mulf %14, %6 : vector<16x32xf32>
    %cst_6 = arith.constant 9.99999997E-7 : f32
    %16 = vector.broadcast %cst_6 : f32 to vector<16x1xf32>
    %17 = arith.addf %12, %16 : vector<16x1xf32>
    %18 = vector.broadcast %17 : vector<16x1xf32> to vector<16x32xf32>
    %19 = arith.divf %15, %18 : vector<16x32xf32>
    %c0_7 = arith.constant 0 : index
    %c0_8 = arith.constant 0 : index
    %20 = vector.load %arg3[%c0_7, %c0_8] : memref<1x32xf32, #tpu.memory_space<vmem>>, vector<1x32xf32>
    %21 = vector.broadcast %20 : vector<1x32xf32> to vector<16x32xf32>
    %22 = arith.addf %19, %21 : vector<16x32xf32>
    %23 = arith.truncf %22 : vector<16x32xf32> to vector<16x32xbf16>
    %c0_9 = arith.constant 0 : index
    %c0_10 = arith.constant 0 : index
    %24 = vector.load %arg4[%c0_9, %c0_10] : memref<32x96xbf16, #tpu.memory_space<vmem>>, vector<32x96xbf16>
    %cst_11 = arith.constant dense<0.000000e+00> : vector<16x96xf32>
    %25 = tpu.matmul %23, %24, %cst_11 {dimension_numbers = #tpu.dot_dimension_numbers<[1], [0], [0], [1], [0, 0, 1, 1], [], []>} : vector<16x32xbf16>, vector<32x96xbf16>, vector<16x96xf32> -> vector<16x96xf32>
    %c0_12 = arith.constant 0 : index
    %c0_13 = arith.constant 0 : index
    %26 = vector.load %arg5[%c0_12, %c0_13] : memref<1x96xf32, #tpu.memory_space<vmem>>, vector<1x96xf32>
    %27 = vector.broadcast %26 : vector<1x96xf32> to vector<16x96xf32>
    %28 = arith.addf %25, %27 : vector<16x96xf32>
    %29 = vector.extract_strided_slice %28 {offsets = [0, 0], sizes = [16, 32], strides = [1, 1]} : vector<16x96xf32> to vector<16x32xf32>
    %30 = arith.truncf %29 : vector<16x32xf32> to vector<16x32xbf16>
    %c0_14 = arith.constant 0 : index
    %c0_15 = arith.constant 0 : index
    %31 = vector.load %arg6[%c0_14, %c0_15] : memref<16x32xbf16, #tpu.memory_space<vmem>>, vector<16x32xbf16>
    tpu.vector_store %arg6[%c0_14, %c0_15], %30 {strides = array<i32>} : memref<16x32xbf16, #tpu.memory_space<vmem>>, vector<16x32xbf16>,
    %32 = vector.extract_strided_slice %28 {offsets = [0, 32], sizes = [16, 32], strides = [1, 1]} : vector<16x96xf32> to vector<16x32xf32>
    %33 = arith.truncf %32 : vector<16x32xf32> to vector<16x32xbf16>
    %c0_16 = arith.constant 0 : index
    %c0_17 = arith.constant 0 : index
    %34 = vector.load %arg7[%c0_16, %c0_17] : memref<16x32xbf16, #tpu.memory_space<vmem>>, vector<16x32xbf16>
    tpu.vector_store %arg7[%c0_16, %c0_17], %33 {strides = array<i32>} : memref<16x32xbf16, #tpu.memory_space<vmem>>, vector<16x32xbf16>,
    %35 = vector.extract_strided_slice %28 {offsets = [0, 64], sizes = [16, 32], strides = [1, 1]} : vector<16x96xf32> to vector<16x32xf32>
    %36 = arith.truncf %35 : vector<16x32xf32> to vector<16x32xbf16>
    %c0_18 = arith.constant 0 : index
    %c0_19 = arith.constant 0 : index
    %37 = vector.load %arg8[%c0_18, %c0_19] : memref<16x32xbf16, #tpu.memory_space<vmem>>, vector<16x32xbf16>
    tpu.vector_store %arg8[%c0_18, %c0_19], %36 {strides = array<i32>} : memref<16x32xbf16, #tpu.memory_space<vmem>>, vector<16x32xbf16>,
    return
  }
  func.func @transform_0(%arg0: i32) -> (i32, i32) {
    %c0_i32 = arith.constant 0 : i32
    %c0_i32_0 = arith.constant 0 : i32
    return %arg0, %c0_i32 : i32, i32
  }
  func.func @transform_1(%arg0: i32) -> (i32, i32) {
    %c0_i32 = arith.constant 0 : i32
    %c0_i32_0 = arith.constant 0 : i32
    %c0_i32_1 = arith.constant 0 : i32
    return %c0_i32, %c0_i32_0 : i32, i32
  }
  func.func @transform_2(%arg0: i32) -> (i32, i32) {
    %c0_i32 = arith.constant 0 : i32
    %c0_i32_0 = arith.constant 0 : i32
    %c0_i32_1 = arith.constant 0 : i32
    return %c0_i32, %c0_i32_0 : i32, i32
  }
  func.func @transform_3(%arg0: i32) -> (i32, i32) {
    %c0_i32 = arith.constant 0 : i32
    %c0_i32_0 = arith.constant 0 : i32
    %c0_i32_1 = arith.constant 0 : i32
    return %c0_i32, %c0_i32_0 : i32, i32
  }
  func.func @transform_4(%arg0: i32) -> (i32, i32) {
    %c0_i32 = arith.constant 0 : i32
    %c0_i32_0 = arith.constant 0 : i32
    %c0_i32_1 = arith.constant 0 : i32
    return %c0_i32, %c0_i32_0 : i32, i32
  }
  func.func @transform_5(%arg0: i32) -> (i32, i32) {
    %c0_i32 = arith.constant 0 : i32
    %c0_i32_0 = arith.constant 0 : i32
    return %arg0, %c0_i32 : i32, i32
  }
  func.func @transform_6(%arg0: i32) -> (i32, i32) {
    %c0_i32 = arith.constant 0 : i32
    %c0_i32_0 = arith.constant 0 : i32
    return %arg0, %c0_i32 : i32, i32
  }
  func.func @transform_7(%arg0: i32) -> (i32, i32) {
    %c0_i32 = arith.constant 0 : i32
    %c0_i32_0 = arith.constant 0 : i32
    return %arg0, %c0_i32 : i32, i32
  }
}

module attributes {stable_mosaic.version = 11 : i64} {
  func.func @_attn_out_kernel(%arg0: i32, %arg1: i32, %arg2: memref<1x8x32xbf16, #tpu.memory_space<vmem>>, %arg3: memref<1x8x32xbf16, #tpu.memory_space<vmem>>, %arg4: memref<1x8x32xbf16, #tpu.memory_space<vmem>>, %arg5: memref<1x8x8xf32, #tpu.memory_space<vmem>>, %arg6: memref<1x8x32xf32, #tpu.memory_space<vmem>>, %arg7: memref<32x32xbf16, #tpu.memory_space<vmem>>, %arg8: memref<1x32xf32, #tpu.memory_space<vmem>>, %arg9: memref<1x8x32xf32, #tpu.memory_space<vmem>>) attributes {dimension_semantics = [#tpu.dimension_semantics<parallel>, #tpu.dimension_semantics<parallel>], iteration_bounds = array<i64: 2, 1>, scalar_prefetch = 0 : i64, scratch_operands = 0 : i64, tpu.core_type = #tpu.core_type<tc>, window_params = [{transform_indices = @transform_0, window_bounds = array<i64: 1, 8, 32>}, {transform_indices = @transform_1, window_bounds = array<i64: 1, 8, 32>}, {transform_indices = @transform_2, window_bounds = array<i64: 1, 8, 32>}, {transform_indices = @transform_3, window_bounds = array<i64: 1, 8, 8>}, {transform_indices = @transform_4, window_bounds = array<i64: 1, 8, 32>}, {pipeline_mode = #tpu.pipeline_mode<synchronous>, transform_indices = @transform_5, window_bounds = array<i64: 32, 32>}, {pipeline_mode = #tpu.pipeline_mode<synchronous>, transform_indices = @transform_6, window_bounds = array<i64: 1, 32>}, {transform_indices = @transform_7, window_bounds = array<i64: 1, 8, 32>}]} {
    %c0 = arith.constant 0 : index
    %c0_0 = arith.constant 0 : index
    %c0_1 = arith.constant 0 : index
    %0 = vector.load %arg2[%c0, %c0_0, %c0_1] : memref<1x8x32xbf16, #tpu.memory_space<vmem>>, vector<1x8x32xbf16>
    %1 = vector.shape_cast %0 : vector<1x8x32xbf16> to vector<8x32xbf16>
    %c0_2 = arith.constant 0 : index
    %c0_3 = arith.constant 0 : index
    %c0_4 = arith.constant 0 : index
    %2 = vector.load %arg3[%c0_2, %c0_3, %c0_4] : memref<1x8x32xbf16, #tpu.memory_space<vmem>>, vector<1x8x32xbf16>
    %3 = vector.shape_cast %2 : vector<1x8x32xbf16> to vector<8x32xbf16>
    %c0_5 = arith.constant 0 : index
    %c0_6 = arith.constant 0 : index
    %c0_7 = arith.constant 0 : index
    %4 = vector.load %arg4[%c0_5, %c0_6, %c0_7] : memref<1x8x32xbf16, #tpu.memory_space<vmem>>, vector<1x8x32xbf16>
    %5 = vector.shape_cast %4 : vector<1x8x32xbf16> to vector<8x32xbf16>
    %c0_8 = arith.constant 0 : index
    %c0_9 = arith.constant 0 : index
    %c0_10 = arith.constant 0 : index
    %6 = vector.load %arg5[%c0_8, %c0_9, %c0_10] : memref<1x8x8xf32, #tpu.memory_space<vmem>>, vector<1x8x8xf32>
    %7 = vector.shape_cast %6 : vector<1x8x8xf32> to vector<8x8xf32>
    %cst = arith.constant 0.000000e+00 : f32
    %8 = vector.broadcast %cst : f32 to vector<8x8xf32>
    %9 = arith.cmpf one, %7, %8 : vector<8x8xf32>
    %cst_11 = arith.constant 0.000000e+00 : f32
    %cst_12 = arith.constant -1.000000e+09 : f32
    %10 = vector.broadcast %cst_11 : f32 to vector<8x8xf32>
    %11 = vector.broadcast %cst_12 : f32 to vector<8x8xf32>
    %12 = arith.select %9, %10, %11 : vector<8x8xi1>, vector<8x8xf32>
    %c0_13 = arith.constant 0 : index
    %c0_14 = arith.constant 0 : index
    %13 = vector.load %arg7[%c0_13, %c0_14] : memref<32x32xbf16, #tpu.memory_space<vmem>>, vector<32x32xbf16>
    %14 = vector.extract_strided_slice %1 {offsets = [0, 0], sizes = [8, 8], strides = [1, 1]} : vector<8x32xbf16> to vector<8x8xbf16>
    %15 = vector.extract_strided_slice %3 {offsets = [0, 0], sizes = [8, 8], strides = [1, 1]} : vector<8x32xbf16> to vector<8x8xbf16>
    %16 = vector.extract_strided_slice %5 {offsets = [0, 0], sizes = [8, 8], strides = [1, 1]} : vector<8x32xbf16> to vector<8x8xbf16>
    %cst_15 = arith.constant dense<0.000000e+00> : vector<8x8xf32>
    %17 = tpu.matmul %14, %15, %cst_15 {dimension_numbers = #tpu.dot_dimension_numbers<[1], [1], [0], [0], [0, 0, 1, 0], [], []>} : vector<8x8xbf16>, vector<8x8xbf16>, vector<8x8xf32> -> vector<8x8xf32>
    %18 = arith.addf %17, %12 : vector<8x8xf32>
    %cst_16 = arith.constant dense<0xFF800000> : vector<8xf32>
    %19 = vector.multi_reduction <maximumf>, %18, %cst_16 [1] : vector<8x8xf32> to vector<8xf32>
    %20 = vector.shape_cast %19 : vector<8xf32> to vector<8x1xf32>
    %21 = vector.broadcast %20 : vector<8x1xf32> to vector<8x8xf32>
    %22 = arith.subf %18, %21 : vector<8x8xf32>
    %23 = math.exp %22 : vector<8x8xf32>
    %cst_17 = arith.constant dense<0.000000e+00> : vector<8xf32>
    %24 = vector.multi_reduction <add>, %23, %cst_17 [1] : vector<8x8xf32> to vector<8xf32>
    %25 = vector.shape_cast %24 : vector<8xf32> to vector<8x1xf32>
    %26 = tpu.reciprocal %25 {approx = true} : vector<8x1xf32> -> vector<8x1xf32>
    %27 = vector.broadcast %26 : vector<8x1xf32> to vector<8x8xf32>
    %28 = arith.mulf %23, %27 : vector<8x8xf32>
    %29 = arith.truncf %28 : vector<8x8xf32> to vector<8x8xbf16>
    %cst_18 = arith.constant dense<0.000000e+00> : vector<8x8xf32>
    %30 = tpu.matmul %29, %16, %cst_18 {dimension_numbers = #tpu.dot_dimension_numbers<[1], [0], [0], [1], [0, 0, 1, 1], [], []>} : vector<8x8xbf16>, vector<8x8xbf16>, vector<8x8xf32> -> vector<8x8xf32>
    %31 = vector.extract_strided_slice %1 {offsets = [0, 8], sizes = [8, 8], strides = [1, 1]} : vector<8x32xbf16> to vector<8x8xbf16>
    %32 = vector.extract_strided_slice %3 {offsets = [0, 8], sizes = [8, 8], strides = [1, 1]} : vector<8x32xbf16> to vector<8x8xbf16>
    %33 = vector.extract_strided_slice %5 {offsets = [0, 8], sizes = [8, 8], strides = [1, 1]} : vector<8x32xbf16> to vector<8x8xbf16>
    %cst_19 = arith.constant dense<0.000000e+00> : vector<8x8xf32>
    %34 = tpu.matmul %31, %32, %cst_19 {dimension_numbers = #tpu.dot_dimension_numbers<[1], [1], [0], [0], [0, 0, 1, 0], [], []>} : vector<8x8xbf16>, vector<8x8xbf16>, vector<8x8xf32> -> vector<8x8xf32>
    %35 = arith.addf %34, %12 : vector<8x8xf32>
    %cst_20 = arith.constant dense<0xFF800000> : vector<8xf32>
    %36 = vector.multi_reduction <maximumf>, %35, %cst_20 [1] : vector<8x8xf32> to vector<8xf32>
    %37 = vector.shape_cast %36 : vector<8xf32> to vector<8x1xf32>
    %38 = vector.broadcast %37 : vector<8x1xf32> to vector<8x8xf32>
    %39 = arith.subf %35, %38 : vector<8x8xf32>
    %40 = math.exp %39 : vector<8x8xf32>
    %cst_21 = arith.constant dense<0.000000e+00> : vector<8xf32>
    %41 = vector.multi_reduction <add>, %40, %cst_21 [1] : vector<8x8xf32> to vector<8xf32>
    %42 = vector.shape_cast %41 : vector<8xf32> to vector<8x1xf32>
    %43 = tpu.reciprocal %42 {approx = true} : vector<8x1xf32> -> vector<8x1xf32>
    %44 = vector.broadcast %43 : vector<8x1xf32> to vector<8x8xf32>
    %45 = arith.mulf %40, %44 : vector<8x8xf32>
    %46 = arith.truncf %45 : vector<8x8xf32> to vector<8x8xbf16>
    %cst_22 = arith.constant dense<0.000000e+00> : vector<8x8xf32>
    %47 = tpu.matmul %46, %33, %cst_22 {dimension_numbers = #tpu.dot_dimension_numbers<[1], [0], [0], [1], [0, 0, 1, 1], [], []>} : vector<8x8xbf16>, vector<8x8xbf16>, vector<8x8xf32> -> vector<8x8xf32>
    %48 = vector.extract_strided_slice %1 {offsets = [0, 16], sizes = [8, 8], strides = [1, 1]} : vector<8x32xbf16> to vector<8x8xbf16>
    %49 = vector.extract_strided_slice %3 {offsets = [0, 16], sizes = [8, 8], strides = [1, 1]} : vector<8x32xbf16> to vector<8x8xbf16>
    %50 = vector.extract_strided_slice %5 {offsets = [0, 16], sizes = [8, 8], strides = [1, 1]} : vector<8x32xbf16> to vector<8x8xbf16>
    %cst_23 = arith.constant dense<0.000000e+00> : vector<8x8xf32>
    %51 = tpu.matmul %48, %49, %cst_23 {dimension_numbers = #tpu.dot_dimension_numbers<[1], [1], [0], [0], [0, 0, 1, 0], [], []>} : vector<8x8xbf16>, vector<8x8xbf16>, vector<8x8xf32> -> vector<8x8xf32>
    %52 = arith.addf %51, %12 : vector<8x8xf32>
    %cst_24 = arith.constant dense<0xFF800000> : vector<8xf32>
    %53 = vector.multi_reduction <maximumf>, %52, %cst_24 [1] : vector<8x8xf32> to vector<8xf32>
    %54 = vector.shape_cast %53 : vector<8xf32> to vector<8x1xf32>
    %55 = vector.broadcast %54 : vector<8x1xf32> to vector<8x8xf32>
    %56 = arith.subf %52, %55 : vector<8x8xf32>
    %57 = math.exp %56 : vector<8x8xf32>
    %cst_25 = arith.constant dense<0.000000e+00> : vector<8xf32>
    %58 = vector.multi_reduction <add>, %57, %cst_25 [1] : vector<8x8xf32> to vector<8xf32>
    %59 = vector.shape_cast %58 : vector<8xf32> to vector<8x1xf32>
    %60 = tpu.reciprocal %59 {approx = true} : vector<8x1xf32> -> vector<8x1xf32>
    %61 = vector.broadcast %60 : vector<8x1xf32> to vector<8x8xf32>
    %62 = arith.mulf %57, %61 : vector<8x8xf32>
    %63 = arith.truncf %62 : vector<8x8xf32> to vector<8x8xbf16>
    %cst_26 = arith.constant dense<0.000000e+00> : vector<8x8xf32>
    %64 = tpu.matmul %63, %50, %cst_26 {dimension_numbers = #tpu.dot_dimension_numbers<[1], [0], [0], [1], [0, 0, 1, 1], [], []>} : vector<8x8xbf16>, vector<8x8xbf16>, vector<8x8xf32> -> vector<8x8xf32>
    %65 = vector.extract_strided_slice %1 {offsets = [0, 24], sizes = [8, 8], strides = [1, 1]} : vector<8x32xbf16> to vector<8x8xbf16>
    %66 = vector.extract_strided_slice %3 {offsets = [0, 24], sizes = [8, 8], strides = [1, 1]} : vector<8x32xbf16> to vector<8x8xbf16>
    %67 = vector.extract_strided_slice %5 {offsets = [0, 24], sizes = [8, 8], strides = [1, 1]} : vector<8x32xbf16> to vector<8x8xbf16>
    %cst_27 = arith.constant dense<0.000000e+00> : vector<8x8xf32>
    %68 = tpu.matmul %65, %66, %cst_27 {dimension_numbers = #tpu.dot_dimension_numbers<[1], [1], [0], [0], [0, 0, 1, 0], [], []>} : vector<8x8xbf16>, vector<8x8xbf16>, vector<8x8xf32> -> vector<8x8xf32>
    %69 = arith.addf %68, %12 : vector<8x8xf32>
    %cst_28 = arith.constant dense<0xFF800000> : vector<8xf32>
    %70 = vector.multi_reduction <maximumf>, %69, %cst_28 [1] : vector<8x8xf32> to vector<8xf32>
    %71 = vector.shape_cast %70 : vector<8xf32> to vector<8x1xf32>
    %72 = vector.broadcast %71 : vector<8x1xf32> to vector<8x8xf32>
    %73 = arith.subf %69, %72 : vector<8x8xf32>
    %74 = math.exp %73 : vector<8x8xf32>
    %cst_29 = arith.constant dense<0.000000e+00> : vector<8xf32>
    %75 = vector.multi_reduction <add>, %74, %cst_29 [1] : vector<8x8xf32> to vector<8xf32>
    %76 = vector.shape_cast %75 : vector<8xf32> to vector<8x1xf32>
    %77 = tpu.reciprocal %76 {approx = true} : vector<8x1xf32> -> vector<8x1xf32>
    %78 = vector.broadcast %77 : vector<8x1xf32> to vector<8x8xf32>
    %79 = arith.mulf %74, %78 : vector<8x8xf32>
    %80 = arith.truncf %79 : vector<8x8xf32> to vector<8x8xbf16>
    %cst_30 = arith.constant dense<0.000000e+00> : vector<8x8xf32>
    %81 = tpu.matmul %80, %67, %cst_30 {dimension_numbers = #tpu.dot_dimension_numbers<[1], [0], [0], [1], [0, 0, 1, 1], [], []>} : vector<8x8xbf16>, vector<8x8xbf16>, vector<8x8xf32> -> vector<8x8xf32>
    %82 = tpu.concatenate %30, %47, %64, %81 in 1 : vector<8x8xf32>, vector<8x8xf32>, vector<8x8xf32>, vector<8x8xf32> -> vector<8x32xf32>
    %83 = arith.truncf %82 : vector<8x32xf32> to vector<8x32xbf16>
    %c0_31 = arith.constant 0 : index
    %c0_32 = arith.constant 0 : index
    %c0_33 = arith.constant 0 : index
    %84 = vector.load %arg6[%c0_31, %c0_32, %c0_33] : memref<1x8x32xf32, #tpu.memory_space<vmem>>, vector<1x8x32xf32>
    %85 = vector.shape_cast %84 : vector<1x8x32xf32> to vector<8x32xf32>
    %c0_34 = arith.constant 0 : index
    %c0_35 = arith.constant 0 : index
    %86 = vector.load %arg8[%c0_34, %c0_35] : memref<1x32xf32, #tpu.memory_space<vmem>>, vector<1x32xf32>
    %87 = vector.broadcast %86 : vector<1x32xf32> to vector<8x32xf32>
    %88 = arith.addf %85, %87 : vector<8x32xf32>
    %cst_36 = arith.constant dense<0.000000e+00> : vector<8x32xf32>
    %89 = tpu.matmul %83, %13, %cst_36 {dimension_numbers = #tpu.dot_dimension_numbers<[1], [0], [0], [1], [0, 0, 1, 1], [], []>} : vector<8x32xbf16>, vector<32x32xbf16>, vector<8x32xf32> -> vector<8x32xf32>
    %90 = arith.addf %88, %89 : vector<8x32xf32>
    %c0_37 = arith.constant 0 : index
    %c0_38 = arith.constant 0 : index
    %c0_39 = arith.constant 0 : index
    %91 = vector.load %arg9[%c0_37, %c0_38, %c0_39] : memref<1x8x32xf32, #tpu.memory_space<vmem>>, vector<1x8x32xf32>
    %92 = vector.shape_cast %91 : vector<1x8x32xf32> to vector<8x32xf32>
    %93 = vector.shape_cast %90 : vector<8x32xf32> to vector<1x8x32xf32>
    tpu.vector_store %arg9[%c0_37, %c0_38, %c0_39], %93 {strides = array<i32>} : memref<1x8x32xf32, #tpu.memory_space<vmem>>, vector<1x8x32xf32>,
    return
  }
  func.func @transform_0(%arg0: i32, %arg1: i32) -> (i32, i32, i32) {
    %c0_i32 = arith.constant 0 : i32
    %c0_i32_0 = arith.constant 0 : i32
    return %arg0, %arg1, %c0_i32 : i32, i32, i32
  }
  func.func @transform_1(%arg0: i32, %arg1: i32) -> (i32, i32, i32) {
    %c0_i32 = arith.constant 0 : i32
    %c0_i32_0 = arith.constant 0 : i32
    %c0_i32_1 = arith.constant 0 : i32
    return %arg0, %c0_i32, %c0_i32_0 : i32, i32, i32
  }
  func.func @transform_2(%arg0: i32, %arg1: i32) -> (i32, i32, i32) {
    %c0_i32 = arith.constant 0 : i32
    %c0_i32_0 = arith.constant 0 : i32
    %c0_i32_1 = arith.constant 0 : i32
    return %arg0, %c0_i32, %c0_i32_0 : i32, i32, i32
  }
  func.func @transform_3(%arg0: i32, %arg1: i32) -> (i32, i32, i32) {
    %c0_i32 = arith.constant 0 : i32
    %c0_i32_0 = arith.constant 0 : i32
    return %arg0, %arg1, %c0_i32 : i32, i32, i32
  }
  func.func @transform_4(%arg0: i32, %arg1: i32) -> (i32, i32, i32) {
    %c0_i32 = arith.constant 0 : i32
    %c0_i32_0 = arith.constant 0 : i32
    return %arg0, %arg1, %c0_i32 : i32, i32, i32
  }
  func.func @transform_5(%arg0: i32, %arg1: i32) -> (i32, i32) {
    %c0_i32 = arith.constant 0 : i32
    %c0_i32_0 = arith.constant 0 : i32
    %c0_i32_1 = arith.constant 0 : i32
    return %c0_i32, %c0_i32_0 : i32, i32
  }
  func.func @transform_6(%arg0: i32, %arg1: i32) -> (i32, i32) {
    %c0_i32 = arith.constant 0 : i32
    %c0_i32_0 = arith.constant 0 : i32
    %c0_i32_1 = arith.constant 0 : i32
    return %c0_i32, %c0_i32_0 : i32, i32
  }
  func.func @transform_7(%arg0: i32, %arg1: i32) -> (i32, i32, i32) {
    %c0_i32 = arith.constant 0 : i32
    %c0_i32_0 = arith.constant 0 : i32
    return %arg0, %arg1, %c0_i32 : i32, i32, i32
  }
}

module attributes {stable_mosaic.version = 11 : i64} {
  func.func @_ln_proj_kernel(%arg0: i32, %arg1: memref<16x32xf32, #tpu.memory_space<vmem>>, %arg2: memref<1x32xf32, #tpu.memory_space<vmem>>, %arg3: memref<1x32xf32, #tpu.memory_space<vmem>>, %arg4: memref<32x32xbf16, #tpu.memory_space<vmem>>, %arg5: memref<1x32xf32, #tpu.memory_space<vmem>>, %arg6: memref<16x32xbf16, #tpu.memory_space<vmem>>) attributes {dimension_semantics = [#tpu.dimension_semantics<parallel>], iteration_bounds = array<i64: 1>, scalar_prefetch = 0 : i64, scratch_operands = 0 : i64, tpu.core_type = #tpu.core_type<tc>, window_params = [{transform_indices = @transform_0, window_bounds = array<i64: 16, 32>}, {pipeline_mode = #tpu.pipeline_mode<synchronous>, transform_indices = @transform_1, window_bounds = array<i64: 1, 32>}, {pipeline_mode = #tpu.pipeline_mode<synchronous>, transform_indices = @transform_2, window_bounds = array<i64: 1, 32>}, {pipeline_mode = #tpu.pipeline_mode<synchronous>, transform_indices = @transform_3, window_bounds = array<i64: 32, 32>}, {pipeline_mode = #tpu.pipeline_mode<synchronous>, transform_indices = @transform_4, window_bounds = array<i64: 1, 32>}, {transform_indices = @transform_5, window_bounds = array<i64: 16, 32>}]} {
    %c0 = arith.constant 0 : index
    %c0_0 = arith.constant 0 : index
    %0 = vector.load %arg1[%c0, %c0_0] : memref<16x32xf32, #tpu.memory_space<vmem>>, vector<16x32xf32>
    %cst = arith.constant dense<0.000000e+00> : vector<16xf32>
    %1 = vector.multi_reduction <add>, %0, %cst [1] : vector<16x32xf32> to vector<16xf32>
    %2 = vector.shape_cast %1 : vector<16xf32> to vector<16x1xf32>
    %cst_1 = arith.constant 3.200000e+01 : f32
    %3 = vector.broadcast %cst_1 : f32 to vector<16x1xf32>
    %4 = arith.divf %2, %3 : vector<16x1xf32>
    %5 = vector.broadcast %4 : vector<16x1xf32> to vector<16x32xf32>
    %6 = arith.subf %0, %5 : vector<16x32xf32>
    %7 = arith.mulf %6, %6 : vector<16x32xf32>
    %cst_2 = arith.constant dense<0.000000e+00> : vector<16xf32>
    %8 = vector.multi_reduction <add>, %7, %cst_2 [1] : vector<16x32xf32> to vector<16xf32>
    %9 = vector.shape_cast %8 : vector<16xf32> to vector<16x1xf32>
    %cst_3 = arith.constant 3.100000e+01 : f32
    %10 = vector.broadcast %cst_3 : f32 to vector<16x1xf32>
    %11 = arith.divf %9, %10 : vector<16x1xf32>
    %12 = math.sqrt %11 : vector<16x1xf32>
    %c0_4 = arith.constant 0 : index
    %c0_5 = arith.constant 0 : index
    %13 = vector.load %arg2[%c0_4, %c0_5] : memref<1x32xf32, #tpu.memory_space<vmem>>, vector<1x32xf32>
    %14 = vector.broadcast %13 : vector<1x32xf32> to vector<16x32xf32>
    %15 = arith.mulf %14, %6 : vector<16x32xf32>
    %cst_6 = arith.constant 9.99999997E-7 : f32
    %16 = vector.broadcast %cst_6 : f32 to vector<16x1xf32>
    %17 = arith.addf %12, %16 : vector<16x1xf32>
    %18 = vector.broadcast %17 : vector<16x1xf32> to vector<16x32xf32>
    %19 = arith.divf %15, %18 : vector<16x32xf32>
    %c0_7 = arith.constant 0 : index
    %c0_8 = arith.constant 0 : index
    %20 = vector.load %arg3[%c0_7, %c0_8] : memref<1x32xf32, #tpu.memory_space<vmem>>, vector<1x32xf32>
    %21 = vector.broadcast %20 : vector<1x32xf32> to vector<16x32xf32>
    %22 = arith.addf %19, %21 : vector<16x32xf32>
    %23 = arith.truncf %22 : vector<16x32xf32> to vector<16x32xbf16>
    %c0_9 = arith.constant 0 : index
    %c0_10 = arith.constant 0 : index
    %24 = vector.load %arg4[%c0_9, %c0_10] : memref<32x32xbf16, #tpu.memory_space<vmem>>, vector<32x32xbf16>
    %cst_11 = arith.constant dense<0.000000e+00> : vector<16x32xf32>
    %25 = tpu.matmul %23, %24, %cst_11 {dimension_numbers = #tpu.dot_dimension_numbers<[1], [0], [0], [1], [0, 0, 1, 1], [], []>} : vector<16x32xbf16>, vector<32x32xbf16>, vector<16x32xf32> -> vector<16x32xf32>
    %c0_12 = arith.constant 0 : index
    %c0_13 = arith.constant 0 : index
    %26 = vector.load %arg5[%c0_12, %c0_13] : memref<1x32xf32, #tpu.memory_space<vmem>>, vector<1x32xf32>
    %27 = vector.broadcast %26 : vector<1x32xf32> to vector<16x32xf32>
    %28 = arith.addf %25, %27 : vector<16x32xf32>
    %29 = arith.truncf %28 : vector<16x32xf32> to vector<16x32xbf16>
    %c0_14 = arith.constant 0 : index
    %c0_15 = arith.constant 0 : index
    %30 = vector.load %arg6[%c0_14, %c0_15] : memref<16x32xbf16, #tpu.memory_space<vmem>>, vector<16x32xbf16>
    tpu.vector_store %arg6[%c0_14, %c0_15], %29 {strides = array<i32>} : memref<16x32xbf16, #tpu.memory_space<vmem>>, vector<16x32xbf16>,
    return
  }
  func.func @transform_0(%arg0: i32) -> (i32, i32) {
    %c0_i32 = arith.constant 0 : i32
    %c0_i32_0 = arith.constant 0 : i32
    return %arg0, %c0_i32 : i32, i32
  }
  func.func @transform_1(%arg0: i32) -> (i32, i32) {
    %c0_i32 = arith.constant 0 : i32
    %c0_i32_0 = arith.constant 0 : i32
    %c0_i32_1 = arith.constant 0 : i32
    return %c0_i32, %c0_i32_0 : i32, i32
  }
  func.func @transform_2(%arg0: i32) -> (i32, i32) {
    %c0_i32 = arith.constant 0 : i32
    %c0_i32_0 = arith.constant 0 : i32
    %c0_i32_1 = arith.constant 0 : i32
    return %c0_i32, %c0_i32_0 : i32, i32
  }
  func.func @transform_3(%arg0: i32) -> (i32, i32) {
    %c0_i32 = arith.constant 0 : i32
    %c0_i32_0 = arith.constant 0 : i32
    %c0_i32_1 = arith.constant 0 : i32
    return %c0_i32, %c0_i32_0 : i32, i32
  }
  func.func @transform_4(%arg0: i32) -> (i32, i32) {
    %c0_i32 = arith.constant 0 : i32
    %c0_i32_0 = arith.constant 0 : i32
    %c0_i32_1 = arith.constant 0 : i32
    return %c0_i32, %c0_i32_0 : i32, i32
  }
  func.func @transform_5(%arg0: i32) -> (i32, i32) {
    %c0_i32 = arith.constant 0 : i32
    %c0_i32_0 = arith.constant 0 : i32
    return %arg0, %c0_i32 : i32, i32
  }
}

module attributes {stable_mosaic.version = 11 : i64} {
  func.func @_proj_kernel(%arg0: i32, %arg1: memref<16x32xbf16, #tpu.memory_space<vmem>>, %arg2: memref<32x64xbf16, #tpu.memory_space<vmem>>, %arg3: memref<1x64xf32, #tpu.memory_space<vmem>>, %arg4: memref<16x32xbf16, #tpu.memory_space<vmem>>, %arg5: memref<16x32xbf16, #tpu.memory_space<vmem>>) attributes {dimension_semantics = [#tpu.dimension_semantics<parallel>], iteration_bounds = array<i64: 1>, scalar_prefetch = 0 : i64, scratch_operands = 0 : i64, tpu.core_type = #tpu.core_type<tc>, window_params = [{transform_indices = @transform_0, window_bounds = array<i64: 16, 32>}, {pipeline_mode = #tpu.pipeline_mode<synchronous>, transform_indices = @transform_1, window_bounds = array<i64: 32, 64>}, {pipeline_mode = #tpu.pipeline_mode<synchronous>, transform_indices = @transform_2, window_bounds = array<i64: 1, 64>}, {transform_indices = @transform_3, window_bounds = array<i64: 16, 32>}, {transform_indices = @transform_4, window_bounds = array<i64: 16, 32>}]} {
    %c0 = arith.constant 0 : index
    %c0_0 = arith.constant 0 : index
    %0 = vector.load %arg1[%c0, %c0_0] : memref<16x32xbf16, #tpu.memory_space<vmem>>, vector<16x32xbf16>
    %c0_1 = arith.constant 0 : index
    %c0_2 = arith.constant 0 : index
    %1 = vector.load %arg2[%c0_1, %c0_2] : memref<32x64xbf16, #tpu.memory_space<vmem>>, vector<32x64xbf16>
    %cst = arith.constant dense<0.000000e+00> : vector<16x64xf32>
    %2 = tpu.matmul %0, %1, %cst {dimension_numbers = #tpu.dot_dimension_numbers<[1], [0], [0], [1], [0, 0, 1, 1], [], []>} : vector<16x32xbf16>, vector<32x64xbf16>, vector<16x64xf32> -> vector<16x64xf32>
    %c0_3 = arith.constant 0 : index
    %c0_4 = arith.constant 0 : index
    %3 = vector.load %arg3[%c0_3, %c0_4] : memref<1x64xf32, #tpu.memory_space<vmem>>, vector<1x64xf32>
    %4 = vector.broadcast %3 : vector<1x64xf32> to vector<16x64xf32>
    %5 = arith.addf %2, %4 : vector<16x64xf32>
    %6 = vector.extract_strided_slice %5 {offsets = [0, 0], sizes = [16, 32], strides = [1, 1]} : vector<16x64xf32> to vector<16x32xf32>
    %7 = arith.truncf %6 : vector<16x32xf32> to vector<16x32xbf16>
    %c0_5 = arith.constant 0 : index
    %c0_6 = arith.constant 0 : index
    %8 = vector.load %arg4[%c0_5, %c0_6] : memref<16x32xbf16, #tpu.memory_space<vmem>>, vector<16x32xbf16>
    tpu.vector_store %arg4[%c0_5, %c0_6], %7 {strides = array<i32>} : memref<16x32xbf16, #tpu.memory_space<vmem>>, vector<16x32xbf16>,
    %9 = vector.extract_strided_slice %5 {offsets = [0, 32], sizes = [16, 32], strides = [1, 1]} : vector<16x64xf32> to vector<16x32xf32>
    %10 = arith.truncf %9 : vector<16x32xf32> to vector<16x32xbf16>
    %c0_7 = arith.constant 0 : index
    %c0_8 = arith.constant 0 : index
    %11 = vector.load %arg5[%c0_7, %c0_8] : memref<16x32xbf16, #tpu.memory_space<vmem>>, vector<16x32xbf16>
    tpu.vector_store %arg5[%c0_7, %c0_8], %10 {strides = array<i32>} : memref<16x32xbf16, #tpu.memory_space<vmem>>, vector<16x32xbf16>,
    return
  }
  func.func @transform_0(%arg0: i32) -> (i32, i32) {
    %c0_i32 = arith.constant 0 : i32
    %c0_i32_0 = arith.constant 0 : i32
    return %arg0, %c0_i32 : i32, i32
  }
  func.func @transform_1(%arg0: i32) -> (i32, i32) {
    %c0_i32 = arith.constant 0 : i32
    %c0_i32_0 = arith.constant 0 : i32
    %c0_i32_1 = arith.constant 0 : i32
    return %c0_i32, %c0_i32_0 : i32, i32
  }
  func.func @transform_2(%arg0: i32) -> (i32, i32) {
    %c0_i32 = arith.constant 0 : i32
    %c0_i32_0 = arith.constant 0 : i32
    %c0_i32_1 = arith.constant 0 : i32
    return %c0_i32, %c0_i32_0 : i32, i32
  }
  func.func @transform_3(%arg0: i32) -> (i32, i32) {
    %c0_i32 = arith.constant 0 : i32
    %c0_i32_0 = arith.constant 0 : i32
    return %arg0, %c0_i32 : i32, i32
  }
  func.func @transform_4(%arg0: i32) -> (i32, i32) {
    %c0_i32 = arith.constant 0 : i32
    %c0_i32_0 = arith.constant 0 : i32
    return %arg0, %c0_i32 : i32, i32
  }
}

module attributes {stable_mosaic.version = 11 : i64} {
  func.func @_ln_ffn_resid_kernel(%arg0: i32, %arg1: memref<16x32xf32, #tpu.memory_space<vmem>>, %arg2: memref<1x32xf32, #tpu.memory_space<vmem>>, %arg3: memref<1x32xf32, #tpu.memory_space<vmem>>, %arg4: memref<32x64xbf16, #tpu.memory_space<vmem>>, %arg5: memref<1x64xf32, #tpu.memory_space<vmem>>, %arg6: memref<64x32xbf16, #tpu.memory_space<vmem>>, %arg7: memref<1x32xf32, #tpu.memory_space<vmem>>, %arg8: memref<16x32xf32, #tpu.memory_space<vmem>>) attributes {dimension_semantics = [#tpu.dimension_semantics<parallel>], iteration_bounds = array<i64: 1>, scalar_prefetch = 0 : i64, scratch_operands = 0 : i64, tpu.core_type = #tpu.core_type<tc>, window_params = [{transform_indices = @transform_0, window_bounds = array<i64: 16, 32>}, {pipeline_mode = #tpu.pipeline_mode<synchronous>, transform_indices = @transform_1, window_bounds = array<i64: 1, 32>}, {pipeline_mode = #tpu.pipeline_mode<synchronous>, transform_indices = @transform_2, window_bounds = array<i64: 1, 32>}, {pipeline_mode = #tpu.pipeline_mode<synchronous>, transform_indices = @transform_3, window_bounds = array<i64: 32, 64>}, {pipeline_mode = #tpu.pipeline_mode<synchronous>, transform_indices = @transform_4, window_bounds = array<i64: 1, 64>}, {pipeline_mode = #tpu.pipeline_mode<synchronous>, transform_indices = @transform_5, window_bounds = array<i64: 64, 32>}, {pipeline_mode = #tpu.pipeline_mode<synchronous>, transform_indices = @transform_6, window_bounds = array<i64: 1, 32>}, {transform_indices = @transform_7, window_bounds = array<i64: 16, 32>}]} {
    %c0 = arith.constant 0 : index
    %c0_0 = arith.constant 0 : index
    %0 = vector.load %arg1[%c0, %c0_0] : memref<16x32xf32, #tpu.memory_space<vmem>>, vector<16x32xf32>
    %cst = arith.constant dense<0.000000e+00> : vector<16xf32>
    %1 = vector.multi_reduction <add>, %0, %cst [1] : vector<16x32xf32> to vector<16xf32>
    %2 = vector.shape_cast %1 : vector<16xf32> to vector<16x1xf32>
    %cst_1 = arith.constant 3.200000e+01 : f32
    %3 = vector.broadcast %cst_1 : f32 to vector<16x1xf32>
    %4 = arith.divf %2, %3 : vector<16x1xf32>
    %5 = vector.broadcast %4 : vector<16x1xf32> to vector<16x32xf32>
    %6 = arith.subf %0, %5 : vector<16x32xf32>
    %7 = arith.mulf %6, %6 : vector<16x32xf32>
    %cst_2 = arith.constant dense<0.000000e+00> : vector<16xf32>
    %8 = vector.multi_reduction <add>, %7, %cst_2 [1] : vector<16x32xf32> to vector<16xf32>
    %9 = vector.shape_cast %8 : vector<16xf32> to vector<16x1xf32>
    %cst_3 = arith.constant 3.100000e+01 : f32
    %10 = vector.broadcast %cst_3 : f32 to vector<16x1xf32>
    %11 = arith.divf %9, %10 : vector<16x1xf32>
    %12 = math.sqrt %11 : vector<16x1xf32>
    %c0_4 = arith.constant 0 : index
    %c0_5 = arith.constant 0 : index
    %13 = vector.load %arg2[%c0_4, %c0_5] : memref<1x32xf32, #tpu.memory_space<vmem>>, vector<1x32xf32>
    %14 = vector.broadcast %13 : vector<1x32xf32> to vector<16x32xf32>
    %15 = arith.mulf %14, %6 : vector<16x32xf32>
    %cst_6 = arith.constant 9.99999997E-7 : f32
    %16 = vector.broadcast %cst_6 : f32 to vector<16x1xf32>
    %17 = arith.addf %12, %16 : vector<16x1xf32>
    %18 = vector.broadcast %17 : vector<16x1xf32> to vector<16x32xf32>
    %19 = arith.divf %15, %18 : vector<16x32xf32>
    %c0_7 = arith.constant 0 : index
    %c0_8 = arith.constant 0 : index
    %20 = vector.load %arg3[%c0_7, %c0_8] : memref<1x32xf32, #tpu.memory_space<vmem>>, vector<1x32xf32>
    %21 = vector.broadcast %20 : vector<1x32xf32> to vector<16x32xf32>
    %22 = arith.addf %19, %21 : vector<16x32xf32>
    %23 = arith.truncf %22 : vector<16x32xf32> to vector<16x32xbf16>
    %c0_9 = arith.constant 0 : index
    %c0_10 = arith.constant 0 : index
    %24 = vector.load %arg4[%c0_9, %c0_10] : memref<32x64xbf16, #tpu.memory_space<vmem>>, vector<32x64xbf16>
    %cst_11 = arith.constant dense<0.000000e+00> : vector<16x64xf32>
    %25 = tpu.matmul %23, %24, %cst_11 {dimension_numbers = #tpu.dot_dimension_numbers<[1], [0], [0], [1], [0, 0, 1, 1], [], []>} : vector<16x32xbf16>, vector<32x64xbf16>, vector<16x64xf32> -> vector<16x64xf32>
    %c0_12 = arith.constant 0 : index
    %c0_13 = arith.constant 0 : index
    %26 = vector.load %arg5[%c0_12, %c0_13] : memref<1x64xf32, #tpu.memory_space<vmem>>, vector<1x64xf32>
    %27 = vector.broadcast %26 : vector<1x64xf32> to vector<16x64xf32>
    %28 = arith.addf %25, %27 : vector<16x64xf32>
    %cst_14 = arith.constant 0.000000e+00 : f32
    %29 = vector.broadcast %cst_14 : f32 to vector<16x64xf32>
    %30 = arith.maximumf %28, %29 : vector<16x64xf32>
    %31 = arith.truncf %30 : vector<16x64xf32> to vector<16x64xbf16>
    %c0_15 = arith.constant 0 : index
    %c0_16 = arith.constant 0 : index
    %32 = vector.load %arg6[%c0_15, %c0_16] : memref<64x32xbf16, #tpu.memory_space<vmem>>, vector<64x32xbf16>
    %cst_17 = arith.constant dense<0.000000e+00> : vector<16x32xf32>
    %33 = tpu.matmul %31, %32, %cst_17 {dimension_numbers = #tpu.dot_dimension_numbers<[1], [0], [0], [1], [0, 0, 1, 1], [], []>} : vector<16x64xbf16>, vector<64x32xbf16>, vector<16x32xf32> -> vector<16x32xf32>
    %34 = arith.addf %0, %33 : vector<16x32xf32>
    %c0_18 = arith.constant 0 : index
    %c0_19 = arith.constant 0 : index
    %35 = vector.load %arg7[%c0_18, %c0_19] : memref<1x32xf32, #tpu.memory_space<vmem>>, vector<1x32xf32>
    %36 = vector.broadcast %35 : vector<1x32xf32> to vector<16x32xf32>
    %37 = arith.addf %34, %36 : vector<16x32xf32>
    %c0_20 = arith.constant 0 : index
    %c0_21 = arith.constant 0 : index
    %38 = vector.load %arg8[%c0_20, %c0_21] : memref<16x32xf32, #tpu.memory_space<vmem>>, vector<16x32xf32>
    tpu.vector_store %arg8[%c0_20, %c0_21], %37 {strides = array<i32>} : memref<16x32xf32, #tpu.memory_space<vmem>>, vector<16x32xf32>,
    return
  }
  func.func @transform_0(%arg0: i32) -> (i32, i32) {
    %c0_i32 = arith.constant 0 : i32
    %c0_i32_0 = arith.constant 0 : i32
    return %arg0, %c0_i32 : i32, i32
  }
  func.func @transform_1(%arg0: i32) -> (i32, i32) {
    %c0_i32 = arith.constant 0 : i32
    %c0_i32_0 = arith.constant 0 : i32
    %c0_i32_1 = arith.constant 0 : i32
    return %c0_i32, %c0_i32_0 : i32, i32
  }
  func.func @transform_2(%arg0: i32) -> (i32, i32) {
    %c0_i32 = arith.constant 0 : i32
    %c0_i32_0 = arith.constant 0 : i32
    %c0_i32_1 = arith.constant 0 : i32
    return %c0_i32, %c0_i32_0 : i32, i32
  }
  func.func @transform_3(%arg0: i32) -> (i32, i32) {
    %c0_i32 = arith.constant 0 : i32
    %c0_i32_0 = arith.constant 0 : i32
    %c0_i32_1 = arith.constant 0 : i32
    return %c0_i32, %c0_i32_0 : i32, i32
  }
  func.func @transform_4(%arg0: i32) -> (i32, i32) {
    %c0_i32 = arith.constant 0 : i32
    %c0_i32_0 = arith.constant 0 : i32
    %c0_i32_1 = arith.constant 0 : i32
    return %c0_i32, %c0_i32_0 : i32, i32
  }
  func.func @transform_5(%arg0: i32) -> (i32, i32) {
    %c0_i32 = arith.constant 0 : i32
    %c0_i32_0 = arith.constant 0 : i32
    %c0_i32_1 = arith.constant 0 : i32
    return %c0_i32, %c0_i32_0 : i32, i32
  }
  func.func @transform_6(%arg0: i32) -> (i32, i32) {
    %c0_i32 = arith.constant 0 : i32
    %c0_i32_0 = arith.constant 0 : i32
    %c0_i32_1 = arith.constant 0 : i32
    return %c0_i32, %c0_i32_0 : i32, i32
  }
  func.func @transform_7(%arg0: i32) -> (i32, i32) {
    %c0_i32 = arith.constant 0 : i32
    %c0_i32_0 = arith.constant 0 : i32
    return %arg0, %c0_i32 : i32, i32
  }
}

module attributes {stable_mosaic.version = 11 : i64} {
  func.func @_ln_kernel(%arg0: i32, %arg1: memref<16x32xf32, #tpu.memory_space<vmem>>, %arg2: memref<1x32xf32, #tpu.memory_space<vmem>>, %arg3: memref<1x32xf32, #tpu.memory_space<vmem>>, %arg4: memref<16x32xf32, #tpu.memory_space<vmem>>) attributes {dimension_semantics = [#tpu.dimension_semantics<parallel>], iteration_bounds = array<i64: 1>, scalar_prefetch = 0 : i64, scratch_operands = 0 : i64, tpu.core_type = #tpu.core_type<tc>, window_params = [{transform_indices = @transform_0, window_bounds = array<i64: 16, 32>}, {pipeline_mode = #tpu.pipeline_mode<synchronous>, transform_indices = @transform_1, window_bounds = array<i64: 1, 32>}, {pipeline_mode = #tpu.pipeline_mode<synchronous>, transform_indices = @transform_2, window_bounds = array<i64: 1, 32>}, {transform_indices = @transform_3, window_bounds = array<i64: 16, 32>}]} {
    %c0 = arith.constant 0 : index
    %c0_0 = arith.constant 0 : index
    %0 = vector.load %arg1[%c0, %c0_0] : memref<16x32xf32, #tpu.memory_space<vmem>>, vector<16x32xf32>
    %cst = arith.constant dense<0.000000e+00> : vector<16xf32>
    %1 = vector.multi_reduction <add>, %0, %cst [1] : vector<16x32xf32> to vector<16xf32>
    %2 = vector.shape_cast %1 : vector<16xf32> to vector<16x1xf32>
    %cst_1 = arith.constant 3.200000e+01 : f32
    %3 = vector.broadcast %cst_1 : f32 to vector<16x1xf32>
    %4 = arith.divf %2, %3 : vector<16x1xf32>
    %5 = vector.broadcast %4 : vector<16x1xf32> to vector<16x32xf32>
    %6 = arith.subf %0, %5 : vector<16x32xf32>
    %7 = arith.mulf %6, %6 : vector<16x32xf32>
    %cst_2 = arith.constant dense<0.000000e+00> : vector<16xf32>
    %8 = vector.multi_reduction <add>, %7, %cst_2 [1] : vector<16x32xf32> to vector<16xf32>
    %9 = vector.shape_cast %8 : vector<16xf32> to vector<16x1xf32>
    %cst_3 = arith.constant 3.100000e+01 : f32
    %10 = vector.broadcast %cst_3 : f32 to vector<16x1xf32>
    %11 = arith.divf %9, %10 : vector<16x1xf32>
    %12 = math.sqrt %11 : vector<16x1xf32>
    %c0_4 = arith.constant 0 : index
    %c0_5 = arith.constant 0 : index
    %13 = vector.load %arg2[%c0_4, %c0_5] : memref<1x32xf32, #tpu.memory_space<vmem>>, vector<1x32xf32>
    %14 = vector.broadcast %13 : vector<1x32xf32> to vector<16x32xf32>
    %15 = arith.mulf %14, %6 : vector<16x32xf32>
    %cst_6 = arith.constant 9.99999997E-7 : f32
    %16 = vector.broadcast %cst_6 : f32 to vector<16x1xf32>
    %17 = arith.addf %12, %16 : vector<16x1xf32>
    %18 = vector.broadcast %17 : vector<16x1xf32> to vector<16x32xf32>
    %19 = arith.divf %15, %18 : vector<16x32xf32>
    %c0_7 = arith.constant 0 : index
    %c0_8 = arith.constant 0 : index
    %20 = vector.load %arg3[%c0_7, %c0_8] : memref<1x32xf32, #tpu.memory_space<vmem>>, vector<1x32xf32>
    %21 = vector.broadcast %20 : vector<1x32xf32> to vector<16x32xf32>
    %22 = arith.addf %19, %21 : vector<16x32xf32>
    %c0_9 = arith.constant 0 : index
    %c0_10 = arith.constant 0 : index
    %23 = vector.load %arg4[%c0_9, %c0_10] : memref<16x32xf32, #tpu.memory_space<vmem>>, vector<16x32xf32>
    tpu.vector_store %arg4[%c0_9, %c0_10], %22 {strides = array<i32>} : memref<16x32xf32, #tpu.memory_space<vmem>>, vector<16x32xf32>,
    return
  }
  func.func @transform_0(%arg0: i32) -> (i32, i32) {
    %c0_i32 = arith.constant 0 : i32
    %c0_i32_0 = arith.constant 0 : i32
    return %arg0, %c0_i32 : i32, i32
  }
  func.func @transform_1(%arg0: i32) -> (i32, i32) {
    %c0_i32 = arith.constant 0 : i32
    %c0_i32_0 = arith.constant 0 : i32
    %c0_i32_1 = arith.constant 0 : i32
    return %c0_i32, %c0_i32_0 : i32, i32
  }
  func.func @transform_2(%arg0: i32) -> (i32, i32) {
    %c0_i32 = arith.constant 0 : i32
    %c0_i32_0 = arith.constant 0 : i32
    %c0_i32_1 = arith.constant 0 : i32
    return %c0_i32, %c0_i32_0 : i32, i32
  }
  func.func @transform_3(%arg0: i32) -> (i32, i32) {
    %c0_i32 = arith.constant 0 : i32
    %c0_i32_0 = arith.constant 0 : i32
    return %arg0, %c0_i32 : i32, i32
  }
}

module attributes {stable_mosaic.version = 11 : i64} {
  func.func @_attn_out_kernel(%arg0: i32, %arg1: i32, %arg2: memref<1x8x32xbf16, #tpu.memory_space<vmem>>, %arg3: memref<1x8x32xbf16, #tpu.memory_space<vmem>>, %arg4: memref<1x8x32xbf16, #tpu.memory_space<vmem>>, %arg5: memref<1x1x8xf32, #tpu.memory_space<vmem>>, %arg6: memref<1x8x32xf32, #tpu.memory_space<vmem>>, %arg7: memref<32x32xbf16, #tpu.memory_space<vmem>>, %arg8: memref<1x32xf32, #tpu.memory_space<vmem>>, %arg9: memref<1x8x32xf32, #tpu.memory_space<vmem>>) attributes {dimension_semantics = [#tpu.dimension_semantics<parallel>, #tpu.dimension_semantics<parallel>], iteration_bounds = array<i64: 2, 1>, scalar_prefetch = 0 : i64, scratch_operands = 0 : i64, tpu.core_type = #tpu.core_type<tc>, window_params = [{transform_indices = @transform_0, window_bounds = array<i64: 1, 8, 32>}, {transform_indices = @transform_1, window_bounds = array<i64: 1, 8, 32>}, {transform_indices = @transform_2, window_bounds = array<i64: 1, 8, 32>}, {transform_indices = @transform_3, window_bounds = array<i64: 1, 1, 8>}, {transform_indices = @transform_4, window_bounds = array<i64: 1, 8, 32>}, {pipeline_mode = #tpu.pipeline_mode<synchronous>, transform_indices = @transform_5, window_bounds = array<i64: 32, 32>}, {pipeline_mode = #tpu.pipeline_mode<synchronous>, transform_indices = @transform_6, window_bounds = array<i64: 1, 32>}, {transform_indices = @transform_7, window_bounds = array<i64: 1, 8, 32>}]} {
    %c0 = arith.constant 0 : index
    %c0_0 = arith.constant 0 : index
    %c0_1 = arith.constant 0 : index
    %0 = vector.load %arg2[%c0, %c0_0, %c0_1] : memref<1x8x32xbf16, #tpu.memory_space<vmem>>, vector<1x8x32xbf16>
    %1 = vector.shape_cast %0 : vector<1x8x32xbf16> to vector<8x32xbf16>
    %c0_2 = arith.constant 0 : index
    %c0_3 = arith.constant 0 : index
    %c0_4 = arith.constant 0 : index
    %2 = vector.load %arg3[%c0_2, %c0_3, %c0_4] : memref<1x8x32xbf16, #tpu.memory_space<vmem>>, vector<1x8x32xbf16>
    %3 = vector.shape_cast %2 : vector<1x8x32xbf16> to vector<8x32xbf16>
    %c0_5 = arith.constant 0 : index
    %c0_6 = arith.constant 0 : index
    %c0_7 = arith.constant 0 : index
    %4 = vector.load %arg4[%c0_5, %c0_6, %c0_7] : memref<1x8x32xbf16, #tpu.memory_space<vmem>>, vector<1x8x32xbf16>
    %5 = vector.shape_cast %4 : vector<1x8x32xbf16> to vector<8x32xbf16>
    %c0_8 = arith.constant 0 : index
    %c0_9 = arith.constant 0 : index
    %c0_10 = arith.constant 0 : index
    %6 = vector.load %arg5[%c0_8, %c0_9, %c0_10] : memref<1x1x8xf32, #tpu.memory_space<vmem>>, vector<1x1x8xf32>
    %7 = vector.shape_cast %6 : vector<1x1x8xf32> to vector<1x8xf32>
    %cst = arith.constant 0.000000e+00 : f32
    %8 = vector.broadcast %cst : f32 to vector<1x8xf32>
    %9 = arith.cmpf one, %7, %8 : vector<1x8xf32>
    %cst_11 = arith.constant 0.000000e+00 : f32
    %cst_12 = arith.constant -1.000000e+09 : f32
    %10 = vector.broadcast %cst_11 : f32 to vector<1x8xf32>
    %11 = vector.broadcast %cst_12 : f32 to vector<1x8xf32>
    %12 = arith.select %9, %10, %11 : vector<1x8xi1>, vector<1x8xf32>
    %c0_13 = arith.constant 0 : index
    %c0_14 = arith.constant 0 : index
    %13 = vector.load %arg7[%c0_13, %c0_14] : memref<32x32xbf16, #tpu.memory_space<vmem>>, vector<32x32xbf16>
    %14 = vector.extract_strided_slice %1 {offsets = [0, 0], sizes = [8, 8], strides = [1, 1]} : vector<8x32xbf16> to vector<8x8xbf16>
    %15 = vector.extract_strided_slice %3 {offsets = [0, 0], sizes = [8, 8], strides = [1, 1]} : vector<8x32xbf16> to vector<8x8xbf16>
    %16 = vector.extract_strided_slice %5 {offsets = [0, 0], sizes = [8, 8], strides = [1, 1]} : vector<8x32xbf16> to vector<8x8xbf16>
    %cst_15 = arith.constant dense<0.000000e+00> : vector<8x8xf32>
    %17 = tpu.matmul %14, %15, %cst_15 {dimension_numbers = #tpu.dot_dimension_numbers<[1], [1], [0], [0], [0, 0, 1, 0], [], []>} : vector<8x8xbf16>, vector<8x8xbf16>, vector<8x8xf32> -> vector<8x8xf32>
    %18 = vector.broadcast %12 : vector<1x8xf32> to vector<8x8xf32>
    %19 = arith.addf %17, %18 : vector<8x8xf32>
    %cst_16 = arith.constant dense<0xFF800000> : vector<8xf32>
    %20 = vector.multi_reduction <maximumf>, %19, %cst_16 [1] : vector<8x8xf32> to vector<8xf32>
    %21 = vector.shape_cast %20 : vector<8xf32> to vector<8x1xf32>
    %22 = vector.broadcast %21 : vector<8x1xf32> to vector<8x8xf32>
    %23 = arith.subf %19, %22 : vector<8x8xf32>
    %24 = math.exp %23 : vector<8x8xf32>
    %cst_17 = arith.constant dense<0.000000e+00> : vector<8xf32>
    %25 = vector.multi_reduction <add>, %24, %cst_17 [1] : vector<8x8xf32> to vector<8xf32>
    %26 = vector.shape_cast %25 : vector<8xf32> to vector<8x1xf32>
    %27 = tpu.reciprocal %26 {approx = true} : vector<8x1xf32> -> vector<8x1xf32>
    %28 = vector.broadcast %27 : vector<8x1xf32> to vector<8x8xf32>
    %29 = arith.mulf %24, %28 : vector<8x8xf32>
    %30 = arith.truncf %29 : vector<8x8xf32> to vector<8x8xbf16>
    %cst_18 = arith.constant dense<0.000000e+00> : vector<8x8xf32>
    %31 = tpu.matmul %30, %16, %cst_18 {dimension_numbers = #tpu.dot_dimension_numbers<[1], [0], [0], [1], [0, 0, 1, 1], [], []>} : vector<8x8xbf16>, vector<8x8xbf16>, vector<8x8xf32> -> vector<8x8xf32>
    %32 = vector.extract_strided_slice %1 {offsets = [0, 8], sizes = [8, 8], strides = [1, 1]} : vector<8x32xbf16> to vector<8x8xbf16>
    %33 = vector.extract_strided_slice %3 {offsets = [0, 8], sizes = [8, 8], strides = [1, 1]} : vector<8x32xbf16> to vector<8x8xbf16>
    %34 = vector.extract_strided_slice %5 {offsets = [0, 8], sizes = [8, 8], strides = [1, 1]} : vector<8x32xbf16> to vector<8x8xbf16>
    %cst_19 = arith.constant dense<0.000000e+00> : vector<8x8xf32>
    %35 = tpu.matmul %32, %33, %cst_19 {dimension_numbers = #tpu.dot_dimension_numbers<[1], [1], [0], [0], [0, 0, 1, 0], [], []>} : vector<8x8xbf16>, vector<8x8xbf16>, vector<8x8xf32> -> vector<8x8xf32>
    %36 = vector.broadcast %12 : vector<1x8xf32> to vector<8x8xf32>
    %37 = arith.addf %35, %36 : vector<8x8xf32>
    %cst_20 = arith.constant dense<0xFF800000> : vector<8xf32>
    %38 = vector.multi_reduction <maximumf>, %37, %cst_20 [1] : vector<8x8xf32> to vector<8xf32>
    %39 = vector.shape_cast %38 : vector<8xf32> to vector<8x1xf32>
    %40 = vector.broadcast %39 : vector<8x1xf32> to vector<8x8xf32>
    %41 = arith.subf %37, %40 : vector<8x8xf32>
    %42 = math.exp %41 : vector<8x8xf32>
    %cst_21 = arith.constant dense<0.000000e+00> : vector<8xf32>
    %43 = vector.multi_reduction <add>, %42, %cst_21 [1] : vector<8x8xf32> to vector<8xf32>
    %44 = vector.shape_cast %43 : vector<8xf32> to vector<8x1xf32>
    %45 = tpu.reciprocal %44 {approx = true} : vector<8x1xf32> -> vector<8x1xf32>
    %46 = vector.broadcast %45 : vector<8x1xf32> to vector<8x8xf32>
    %47 = arith.mulf %42, %46 : vector<8x8xf32>
    %48 = arith.truncf %47 : vector<8x8xf32> to vector<8x8xbf16>
    %cst_22 = arith.constant dense<0.000000e+00> : vector<8x8xf32>
    %49 = tpu.matmul %48, %34, %cst_22 {dimension_numbers = #tpu.dot_dimension_numbers<[1], [0], [0], [1], [0, 0, 1, 1], [], []>} : vector<8x8xbf16>, vector<8x8xbf16>, vector<8x8xf32> -> vector<8x8xf32>
    %50 = vector.extract_strided_slice %1 {offsets = [0, 16], sizes = [8, 8], strides = [1, 1]} : vector<8x32xbf16> to vector<8x8xbf16>
    %51 = vector.extract_strided_slice %3 {offsets = [0, 16], sizes = [8, 8], strides = [1, 1]} : vector<8x32xbf16> to vector<8x8xbf16>
    %52 = vector.extract_strided_slice %5 {offsets = [0, 16], sizes = [8, 8], strides = [1, 1]} : vector<8x32xbf16> to vector<8x8xbf16>
    %cst_23 = arith.constant dense<0.000000e+00> : vector<8x8xf32>
    %53 = tpu.matmul %50, %51, %cst_23 {dimension_numbers = #tpu.dot_dimension_numbers<[1], [1], [0], [0], [0, 0, 1, 0], [], []>} : vector<8x8xbf16>, vector<8x8xbf16>, vector<8x8xf32> -> vector<8x8xf32>
    %54 = vector.broadcast %12 : vector<1x8xf32> to vector<8x8xf32>
    %55 = arith.addf %53, %54 : vector<8x8xf32>
    %cst_24 = arith.constant dense<0xFF800000> : vector<8xf32>
    %56 = vector.multi_reduction <maximumf>, %55, %cst_24 [1] : vector<8x8xf32> to vector<8xf32>
    %57 = vector.shape_cast %56 : vector<8xf32> to vector<8x1xf32>
    %58 = vector.broadcast %57 : vector<8x1xf32> to vector<8x8xf32>
    %59 = arith.subf %55, %58 : vector<8x8xf32>
    %60 = math.exp %59 : vector<8x8xf32>
    %cst_25 = arith.constant dense<0.000000e+00> : vector<8xf32>
    %61 = vector.multi_reduction <add>, %60, %cst_25 [1] : vector<8x8xf32> to vector<8xf32>
    %62 = vector.shape_cast %61 : vector<8xf32> to vector<8x1xf32>
    %63 = tpu.reciprocal %62 {approx = true} : vector<8x1xf32> -> vector<8x1xf32>
    %64 = vector.broadcast %63 : vector<8x1xf32> to vector<8x8xf32>
    %65 = arith.mulf %60, %64 : vector<8x8xf32>
    %66 = arith.truncf %65 : vector<8x8xf32> to vector<8x8xbf16>
    %cst_26 = arith.constant dense<0.000000e+00> : vector<8x8xf32>
    %67 = tpu.matmul %66, %52, %cst_26 {dimension_numbers = #tpu.dot_dimension_numbers<[1], [0], [0], [1], [0, 0, 1, 1], [], []>} : vector<8x8xbf16>, vector<8x8xbf16>, vector<8x8xf32> -> vector<8x8xf32>
    %68 = vector.extract_strided_slice %1 {offsets = [0, 24], sizes = [8, 8], strides = [1, 1]} : vector<8x32xbf16> to vector<8x8xbf16>
    %69 = vector.extract_strided_slice %3 {offsets = [0, 24], sizes = [8, 8], strides = [1, 1]} : vector<8x32xbf16> to vector<8x8xbf16>
    %70 = vector.extract_strided_slice %5 {offsets = [0, 24], sizes = [8, 8], strides = [1, 1]} : vector<8x32xbf16> to vector<8x8xbf16>
    %cst_27 = arith.constant dense<0.000000e+00> : vector<8x8xf32>
    %71 = tpu.matmul %68, %69, %cst_27 {dimension_numbers = #tpu.dot_dimension_numbers<[1], [1], [0], [0], [0, 0, 1, 0], [], []>} : vector<8x8xbf16>, vector<8x8xbf16>, vector<8x8xf32> -> vector<8x8xf32>
    %72 = vector.broadcast %12 : vector<1x8xf32> to vector<8x8xf32>
    %73 = arith.addf %71, %72 : vector<8x8xf32>
    %cst_28 = arith.constant dense<0xFF800000> : vector<8xf32>
    %74 = vector.multi_reduction <maximumf>, %73, %cst_28 [1] : vector<8x8xf32> to vector<8xf32>
    %75 = vector.shape_cast %74 : vector<8xf32> to vector<8x1xf32>
    %76 = vector.broadcast %75 : vector<8x1xf32> to vector<8x8xf32>
    %77 = arith.subf %73, %76 : vector<8x8xf32>
    %78 = math.exp %77 : vector<8x8xf32>
    %cst_29 = arith.constant dense<0.000000e+00> : vector<8xf32>
    %79 = vector.multi_reduction <add>, %78, %cst_29 [1] : vector<8x8xf32> to vector<8xf32>
    %80 = vector.shape_cast %79 : vector<8xf32> to vector<8x1xf32>
    %81 = tpu.reciprocal %80 {approx = true} : vector<8x1xf32> -> vector<8x1xf32>
    %82 = vector.broadcast %81 : vector<8x1xf32> to vector<8x8xf32>
    %83 = arith.mulf %78, %82 : vector<8x8xf32>
    %84 = arith.truncf %83 : vector<8x8xf32> to vector<8x8xbf16>
    %cst_30 = arith.constant dense<0.000000e+00> : vector<8x8xf32>
    %85 = tpu.matmul %84, %70, %cst_30 {dimension_numbers = #tpu.dot_dimension_numbers<[1], [0], [0], [1], [0, 0, 1, 1], [], []>} : vector<8x8xbf16>, vector<8x8xbf16>, vector<8x8xf32> -> vector<8x8xf32>
    %86 = tpu.concatenate %31, %49, %67, %85 in 1 : vector<8x8xf32>, vector<8x8xf32>, vector<8x8xf32>, vector<8x8xf32> -> vector<8x32xf32>
    %87 = arith.truncf %86 : vector<8x32xf32> to vector<8x32xbf16>
    %c0_31 = arith.constant 0 : index
    %c0_32 = arith.constant 0 : index
    %c0_33 = arith.constant 0 : index
    %88 = vector.load %arg6[%c0_31, %c0_32, %c0_33] : memref<1x8x32xf32, #tpu.memory_space<vmem>>, vector<1x8x32xf32>
    %89 = vector.shape_cast %88 : vector<1x8x32xf32> to vector<8x32xf32>
    %c0_34 = arith.constant 0 : index
    %c0_35 = arith.constant 0 : index
    %90 = vector.load %arg8[%c0_34, %c0_35] : memref<1x32xf32, #tpu.memory_space<vmem>>, vector<1x32xf32>
    %91 = vector.broadcast %90 : vector<1x32xf32> to vector<8x32xf32>
    %92 = arith.addf %89, %91 : vector<8x32xf32>
    %cst_36 = arith.constant dense<0.000000e+00> : vector<8x32xf32>
    %93 = tpu.matmul %87, %13, %cst_36 {dimension_numbers = #tpu.dot_dimension_numbers<[1], [0], [0], [1], [0, 0, 1, 1], [], []>} : vector<8x32xbf16>, vector<32x32xbf16>, vector<8x32xf32> -> vector<8x32xf32>
    %94 = arith.addf %92, %93 : vector<8x32xf32>
    %c0_37 = arith.constant 0 : index
    %c0_38 = arith.constant 0 : index
    %c0_39 = arith.constant 0 : index
    %95 = vector.load %arg9[%c0_37, %c0_38, %c0_39] : memref<1x8x32xf32, #tpu.memory_space<vmem>>, vector<1x8x32xf32>
    %96 = vector.shape_cast %95 : vector<1x8x32xf32> to vector<8x32xf32>
    %97 = vector.shape_cast %94 : vector<8x32xf32> to vector<1x8x32xf32>
    tpu.vector_store %arg9[%c0_37, %c0_38, %c0_39], %97 {strides = array<i32>} : memref<1x8x32xf32, #tpu.memory_space<vmem>>, vector<1x8x32xf32>,
    return
  }
  func.func @transform_0(%arg0: i32, %arg1: i32) -> (i32, i32, i32) {
    %c0_i32 = arith.constant 0 : i32
    %c0_i32_0 = arith.constant 0 : i32
    return %arg0, %arg1, %c0_i32 : i32, i32, i32
  }
  func.func @transform_1(%arg0: i32, %arg1: i32) -> (i32, i32, i32) {
    %c0_i32 = arith.constant 0 : i32
    %c0_i32_0 = arith.constant 0 : i32
    %c0_i32_1 = arith.constant 0 : i32
    return %arg0, %c0_i32, %c0_i32_0 : i32, i32, i32
  }
  func.func @transform_2(%arg0: i32, %arg1: i32) -> (i32, i32, i32) {
    %c0_i32 = arith.constant 0 : i32
    %c0_i32_0 = arith.constant 0 : i32
    %c0_i32_1 = arith.constant 0 : i32
    return %arg0, %c0_i32, %c0_i32_0 : i32, i32, i32
  }
  func.func @transform_3(%arg0: i32, %arg1: i32) -> (i32, i32, i32) {
    %c0_i32 = arith.constant 0 : i32
    %c0_i32_0 = arith.constant 0 : i32
    %c0_i32_1 = arith.constant 0 : i32
    return %arg0, %c0_i32, %c0_i32_0 : i32, i32, i32
  }
  func.func @transform_4(%arg0: i32, %arg1: i32) -> (i32, i32, i32) {
    %c0_i32 = arith.constant 0 : i32
    %c0_i32_0 = arith.constant 0 : i32
    return %arg0, %arg1, %c0_i32 : i32, i32, i32
  }
  func.func @transform_5(%arg0: i32, %arg1: i32) -> (i32, i32) {
    %c0_i32 = arith.constant 0 : i32
    %c0_i32_0 = arith.constant 0 : i32
    %c0_i32_1 = arith.constant 0 : i32
    return %c0_i32, %c0_i32_0 : i32, i32
  }
  func.func @transform_6(%arg0: i32, %arg1: i32) -> (i32, i32) {
    %c0_i32 = arith.constant 0 : i32
    %c0_i32_0 = arith.constant 0 : i32
    %c0_i32_1 = arith.constant 0 : i32
    return %c0_i32, %c0_i32_0 : i32, i32
  }
  func.func @transform_7(%arg0: i32, %arg1: i32) -> (i32, i32, i32) {
    %c0_i32 = arith.constant 0 : i32
    %c0_i32_0 = arith.constant 0 : i32
    return %arg0, %arg1, %c0_i32 : i32, i32, i32
  }
}

</mosaic_0001>

<bundles_post_ra>
// kernel: decoder.15
= control target key start
LH: loop header
LB: loop body
LE: loop exit
PB: predicated region body
PF: predicated region fallthrough
CT: control target
= control target key end

     0   :  { %10 = vsyncpa [#allocation3], 0  ;;  %s560_s0 = inlined_call_operand.hbm [shape: f32[16,32], index: 0, kind: input, shape index: {}]   ;;  %s561_s1 = inlined_call_operand.hbm [shape: f32[1,32], index: 1, kind: input, shape index: {}]   ;;  %s562_s2 = inlined_call_operand.hbm [shape: f32[1,32], index: 2, kind: input, shape index: {}]   ;;  %s563_s3 = inlined_call_operand.hbm [shape: bf16[32,32], index: 3, kind: input, shape index: {}]   ;;  %s564_s4 = inlined_call_operand.hbm [shape: f32[1,32], index: 4, kind: input, shape index: {}]   ;;  %s565_s5 = inlined_call_operand.hbm [shape: bf16[16,32], index: 5, kind: output, shape index: {}]  }
   0x1   :  { %11 = vsyncpa [#allocation6], 0 }
   0x2   :  { %12 = vsyncpa [#allocation9], 0 }
   0x3   :  { %13 = vsyncpa [#allocation4], 0  ;;  %s428_s18 = smov [#allocation5]   ;;  %s429_s20 = smov [#allocation8]  }
   0x4   :  { %s32_s19 = sshll.u32 %s428_s18, 4  ;;  %s51_s21 = sshll.u32 %s429_s20, 4  ;;  %s33_s19 = int_to_ptr.vmem [resolvable:$true] %s32_s19  ;;  %s470_s21 = int_to_ptr.vmem [resolvable:$true] %s51_s21 }
   0x5   :  { %s288_s24 = scalar_lea.hbm %s561_s1, 16 }
   0x6   :  { %p289_p0 = scmp.ne.s32.totalorder %s561_s1, %s288_s24  ;;  %p292_p1 = scmp.lt.u32.totalorder %s288_s24, %s561_s1 }
   0x8   :  { %p294_p2 = pnand %p292_p1, %p289_p0 }
   0xa   :  { %297 = shalt.err (!%p294_p2)
}
   0xb   :  { %s298_s29 = scalar_lea.vmem %s33_s19, 16  ;;  %s302_s30 = scalar_lea.vmem %s33_s19, 32 }
   0xc   :  { %p299_p3 = scmp.ne.s32.totalorder %s33_s19, %s298_s29  ;;  %p303_p4 = scmp.lt.s32.totalorder %s33_s19, %s33_s19 }
   0xd   :  { %p304_p5 = scmp.lt.s32.totalorder %s302_s30, %s298_s29 }
   0xf   :  { %p305_p6 = por %p304_p5, %p303_p4 }
  0x11   :  { %p306_p7 = pnand %p305_p6, %p299_p3 }
  0x13   :  { %309 = shalt.err (!%p306_p7)
}
  0x14   :  { %35 = dma.hbm_to_vmem [thread:$0]  %s561_s1, 16, %s33_s19, [#allocation6]  }
  0x15   :  { %s310_s10 = scalar_lea.hbm %s563_s3, 256 }
  0x16   :  { %p311_p8 = scmp.ne.s32.totalorder %s563_s3, %s310_s10  ;;  %p314_p9 = scmp.lt.u32.totalorder %s310_s10, %s563_s3 }
  0x18   :  { %p316_p10 = pnand %p314_p9, %p311_p8 }
  0x1a   :  { %319 = shalt.err (!%p316_p10)
}
  0x1b   :  { %s320_s15 = scalar_lea.vmem %s470_s21, 256  ;;  %p325_p12 = scmp.lt.s32.totalorder %s470_s21, %s470_s21 }
  0x1c   :  { %p321_p11 = scmp.ne.s32.totalorder %s470_s21, %s320_s15  ;;  %p326_p13 = scmp.lt.s32.totalorder %s320_s15, %s320_s15 }
  0x1e   :  { %p327_p0 = por %p326_p13, %p325_p12 }
  0x20   :  { %p328_p1 = pnand %p327_p0, %p321_p11 }
  0x22   :  { %331 = shalt.err (!%p328_p1)
}
  0x23   :  { %s430_s1 = smov 64   ;;  %s431_s16 = smov 4  }
  0x24   :  { %57 = dma.hbm_to_vmem [thread:$0]  %s563_s3, 256, %s470_s21, [#allocation9], %s430_s1, %s430_s1, %s431_s16  }
  0x25   :  { %s432_s19 = smov [#allocation2]   ;;  %s332_s24 = scalar_lea.hbm %s560_s0, 256 }
  0x26   :  { %s19_s20 = sshll.u32 %s432_s19, 4  ;;  %p333_p2 = scmp.ne.s32.totalorder %s560_s0, %s332_s24  ;;  %s20_s20 = int_to_ptr.vmem [resolvable:$true] %s19_s20 }
  0x27   :  { %p336_p3 = scmp.lt.u32.totalorder %s332_s24, %s560_s0 }
  0x29   :  { %p338_p4 = pnand %p336_p3, %p333_p2 }
  0x2b   :  { %341 = shalt.err (!%p338_p4)
}
  0x2c   :  { %s342_s29 = scalar_lea.vmem %s20_s20, 256  ;;  %p347_p6 = scmp.lt.s32.totalorder %s20_s20, %s20_s20 }
  0x2d   :  { %p343_p5 = scmp.ne.s32.totalorder %s20_s20, %s342_s29  ;;  %p348_p7 = scmp.lt.s32.totalorder %s342_s29, %s342_s29 }
  0x2f   :  { %p349_p8 = por %p348_p7, %p347_p6 }
  0x31   :  { %p350_p9 = pnand %p349_p8, %p343_p5 }
  0x33   :  { %353 = shalt.err (!%p350_p9)
}
  0x34   :  { %s433_s3 = smov 128   ;;  %s434_s21 = smov 8  }
  0x35   :  { %25 = dma.hbm_to_vmem [thread:$0]  %s560_s0, 256, %s20_s20, [#allocation3], %s433_s3, %s433_s3, %s434_s21  }
  0x36   :  { %s435_s7 = smov [#allocation7]   ;;  %s436_s9 = smov [#allocation10]  }
  0x37   :  { %s42_s8 = sshll.u32 %s435_s7, 4  ;;  %s64_s10 = sshll.u32 %s436_s9, 4  ;;  %s43_s8 = int_to_ptr.vmem [resolvable:$true] %s42_s8  ;;  %s65_s10 = int_to_ptr.vmem [resolvable:$true] %s64_s10 }
  0x38   :  { %s354_s13 = scalar_lea.hbm %s562_s2, 16 }
  0x39   :  { %p355_p10 = scmp.ne.s32.totalorder %s562_s2, %s354_s13  ;;  %p358_p11 = scmp.lt.u32.totalorder %s354_s13, %s562_s2 }
  0x3b   :  { %p360_p12 = pnand %p358_p11, %p355_p10 }
  0x3d   :  { %363 = shalt.err (!%p360_p12)
}
  0x3e   :  { %s364_s0 = scalar_lea.vmem %s43_s8, 16  ;;  %s368_s19 = scalar_lea.vmem %s43_s8, 32 }
  0x3f   :  { %p365_p13 = scmp.ne.s32.totalorder %s43_s8, %s364_s0  ;;  %p369_p0 = scmp.lt.s32.totalorder %s43_s8, %s43_s8 }
  0x40   :  { %p370_p1 = scmp.lt.s32.totalorder %s368_s19, %s364_s0 }
  0x42   :  { %p371_p2 = por %p370_p1, %p369_p0 }
  0x44   :  { %p372_p3 = pnand %p371_p2, %p365_p13 }
  0x46   :  { %375 = shalt.err (!%p372_p3)
}
  0x47   :  { %45 = dma.hbm_to_vmem [thread:$0]  %s562_s2, 16, %s43_s8, [#allocation6]  }
  0x48   :  { %s376_s25 = scalar_lea.hbm %s564_s4, 16 }
  0x49   :  { %p377_p4 = scmp.ne.s32.totalorder %s564_s4, %s376_s25  ;;  %p380_p5 = scmp.lt.u32.totalorder %s376_s25, %s564_s4 }
  0x4b   :  { %p382_p6 = pnand %p380_p5, %p377_p4 }
  0x4d   :  { %385 = shalt.err (!%p382_p6)
}
  0x4e   :  { %s386_s3 = scalar_lea.vmem %s65_s10, 16  ;;  %s390_s21 = scalar_lea.vmem %s65_s10, 32 }
  0x4f   :  { %p387_p7 = scmp.ne.s32.totalorder %s65_s10, %s386_s3  ;;  %p391_p8 = scmp.lt.s32.totalorder %s65_s10, %s65_s10 }
  0x50   :  { %p392_p9 = scmp.lt.s32.totalorder %s390_s21, %s386_s3 }
  0x52   :  { %p393_p10 = por %p392_p9, %p391_p8 }
  0x54   :  { %p394_p11 = pnand %p393_p10, %p387_p7 }
  0x56   :  { %397 = shalt.err (!%p394_p11)
}
  0x57   :  { %67 = dma.hbm_to_vmem [thread:$0]  %s564_s4, 16, %s65_s10, [#allocation9]  }
  0x58   :  { %420 = dma.done.wait [#allocation3], 256  }
  0x59   :  { %421 = vsyncadd [#allocation3], 4294967040 }
  0x5a   :  { %422 = dma.done.wait [#allocation6], 32  }
  0x5b   :  { %423 = vsyncadd [#allocation6], 4294967264 }
  0x5c   :  { %424 = dma.done.wait [#allocation9], 272  }
  0x5d   :  { %425 = vsyncadd [#allocation9], 4294967024  ;;  %vm86_vm0 = vcmask 261120   ;;  %v84_v0 = vld [vmem:[#allocation2] sm:$0xff]  ;;  %v85_v1 = vld [vmem:[#allocation2 + $0x8] sm:$0xff]  ;;  %v437_v15 = vmov 0.0  }
  0x5e   :  { %v87_v2 = vsel %vm86_vm0, %v84_v0, 0.0  ;;  %v90_v3 = vsel %vm86_vm0, %v85_v1, 0.0  ;;  %v278_v14 = vld [vmem:[#allocation8] sm:$0xff]   ;;  %258 = vmatprep.subr.bf16.mxu0 %v437_v15  ;;  %vm438_vm1 = vmmov 0   ;;  %v279_v16 = vld [vmem:[#allocation8 + $0x8] sm:$0xff]   ;;  %vm223_vm6 = vcmask 257024  }
  0x5f   :  { %88 = vadd.xlane.f32.xlu0 %v87_v2  ;;  %262 = vmatprep.mubr.msk.bf16.mxu0 %vm438_vm1, %v437_v15  ;;  %v245_v33 = vld [vmem:[#allocation5] ss:$0 sm:$0xff]  ;;  %v246_v39 = vld [vmem:[#allocation7] ss:$0 sm:$0xff]  ;;  %v247_v44 = vld [vmem:[#allocation10] ss:$0 sm:$0xff] }
  0x60   :  { %259 = vmatpush3.bf16.msra.mxu0 %v278_v14  ;;  %s439_s4 = smov [#allocation11]  }
  0x61   :  { %260 = vmatprep.subr.bf16.mxu0 %v437_v15  ;;  %s231_s6 = sshll.u32 %s439_s4, 4  ;;  %s232_s6 = int_to_ptr.vmem [resolvable:$true] %s231_s6 }
  0x62   :  { %s398_s7 = scalar_lea.vmem %s232_s6, 128  ;;  %p403_p13 = scmp.lt.s32.totalorder %s232_s6, %s232_s6 }
  0x63   :  { %91 = vadd.xlane.f32.xlu0 %v90_v3  ;;  %p399_p12 = scmp.ne.s32.totalorder %s232_s6, %s398_s7  ;;  %p404_p0 = scmp.lt.s32.totalorder %s398_s7, %s398_s7 }
  0x64   :  { %261 = vmatpush3.bf16.msra.mxu0 %v279_v16 }
  0x65   :  { %p405_p1 = por %p404_p0, %p403_p13 }
  0x67   :  { %p406_p2 = pnand %p405_p1, %p399_p12 }
  0xec   :  { %v89_v4 = vpop.xlane.xlu0 %88 }
  0xed   :  { %v94_v5 = vmul.f32 0.03125, %v89_v4 }
  0xef   :  { %v96_v6 = vsub.f32 %v84_v0, %v94_v5 }
  0xf0   :  { %v92_v7 = vpop.xlane.xlu0 %91 }
  0xf1   :  { %v95_v8 = vmul.f32 0.03125, %v92_v7  ;;  %v98_v9 = vmul.f32 %v96_v6, %v96_v6  ;;  %v130_v35 = vmul.f32 %v245_v33, %v96_v6 }
  0xf3   :  { %v97_v10 = vsub.f32 %v85_v1, %v95_v8  ;;  %v100_v11 = vsel %vm86_vm0, %v98_v9, 0.0 }
  0xf4   :  { %101 = vadd.xlane.f32.xlu1 %v100_v11 }
  0xf5   :  { %v99_v12 = vmul.f32 %v97_v10, %v97_v10  ;;  %v131_v36 = vmul.f32 %v245_v33, %v97_v10 }
  0xf7   :  { %v103_v13 = vsel %vm86_vm0, %v99_v12, 0.0 }
  0xf8   :  { %104 = vadd.xlane.f32.xlu1 %v103_v13 }
 0x181   :  { %v102_v17 = vpop.xlane.xlu1 %101 }
 0x182   :  { %v107_v18 = vmul.f32 0.032258064, %v102_v17 }
 0x184   :  { %280 = vrsqrt.f32 %v107_v18  ;;  %vm111_vm2 = vcmp.eq.f32.partialorder %v107_v18, inf  ;;  %v114_v23 = vand.u32 2147483648, %v107_v18  ;;  %vm113_vm3 = vcmp.eq.f32.partialorder %v107_v18, 0.0 }
 0x185   :  { %v105_v19 = vpop.xlane.xlu1 %104 }
 0x186   :  { %v108_v20 = vmul.f32 0.032258064, %v105_v19 }
 0x188   :  { %282 = vrsqrt.f32 %v108_v20  ;;  %vm118_vm4 = vcmp.eq.f32.partialorder %v108_v20, inf  ;;  %v121_v29 = vand.u32 2147483648, %v108_v20  ;;  %vm120_vm5 = vcmp.eq.f32.partialorder %v108_v20, 0.0 }
 0x18e   :  { %v281_v21 = vpop.eup %280 }
 0x18f   :  { %v110_v22 = vmul.f32 %v281_v21, %v107_v18 }
 0x191   :  { %v112_v24 = vsel %vm111_vm2, %v107_v18, %v110_v22 }
 0x192   :  { %v283_v25 = vpop.eup %282  ;;  %v115_v26 = vsel %vm113_vm3, %v114_v23, %v112_v24 }
 0x193   :  { %v132_v27 = vadd.f32 1e-06, %v115_v26  ;;  %v117_v28 = vmul.f32 %v283_v25, %v108_v20 }
 0x195   :  { %284 = vrcp.f32 %v132_v27  ;;  %v119_v30 = vsel %vm118_vm4, %v108_v20, %v117_v28 }
 0x196   :  { %v122_v31 = vsel %vm120_vm5, %v121_v29, %v119_v30 }
 0x197   :  { %v133_v32 = vadd.f32 1e-06, %v122_v31 }
 0x199   :  { %286 = vrcp.f32 %v133_v32 }
 0x19f   :  { %v285_v34 = vpop.eup %284 }
 0x1a0   :  { %v135_v37 = vmul.f32 %v285_v34, %v130_v35 }
 0x1a2   :  { %v145_v41 = vadd.f32 %v246_v39, %v135_v37 }
 0x1a3   :  { %v287_v38 = vpop.eup %286 }
 0x1a4   :  { %v137_v40 = vmul.f32 %v287_v38, %v131_v36 }
 0x1a6   :  { %v146_v42 = vadd.f32 %v246_v39, %v137_v40 }
 0x1a8   :  { %v147_v43 = vpack.c.bf16 %v146_v42, %v145_v41 }
 0x1aa   :  { %263 = vmatmul.mubr.msk.bf16.vlgmr.msra.gmra.mrb[0].mxu0 %vm86_vm0, %v147_v43 }
 0x27d   :  { %v208_v45 = vpop.f32.mrb[0].mxu0 }
 0x27e   :  { %v209_v46 = vadd.f32 %v247_v44, %v208_v45  ;;  %v264_v47 = vpop.f32.mrb[1].mxu0 }
 0x27f   :  { %v211_v48 = vpop.f32.mrb[2].mxu0 }
 0x280   :  { %v253_v49 = vpack.c.bf16 %v209_v46, %v209_v46  ;;  %v212_v50 = vadd.f32 %v247_v44, %v211_v48  ;;  %v265_v51 = vpop.f32.mrb[3].mxu0 }
 0x282   :  { %v254_v52 = vpack.c.bf16 %v212_v50, %v212_v50  ;;  %224 = vst.msk [vmem:[#allocation11] sm:$0xf] %vm223_vm6, %v253_v49 }
 0x284   :  { %225 = vst.msk [vmem:[#allocation11 + $0x4] sm:$0xf] %vm223_vm6, %v254_v52 }
 0x285   :  { %409 = shalt.err (!%p406_p2)
}
 0x286   :  { %s410_s10 = scalar_lea.hbm %s565_s5, 128 }
 0x287   :  { %p411_p3 = scmp.ne.s32.totalorder %s565_s5, %s410_s10  ;;  %p414_p4 = scmp.lt.u32.totalorder %s410_s10, %s565_s5 }
 0x289   :  { %p416_p5 = pnand %p414_p4, %p411_p3 }
 0x28b   :  { %419 = shalt.err (!%p416_p5)
}
 0x28c   :  { %237 = dma.vmem_to_hbm [thread:$0]  %s232_s6, 128, %s565_s5, [#allocation4], %s430_s1, %s430_s1, %s431_s16  }
 0x28d   :  { %426 = dma.done.wait [#allocation4], 128  }
 0x28e   :  { %427 = vsyncadd [#allocation4], 4294967168 }
 0x28f   :  { %241 = vsyncpa [#allocation3], 1 }
 0x290   :  { %242 = vsyncpa [#allocation6], 1 }
 0x291   :  { %243 = vsyncpa [#allocation9], 1 }
 0x292   :  { %244 = vsyncpa [#allocation4], 1 }

// kernel: decoder.13
= control target key start
LH: loop header
LB: loop body
LE: loop exit
PB: predicated region body
PF: predicated region fallthrough
CT: control target
= control target key end

     0   :  { %13 = vsyncpa [#allocation3], 0  ;;  %s711_s0 = inlined_call_operand.hbm [shape: f32[16,32], index: 0, kind: input, shape index: {}]   ;;  %s712_s1 = inlined_call_operand.hbm [shape: f32[1,32], index: 1, kind: input, shape index: {}]   ;;  %s713_s2 = inlined_call_operand.hbm [shape: f32[1,32], index: 2, kind: input, shape index: {}]   ;;  %s714_s3 = inlined_call_operand.hbm [shape: bf16[32,96], index: 3, kind: input, shape index: {}]   ;;  %s715_s4 = inlined_call_operand.hbm [shape: f32[1,96], index: 4, kind: input, shape index: {}]   ;;  %s716_s5 = inlined_call_operand.hbm [shape: bf16[16,32], index: 5, kind: output, shape index: {0}]   ;;  %s717_s6 = inlined_call_operand.hbm [shape: bf16[16,32], index: 6, kind: output, shape index: {1}]   ;;  %s718_s7 = inlined_call_operand.hbm [shape: bf16[16,32], index: 7, kind: output, shape index: {2}]  }
   0x1   :  { %14 = vsyncpa [#allocation6], 0 }
   0x2   :  { %15 = vsyncpa [#allocation9], 0 }
   0x3   :  { %16 = vsyncpa [#allocation4], 0 }
   0x4   :  { %17 = vsyncpa [#allocation13], 0  ;;  %s528_s24 = smov [#allocation5]   ;;  %s529_s26 = smov [#allocation8]  }
   0x5   :  { %s36_s25 = sshll.u32 %s528_s24, 4  ;;  %s55_s27 = sshll.u32 %s529_s26, 4  ;;  %s37_s25 = int_to_ptr.vmem [resolvable:$true] %s36_s25  ;;  %s583_s27 = int_to_ptr.vmem [resolvable:$true] %s55_s27 }
   0x6   :  { %s342_s30 = scalar_lea.hbm %s712_s1, 16 }
   0x7   :  { %p343_p0 = scmp.ne.s32.totalorder %s712_s1, %s342_s30  ;;  %p346_p1 = scmp.lt.u32.totalorder %s342_s30, %s712_s1 }
   0x9   :  { %p348_p2 = pnand %p346_p1, %p343_p0 }
   0xb   :  { %351 = shalt.err (!%p348_p2)
}
   0xc   :  { %s352_s12 = scalar_lea.vmem %s37_s25, 16  ;;  %s356_s13 = scalar_lea.vmem %s37_s25, 32 }
   0xd   :  { %p353_p3 = scmp.ne.s32.totalorder %s37_s25, %s352_s12  ;;  %p357_p4 = scmp.lt.s32.totalorder %s37_s25, %s37_s25 }
   0xe   :  { %p358_p5 = scmp.lt.s32.totalorder %s356_s13, %s352_s12 }
  0x10   :  { %p359_p6 = por %p358_p5, %p357_p4 }
  0x12   :  { %p360_p7 = pnand %p359_p6, %p353_p3 }
  0x14   :  { %363 = shalt.err (!%p360_p7)
}
  0x15   :  { %39 = dma.hbm_to_vmem [thread:$0]  %s712_s1, 16, %s37_s25, [#allocation6]  }
  0x16   :  { %s364_s18 = scalar_lea.hbm %s714_s3, 256 }
  0x17   :  { %p365_p8 = scmp.ne.s32.totalorder %s714_s3, %s364_s18  ;;  %p368_p9 = scmp.lt.u32.totalorder %s364_s18, %s714_s3 }
  0x19   :  { %p370_p10 = pnand %p368_p9, %p365_p8 }
  0x1b   :  { %373 = shalt.err (!%p370_p10)
}
  0x1c   :  { %s374_s23 = scalar_lea.vmem %s583_s27, 256  ;;  %p379_p12 = scmp.lt.s32.totalorder %s583_s27, %s583_s27 }
  0x1d   :  { %p375_p11 = scmp.ne.s32.totalorder %s583_s27, %s374_s23  ;;  %p380_p13 = scmp.lt.s32.totalorder %s374_s23, %s374_s23 }
  0x1f   :  { %p381_p0 = por %p380_p13, %p379_p12 }
  0x21   :  { %p382_p1 = pnand %p381_p0, %p375_p11 }
  0x23   :  { %385 = shalt.err (!%p382_p1)
}
  0x24   :  { %s530_s1 = smov 64   ;;  %s531_s24 = smov 4  }
  0x25   :  { %61 = dma.hbm_to_vmem [thread:$0]  %s714_s3, 256, %s583_s27, [#allocation9], %s530_s1, %s530_s1, %s531_s24  }
  0x26   :  { %s532_s28 = smov [#allocation2]   ;;  %s386_s9 = scalar_lea.hbm %s711_s0, 256 }
  0x27   :  { %s23_s29 = sshll.u32 %s532_s28, 4  ;;  %p387_p2 = scmp.ne.s32.totalorder %s711_s0, %s386_s9  ;;  %s24_s29 = int_to_ptr.vmem [resolvable:$true] %s23_s29 }
  0x28   :  { %p390_p3 = scmp.lt.u32.totalorder %s386_s9, %s711_s0 }
  0x2a   :  { %p392_p4 = pnand %p390_p3, %p387_p2 }
  0x2c   :  { %395 = shalt.err (!%p392_p4)
}
  0x2d   :  { %s396_s14 = scalar_lea.vmem %s24_s29, 256  ;;  %p401_p6 = scmp.lt.s32.totalorder %s24_s29, %s24_s29 }
  0x2e   :  { %p397_p5 = scmp.ne.s32.totalorder %s24_s29, %s396_s14  ;;  %p402_p7 = scmp.lt.s32.totalorder %s396_s14, %s396_s14 }
  0x30   :  { %p403_p8 = por %p402_p7, %p401_p6 }
  0x32   :  { %p404_p9 = pnand %p403_p8, %p397_p5 }
  0x34   :  { %407 = shalt.err (!%p404_p9)
}
  0x35   :  { %s533_s3 = smov 128   ;;  %s534_s27 = smov 8  }
  0x36   :  { %29 = dma.hbm_to_vmem [thread:$0]  %s711_s0, 256, %s24_s29, [#allocation3], %s533_s3, %s533_s3, %s534_s27  }
  0x37   :  { %s535_s17 = smov [#allocation7]   ;;  %s536_s19 = smov [#allocation10]  }
  0x38   :  { %s46_s18 = sshll.u32 %s535_s17, 4  ;;  %s68_s20 = sshll.u32 %s536_s19, 4  ;;  %s47_s18 = int_to_ptr.vmem [resolvable:$true] %s46_s18  ;;  %s69_s20 = int_to_ptr.vmem [resolvable:$true] %s68_s20 }
  0x39   :  { %s408_s23 = scalar_lea.hbm %s713_s2, 16 }
  0x3a   :  { %p409_p10 = scmp.ne.s32.totalorder %s713_s2, %s408_s23  ;;  %p412_p11 = scmp.lt.u32.totalorder %s408_s23, %s713_s2 }
  0x3c   :  { %p414_p12 = pnand %p412_p11, %p409_p10 }
  0x3e   :  { %417 = shalt.err (!%p414_p12)
}
  0x3f   :  { %s418_s0 = scalar_lea.vmem %s47_s18, 16  ;;  %s422_s29 = scalar_lea.vmem %s47_s18, 32 }
  0x40   :  { %p419_p13 = scmp.ne.s32.totalorder %s47_s18, %s418_s0  ;;  %p423_p0 = scmp.lt.s32.totalorder %s47_s18, %s47_s18 }
  0x41   :  { %p424_p1 = scmp.lt.s32.totalorder %s422_s29, %s418_s0 }
  0x43   :  { %p425_p2 = por %p424_p1, %p423_p0 }
  0x45   :  { %p426_p3 = pnand %p425_p2, %p419_p13 }
  0x47   :  { %429 = shalt.err (!%p426_p3)
}
  0x48   :  { %49 = dma.hbm_to_vmem [thread:$0]  %s713_s2, 16, %s47_s18, [#allocation6]  }
  0x49   :  { %s430_s12 = scalar_lea.hbm %s715_s4, 16 }
  0x4a   :  { %p431_p4 = scmp.ne.s32.totalorder %s715_s4, %s430_s12  ;;  %p434_p5 = scmp.lt.u32.totalorder %s430_s12, %s715_s4 }
  0x4c   :  { %p436_p6 = pnand %p434_p5, %p431_p4 }
  0x4e   :  { %439 = shalt.err (!%p436_p6)
}
  0x4f   :  { %s440_s15 = scalar_lea.vmem %s69_s20, 16  ;;  %s444_s16 = scalar_lea.vmem %s69_s20, 32 }
  0x50   :  { %p441_p7 = scmp.ne.s32.totalorder %s69_s20, %s440_s15  ;;  %p445_p8 = scmp.lt.s32.totalorder %s69_s20, %s69_s20 }
  0x51   :  { %p446_p9 = scmp.lt.s32.totalorder %s444_s16, %s440_s15 }
  0x53   :  { %p447_p10 = por %p446_p9, %p445_p8 }
  0x55   :  { %p448_p11 = pnand %p447_p10, %p441_p7 }
  0x57   :  { %451 = shalt.err (!%p448_p11)
}
  0x58   :  { %71 = dma.hbm_to_vmem [thread:$0]  %s715_s4, 16, %s69_s20, [#allocation9]  }
  0x59   :  { %518 = dma.done.wait [#allocation3], 256  }
  0x5a   :  { %519 = vsyncadd [#allocation3], 4294967040 }
  0x5b   :  { %520 = dma.done.wait [#allocation6], 32  }
  0x5c   :  { %521 = vsyncadd [#allocation6], 4294967264 }
  0x5d   :  { %522 = dma.done.wait [#allocation9], 272  }
  0x5e   :  { %523 = vsyncadd [#allocation9], 4294967024  ;;  %vm90_vm0 = vcmask 261120   ;;  %v88_v0 = vld [vmem:[#allocation2] sm:$0xff]  ;;  %v89_v1 = vld [vmem:[#allocation2 + $0x8] sm:$0xff]  ;;  %v537_v15 = vmov 0.0  }
  0x5f   :  { %v91_v2 = vsel %vm90_vm0, %v88_v0, 0.0  ;;  %v94_v3 = vsel %vm90_vm0, %v89_v1, 0.0  ;;  %v332_v14 = vld [vmem:[#allocation8] sm:$0xff]   ;;  %309 = vmatprep.subr.bf16.mxu0 %v537_v15  ;;  %vm538_vm1 = vmmov 0   ;;  %v333_v16 = vld [vmem:[#allocation8 + $0x8] sm:$0xff]   ;;  %vm227_vm6 = vcmask 257024  }
  0x60   :  { %92 = vadd.xlane.f32.xlu0 %v91_v2  ;;  %313 = vmatprep.mubr.msk.bf16.mxu0 %vm538_vm1, %v537_v15  ;;  %v296_v33 = vld [vmem:[#allocation5] ss:$0 sm:$0xff]  ;;  %v297_v39 = vld [vmem:[#allocation7] ss:$0 sm:$0xff]  ;;  %v298_v44 = vld [vmem:[#allocation10] ss:$0 sm:$0xff] }
  0x61   :  { %310 = vmatpush3.bf16.msra.mxu0 %v332_v14  ;;  %s539_s4 = smov [#allocation11]   ;;  %s540_s19 = smov 96  }
  0x62   :  { %311 = vmatprep.subr.bf16.mxu0 %v537_v15  ;;  %s251_s18 = sshll.u32 %s539_s4, 4  ;;  %s252_s18 = int_to_ptr.vmem [resolvable:$true] %s251_s18 }
  0x63   :  { %s452_s20 = scalar_lea.vmem %s252_s18, 128  ;;  %p457_p13 = scmp.lt.s32.totalorder %s252_s18, %s252_s18 }
  0x64   :  { %95 = vadd.xlane.f32.xlu0 %v94_v3  ;;  %p453_p12 = scmp.ne.s32.totalorder %s252_s18, %s452_s20  ;;  %p458_p0 = scmp.lt.s32.totalorder %s452_s20, %s452_s20 }
  0x65   :  { %312 = vmatpush3.bf16.msra.mxu0 %v333_v16 }
  0x66   :  { %p459_p1 = por %p458_p0, %p457_p13 }
  0x68   :  { %p460_p2 = pnand %p459_p1, %p453_p12 }
  0xed   :  { %v93_v4 = vpop.xlane.xlu0 %92 }
  0xee   :  { %v98_v5 = vmul.f32 0.03125, %v93_v4 }
  0xf0   :  { %v100_v6 = vsub.f32 %v88_v0, %v98_v5 }
  0xf1   :  { %v96_v7 = vpop.xlane.xlu0 %95 }
  0xf2   :  { %v99_v8 = vmul.f32 0.03125, %v96_v7  ;;  %v102_v9 = vmul.f32 %v100_v6, %v100_v6  ;;  %v134_v35 = vmul.f32 %v296_v33, %v100_v6 }
  0xf4   :  { %v101_v10 = vsub.f32 %v89_v1, %v99_v8  ;;  %v104_v11 = vsel %vm90_vm0, %v102_v9, 0.0 }
  0xf5   :  { %105 = vadd.xlane.f32.xlu1 %v104_v11 }
  0xf6   :  { %v103_v12 = vmul.f32 %v101_v10, %v101_v10  ;;  %v135_v36 = vmul.f32 %v296_v33, %v101_v10 }
  0xf8   :  { %v107_v13 = vsel %vm90_vm0, %v103_v12, 0.0 }
  0xf9   :  { %108 = vadd.xlane.f32.xlu1 %v107_v13 }
 0x182   :  { %v106_v17 = vpop.xlane.xlu1 %105 }
 0x183   :  { %v111_v18 = vmul.f32 0.032258064, %v106_v17 }
 0x185   :  { %334 = vrsqrt.f32 %v111_v18  ;;  %vm115_vm2 = vcmp.eq.f32.partialorder %v111_v18, inf  ;;  %v118_v23 = vand.u32 2147483648, %v111_v18  ;;  %vm117_vm3 = vcmp.eq.f32.partialorder %v111_v18, 0.0 }
 0x186   :  { %v109_v19 = vpop.xlane.xlu1 %108 }
 0x187   :  { %v112_v20 = vmul.f32 0.032258064, %v109_v19 }
 0x189   :  { %336 = vrsqrt.f32 %v112_v20  ;;  %vm122_vm4 = vcmp.eq.f32.partialorder %v112_v20, inf  ;;  %v125_v29 = vand.u32 2147483648, %v112_v20  ;;  %vm124_vm5 = vcmp.eq.f32.partialorder %v112_v20, 0.0 }
 0x18f   :  { %v335_v21 = vpop.eup %334 }
 0x190   :  { %v114_v22 = vmul.f32 %v335_v21, %v111_v18 }
 0x192   :  { %v116_v24 = vsel %vm115_vm2, %v111_v18, %v114_v22 }
 0x193   :  { %v337_v25 = vpop.eup %336  ;;  %v119_v26 = vsel %vm117_vm3, %v118_v23, %v116_v24 }
 0x194   :  { %v136_v27 = vadd.f32 1e-06, %v119_v26  ;;  %v121_v28 = vmul.f32 %v337_v25, %v112_v20 }
 0x196   :  { %338 = vrcp.f32 %v136_v27  ;;  %v123_v30 = vsel %vm122_vm4, %v112_v20, %v121_v28 }
 0x197   :  { %v126_v31 = vsel %vm124_vm5, %v125_v29, %v123_v30 }
 0x198   :  { %v137_v32 = vadd.f32 1e-06, %v126_v31 }
 0x19a   :  { %340 = vrcp.f32 %v137_v32 }
 0x1a0   :  { %v339_v34 = vpop.eup %338 }
 0x1a1   :  { %v139_v37 = vmul.f32 %v339_v34, %v134_v35 }
 0x1a3   :  { %v149_v41 = vadd.f32 %v297_v39, %v139_v37 }
 0x1a4   :  { %v341_v38 = vpop.eup %340 }
 0x1a5   :  { %v141_v40 = vmul.f32 %v341_v38, %v135_v36 }
 0x1a7   :  { %v150_v42 = vadd.f32 %v297_v39, %v141_v40 }
 0x1a9   :  { %v151_v43 = vpack.c.bf16 %v150_v42, %v149_v41 }
 0x1ab   :  { %314 = vmatmul.mubr.msk.bf16.vlgmr.msra.gmra.mrb[0].mxu0 %vm90_vm0, %v151_v43 }
 0x27e   :  { %v212_v45 = vpop.f32.mrb[0].mxu0 }
 0x27f   :  { %v213_v46 = vadd.f32 %v298_v44, %v212_v45  ;;  %v315_v47 = vpop.f32.mrb[1].mxu0 }
 0x280   :  { %v215_v48 = vpop.f32.mrb[2].mxu0 }
 0x281   :  { %v304_v49 = vpack.c.bf16 %v213_v46, %v213_v46  ;;  %v216_v50 = vadd.f32 %v298_v44, %v215_v48  ;;  %v316_v51 = vpop.f32.mrb[3].mxu0 }
 0x283   :  { %v305_v52 = vpack.c.bf16 %v216_v50, %v216_v50  ;;  %238 = vrot.lane.b32.xlu1 %v304_v49, %s530_s1  ;;  %230 = vrot.lane.b32.xlu0 %v304_v49, %s540_s19  ;;  %228 = vst.msk [vmem:[#allocation11] sm:$0xf] %vm227_vm6, %v304_v49 }
 0x285   :  { %229 = vst.msk [vmem:[#allocation11 + $0x4] sm:$0xf] %vm227_vm6, %v305_v52 }
 0x286   :  { %463 = shalt.err (!%p460_p2)
}
 0x287   :  { %s464_s23 = scalar_lea.hbm %s716_s5, 128 }
 0x288   :  { %p465_p3 = scmp.ne.s32.totalorder %s716_s5, %s464_s23  ;;  %p468_p4 = scmp.lt.u32.totalorder %s464_s23, %s716_s5 }
 0x28a   :  { %p470_p5 = pnand %p468_p4, %p465_p3 }
 0x28c   :  { %473 = shalt.err (!%p470_p5)
}
 0x28d   :  { %257 = dma.vmem_to_hbm [thread:$0]  %s252_s18, 128, %s716_s5, [#allocation4], %s530_s1, %s530_s1, %s531_s24  }
 0x28e   :  { %232 = vrot.lane.b32.xlu1 %v305_v52, %s540_s19  ;;  %s541_s8 = smov [#allocation12]   ;;  %s542_s10 = smov [#allocation14]  }
 0x28f   :  { %s263_s9 = sshll.u32 %s541_s8, 4  ;;  %s275_s11 = sshll.u32 %s542_s10, 4  ;;  %s264_s9 = int_to_ptr.vmem [resolvable:$true] %s263_s9  ;;  %s276_s11 = int_to_ptr.vmem [resolvable:$true] %s275_s11 }
 0x290   :  { %s474_s12 = scalar_lea.vmem %s264_s9, 128  ;;  %p479_p7 = scmp.lt.s32.totalorder %s264_s9, %s264_s9 }
 0x291   :  { %p475_p6 = scmp.ne.s32.totalorder %s264_s9, %s474_s12  ;;  %p480_p8 = scmp.lt.s32.totalorder %s474_s12, %s474_s12 }
 0x292   :  { %240 = vrot.lane.b32.xlu1 %v305_v52, %s530_s1 }
 0x293   :  { %p481_p9 = por %p480_p8, %p479_p7 }
 0x295   :  { %p482_p10 = pnand %p481_p9, %p475_p6 }
 0x2f5   :  { %v239_v53 = vpop.permute.xlu1 %238  ;;  %v231_v54 = vpop.permute.xlu0 %230 }
 0x2f6   :  { %244 = vst.msk [vmem:[#allocation14] sm:$0xf] %vm227_vm6, %v239_v53  ;;  %236 = vst.msk [vmem:[#allocation12] sm:$0xf] %vm227_vm6, %v231_v54 }
 0x300   :  { %v233_v55 = vpop.permute.xlu1 %232 }
 0x301   :  { %237 = vst.msk [vmem:[#allocation12 + $0x4] sm:$0xf] %vm227_vm6, %v233_v55 }
 0x302   :  { %485 = shalt.err (!%p482_p10)
}
 0x303   :  { %s486_s14 = scalar_lea.hbm %s717_s6, 128 }
 0x304   :  { %p487_p11 = scmp.ne.s32.totalorder %s717_s6, %s486_s14  ;;  %p490_p12 = scmp.lt.u32.totalorder %s486_s14, %s717_s6 }
 0x306   :  { %p492_p13 = pnand %p490_p12, %p487_p11 }
 0x308   :  { %495 = shalt.err (!%p492_p13)
}
 0x309   :  { %269 = dma.vmem_to_hbm [thread:$0]  %s264_s9, 128, %s717_s6, [#allocation13], %s530_s1, %s530_s1, %s531_s24   ;;  %v241_v56 = vpop.permute.xlu1 %240 }
 0x30a   :  { %245 = vst.msk [vmem:[#allocation14 + $0x4] sm:$0xf] %vm227_vm6, %v241_v56  ;;  %s496_s4 = scalar_lea.vmem %s276_s11, 128  ;;  %p501_p1 = scmp.lt.s32.totalorder %s276_s11, %s276_s11 }
 0x30b   :  { %p497_p0 = scmp.ne.s32.totalorder %s276_s11, %s496_s4  ;;  %p502_p2 = scmp.lt.s32.totalorder %s496_s4, %s496_s4 }
 0x30d   :  { %p503_p3 = por %p502_p2, %p501_p1 }
 0x30f   :  { %p504_p4 = pnand %p503_p3, %p497_p0 }
 0x311   :  { %507 = shalt.err (!%p504_p4)
}
 0x312   :  { %s508_s20 = scalar_lea.hbm %s718_s7, 128 }
 0x313   :  { %p509_p5 = scmp.ne.s32.totalorder %s718_s7, %s508_s20  ;;  %p512_p6 = scmp.lt.u32.totalorder %s508_s20, %s718_s7 }
 0x315   :  { %p514_p7 = pnand %p512_p6, %p509_p5 }
 0x317   :  { %517 = shalt.err (!%p514_p7)
}
 0x318   :  { %281 = dma.vmem_to_hbm [thread:$0]  %s276_s11, 128, %s718_s7, [#allocation13], %s530_s1, %s530_s1, %s531_s24  }
 0x319   :  { %524 = dma.done.wait [#allocation4], 128  }
 0x31a   :  { %525 = vsyncadd [#allocation4], 4294967168 }
 0x31b   :  { %526 = dma.done.wait [#allocation13], 256  }
 0x31c   :  { %527 = vsyncadd [#allocation13], 4294967040 }
 0x31d   :  { %291 = vsyncpa [#allocation3], 1 }
 0x31e   :  { %292 = vsyncpa [#allocation6], 1 }
 0x31f   :  { %293 = vsyncpa [#allocation9], 1 }
 0x320   :  { %294 = vsyncpa [#allocation4], 1 }
 0x321   :  { %295 = vsyncpa [#allocation13], 1 }

// kernel: decoder.16
= control target key start
LH: loop header
LB: loop body
LE: loop exit
PB: predicated region body
PF: predicated region fallthrough
CT: control target
= control target key end

     0   :  { %10 = vsyncpa [#allocation3], 0  ;;  %s455_s0 = inlined_call_operand.hbm [shape: bf16[16,32], index: 0, kind: input, shape index: {}]   ;;  %s456_s1 = inlined_call_operand.hbm [shape: bf16[32,64], index: 1, kind: input, shape index: {}]   ;;  %s457_s2 = inlined_call_operand.hbm [shape: f32[1,64], index: 2, kind: input, shape index: {}]   ;;  %s458_s3 = inlined_call_operand.hbm [shape: bf16[16,32], index: 3, kind: output, shape index: {0}]   ;;  %s459_s4 = inlined_call_operand.hbm [shape: bf16[16,32], index: 4, kind: output, shape index: {1}]  }
   0x1   :  { %11 = vsyncpa [#allocation6], 0 }
   0x2   :  { %12 = vsyncpa [#allocation4], 0 }
   0x3   :  { %13 = vsyncpa [#allocation10], 0  ;;  %s337_s15 = smov [#allocation5]   ;;  %s338_s17 = smov [#allocation2]  }
   0x4   :  { %s31_s16 = sshll.u32 %s337_s15, 4  ;;  %s19_s18 = sshll.u32 %s338_s17, 4  ;;  %s32_s16 = int_to_ptr.vmem [resolvable:$true] %s31_s16  ;;  %s372_s18 = int_to_ptr.vmem [resolvable:$true] %s19_s18 }
   0x5   :  { %s219_s21 = scalar_lea.hbm %s456_s1, 256 }
   0x6   :  { %p220_p0 = scmp.ne.s32.totalorder %s456_s1, %s219_s21  ;;  %p223_p1 = scmp.lt.u32.totalorder %s219_s21, %s456_s1 }
   0x8   :  { %p225_p2 = pnand %p223_p1, %p220_p0 }
   0xa   :  { %228 = shalt.err (!%p225_p2)
}
   0xb   :  { %s229_s26 = scalar_lea.vmem %s32_s16, 256  ;;  %p234_p4 = scmp.lt.s32.totalorder %s32_s16, %s32_s16 }
   0xc   :  { %p230_p3 = scmp.ne.s32.totalorder %s32_s16, %s229_s26  ;;  %p235_p5 = scmp.lt.s32.totalorder %s229_s26, %s229_s26 }
   0xe   :  { %p236_p6 = por %p235_p5, %p234_p4 }
  0x10   :  { %p237_p7 = pnand %p236_p6, %p230_p3 }
  0x12   :  { %240 = shalt.err (!%p237_p7)
}
  0x13   :  { %s339_s27 = smov 64   ;;  %s340_s28 = smov 4  }
  0x14   :  { %37 = dma.hbm_to_vmem [thread:$0]  %s456_s1, 256, %s32_s16, [#allocation6], %s339_s27, %s339_s27, %s340_s28  }
  0x15   :  { %s241_s7 = scalar_lea.hbm %s455_s0, 128 }
  0x16   :  { %p242_p8 = scmp.ne.s32.totalorder %s455_s0, %s241_s7  ;;  %p245_p9 = scmp.lt.u32.totalorder %s241_s7, %s455_s0 }
  0x18   :  { %p247_p10 = pnand %p245_p9, %p242_p8 }
  0x1a   :  { %250 = shalt.err (!%p247_p10)
}
  0x1b   :  { %s251_s12 = scalar_lea.vmem %s372_s18, 128  ;;  %p256_p12 = scmp.lt.s32.totalorder %s372_s18, %s372_s18 }
  0x1c   :  { %p252_p11 = scmp.ne.s32.totalorder %s372_s18, %s251_s12  ;;  %p257_p13 = scmp.lt.s32.totalorder %s251_s12, %s251_s12 }
  0x1e   :  { %p258_p0 = por %p257_p13, %p256_p12 }
  0x20   :  { %p259_p1 = pnand %p258_p0, %p252_p11 }
  0x22   :  { %262 = shalt.err (!%p259_p1)
}
  0x23   :  { %25 = dma.hbm_to_vmem [thread:$0]  %s455_s0, 128, %s372_s18, [#allocation3], %s339_s27, %s339_s27, %s340_s28  }
  0x24   :  { %s341_s14 = smov [#allocation7]   ;;  %s263_s19 = scalar_lea.hbm %s457_s2, 16 }
  0x25   :  { %s44_s15 = sshll.u32 %s341_s14, 4  ;;  %p264_p2 = scmp.ne.s32.totalorder %s457_s2, %s263_s19  ;;  %s45_s15 = int_to_ptr.vmem [resolvable:$true] %s44_s15 }
  0x26   :  { %p267_p3 = scmp.lt.u32.totalorder %s263_s19, %s457_s2 }
  0x28   :  { %p269_p4 = pnand %p267_p3, %p264_p2 }
  0x2a   :  { %272 = shalt.err (!%p269_p4)
}
  0x2b   :  { %s273_s24 = scalar_lea.vmem %s45_s15, 16  ;;  %s277_s0 = scalar_lea.vmem %s45_s15, 32 }
  0x2c   :  { %p274_p5 = scmp.ne.s32.totalorder %s45_s15, %s273_s24  ;;  %p278_p6 = scmp.lt.s32.totalorder %s45_s15, %s45_s15 }
  0x2d   :  { %p279_p7 = scmp.lt.s32.totalorder %s277_s0, %s273_s24 }
  0x2f   :  { %p280_p8 = por %p279_p7, %p278_p6 }
  0x31   :  { %p281_p9 = pnand %p280_p8, %p274_p5 }
  0x33   :  { %284 = shalt.err (!%p281_p9)
}
  0x34   :  { %47 = dma.hbm_to_vmem [thread:$0]  %s457_s2, 16, %s45_s15, [#allocation6]  }
  0x35   :  { %329 = dma.done.wait [#allocation3], 128  }
  0x36   :  { %330 = vsyncadd [#allocation3], 4294967168 }
  0x37   :  { %331 = dma.done.wait [#allocation6], 272  }
  0x38   :  { %332 = vsyncadd [#allocation6], 4294967024  ;;  %v342_v0 = vmov 0.0   ;;  %vm343_vm0 = vmmov 0   ;;  %v216_v1 = vld [vmem:[#allocation5] sm:$0xff]   ;;  %v217_v2 = vld [vmem:[#allocation5 + $0x8] sm:$0xff]  }
  0x39   :  { %198 = vmatprep.subr.bf16.mxu0 %v342_v0  ;;  %202 = vmatprep.mubr.msk.bf16.mxu0 %vm343_vm0, %v342_v0  ;;  %v218_v3 = vld [vmem:[#allocation2] sm:$0xff]   ;;  %vm88_vm1 = vcmask 261120   ;;  %v186_v4 = vld [vmem:[#allocation7] ss:$0 sm:$0xff]  ;;  %vm141_vm2 = vcmask 257024   ;;  %s344_s2 = smov [#allocation8]  }
  0x3a   :  { %199 = vmatpush3.bf16.msra.mxu0 %v216_v1  ;;  %s157_s26 = sshll.u32 %s344_s2, 4  ;;  %s345_s29 = smov 96   ;;  %s158_s26 = int_to_ptr.vmem [resolvable:$true] %s157_s26 }
  0x3b   :  { %200 = vmatprep.subr.bf16.mxu0 %v342_v0  ;;  %s285_s30 = scalar_lea.vmem %s158_s26, 128  ;;  %p290_p11 = scmp.lt.s32.totalorder %s158_s26, %s158_s26 }
  0x3c   :  { %p286_p10 = scmp.ne.s32.totalorder %s158_s26, %s285_s30  ;;  %p291_p12 = scmp.lt.s32.totalorder %s285_s30, %s285_s30 }
  0x3e   :  { %201 = vmatpush3.bf16.msra.mxu0 %v217_v2  ;;  %p292_p13 = por %p291_p12, %p290_p11 }
  0x40   :  { %p293_p0 = pnand %p292_p13, %p286_p10 }
  0x41   :  { %203 = vmatmul.mubr.msk.bf16.vlgmr.msra.gmra.mrb[0].mxu0 %vm88_vm1, %v218_v3 }
 0x114   :  { %v126_v5 = vpop.f32.mrb[0].mxu0 }
 0x115   :  { %v127_v6 = vadd.f32 %v186_v4, %v126_v5  ;;  %v204_v7 = vpop.f32.mrb[1].mxu0 }
 0x116   :  { %v129_v8 = vpop.f32.mrb[2].mxu0 }
 0x117   :  { %v193_v9 = vpack.c.bf16 %v127_v6, %v127_v6  ;;  %v130_v10 = vadd.f32 %v186_v4, %v129_v8  ;;  %v205_v11 = vpop.f32.mrb[3].mxu0 }
 0x119   :  { %v194_v12 = vpack.c.bf16 %v130_v10, %v130_v10  ;;  %144 = vrot.lane.b32.xlu0 %v193_v9, %s345_s29  ;;  %142 = vst.msk [vmem:[#allocation8] sm:$0xf] %vm141_vm2, %v193_v9 }
 0x11b   :  { %143 = vst.msk [vmem:[#allocation8 + $0x4] sm:$0xf] %vm141_vm2, %v194_v12 }
 0x11c   :  { %296 = shalt.err (!%p293_p0)
}
 0x11d   :  { %s297_s7 = scalar_lea.hbm %s458_s3, 128 }
 0x11e   :  { %p298_p1 = scmp.ne.s32.totalorder %s458_s3, %s297_s7  ;;  %p301_p2 = scmp.lt.u32.totalorder %s297_s7, %s458_s3 }
 0x120   :  { %p303_p3 = pnand %p301_p2, %p298_p1 }
 0x122   :  { %306 = shalt.err (!%p303_p3)
}
 0x123   :  { %163 = dma.vmem_to_hbm [thread:$0]  %s158_s26, 128, %s458_s3, [#allocation4], %s339_s27, %s339_s27, %s340_s28  }
 0x124   :  { %146 = vrot.lane.b32.xlu0 %v194_v12, %s345_s29  ;;  %s346_s13 = smov [#allocation9]  }
 0x125   :  { %s169_s14 = sshll.u32 %s346_s13, 4  ;;  %s170_s14 = int_to_ptr.vmem [resolvable:$true] %s169_s14 }
 0x126   :  { %s307_s15 = scalar_lea.vmem %s170_s14, 128  ;;  %p312_p5 = scmp.lt.s32.totalorder %s170_s14, %s170_s14 }
 0x127   :  { %p308_p4 = scmp.ne.s32.totalorder %s170_s14, %s307_s15  ;;  %p313_p6 = scmp.lt.s32.totalorder %s307_s15, %s307_s15 }
 0x129   :  { %p314_p7 = por %p313_p6, %p312_p5 }
 0x12b   :  { %p315_p8 = pnand %p314_p7, %p308_p4 }
 0x18b   :  { %v145_v13 = vpop.permute.xlu0 %144 }
 0x18c   :  { %150 = vst.msk [vmem:[#allocation9] sm:$0xf] %vm141_vm2, %v145_v13 }
 0x196   :  { %v147_v14 = vpop.permute.xlu0 %146 }
 0x197   :  { %151 = vst.msk [vmem:[#allocation9 + $0x4] sm:$0xf] %vm141_vm2, %v147_v14 }
 0x198   :  { %318 = shalt.err (!%p315_p8)
}
 0x199   :  { %s319_s3 = scalar_lea.hbm %s459_s4, 128 }
 0x19a   :  { %p320_p9 = scmp.ne.s32.totalorder %s459_s4, %s319_s3  ;;  %p323_p10 = scmp.lt.u32.totalorder %s319_s3, %s459_s4 }
 0x19c   :  { %p325_p11 = pnand %p323_p10, %p320_p9 }
 0x19e   :  { %328 = shalt.err (!%p325_p11)
}
 0x19f   :  { %175 = dma.vmem_to_hbm [thread:$0]  %s170_s14, 128, %s459_s4, [#allocation10], %s339_s27, %s339_s27, %s340_s28  }
 0x1a0   :  { %333 = dma.done.wait [#allocation4], 128  }
 0x1a1   :  { %334 = vsyncadd [#allocation4], 4294967168 }
 0x1a2   :  { %335 = dma.done.wait [#allocation10], 128  }
 0x1a3   :  { %336 = vsyncadd [#allocation10], 4294967168 }
 0x1a4   :  { %182 = vsyncpa [#allocation3], 1 }
 0x1a5   :  { %183 = vsyncpa [#allocation6], 1 }
 0x1a6   :  { %184 = vsyncpa [#allocation4], 1 }
 0x1a7   :  { %185 = vsyncpa [#allocation10], 1 }

// kernel: decoder.14
= control target key start
LH: loop header
LB: loop body
LE: loop exit
PB: predicated region body
PF: predicated region fallthrough
CT: control target
= control target key end

     0   :  { %s2312_s0 = inlined_call_operand.hbm [shape: bf16[2,8,32], index: 0, kind: input, shape index: {}]   ;;  %s2313_s1 = inlined_call_operand.hbm [shape: bf16[2,8,32], index: 1, kind: input, shape index: {}]   ;;  %s2314_s2 = inlined_call_operand.hbm [shape: bf16[2,8,32], index: 2, kind: input, shape index: {}]   ;;  %s2315_s3 = inlined_call_operand.hbm [shape: f32[2,8,8], index: 3, kind: input, shape index: {}]   ;;  %s2316_s4 = inlined_call_operand.hbm [shape: f32[2,8,32], index: 4, kind: input, shape index: {}, may-alias: {4,7}]   ;;  %s2317_s5 = inlined_call_operand.hbm [shape: bf16[32,32], index: 5, kind: input, shape index: {}]   ;;  %s2318_s6 = inlined_call_operand.hbm [shape: f32[1,32], index: 6, kind: input, shape index: {}]   ;;  %s2319_s7 = inlined_call_operand.hbm [shape: f32[2,8,32], index: 7, kind: output, shape index: {}, may-alias: {4,7}]  }
   0x1   :  { %2343 = sst [smem:[#allocation27_spill]] %s2313_s1 }
   0x2   :  { %2344 = sst [smem:[#allocation28_spill]] %s2315_s3 }
   0x3   :  { %2345 = sst [smem:[#allocation29_spill]] %s2317_s5 }
   0x4   :  { %2346 = sst [smem:[#allocation30_spill]] %s2319_s7 }
   0x5   :  { %12 = vsyncpa [#allocation3], 0 }
   0x6   :  { %14 = vsyncpa [#allocation3 + $0x1], 0 }
   0x7   :  { %15 = vsyncpa [#allocation6], 0 }
   0x8   :  { %17 = vsyncpa [#allocation6 + $0x1], 0 }
   0x9   :  { %18 = vsyncpa [#allocation9], 0 }
   0xa   :  { %20 = vsyncpa [#allocation9 + $0x1], 0 }
   0xb   :  { %21 = vsyncpa [#allocation12], 0 }
   0xc   :  { %22 = vsyncpa [#allocation4], 0 }
   0xd   :  { %24 = vsyncpa [#allocation4 + $0x1], 0  ;;  %s1844_s24 = smov 0   ;;  %s1846_s25 = smov 0  }
   0xe   :  { %s1848_s26 = smov 0   ;;  %s1850_s27 = smov 0  }
   0xf   :  { %s1852_s28 = smov 0   ;;  %s1854_s29 = smov 0  }
  0x10 LB: > { %2347 = sst [smem:[#allocation20_spill]] %s1763_s24  ;;  %s1875_s30 = sadd.s32 4294967295, %s1783_s29   ;;  %s1783_s29 = sphi %s1854_s29, %s30_s29   ;;  %s1779_s28 = sphi %s1852_s28, %s2394_s28   ;;  %s1775_s27 = sphi %s1850_s27, %s2393_s27   ;;  %s1771_s26 = sphi %s1848_s26, %s2389_s26   ;;  %s1767_s25 = sphi %s1846_s25, %s2392_s25   ;;  %s1763_s24 = sphi %s1844_s24, %s2391_s24  }
  0x11   : > { %2348 = sst [smem:[#allocation21_spill]] %s1771_s26  ;;  %s1230_s8 = sadd.s32 4294967294, %s1783_s29  }
  0x12   : > { %2349 = sst [smem:[#allocation22_spill]] %s1783_s29  ;;  %p64_p0 = scmp.ne.s32.totalorder %s1767_s25, %s1763_s24 }
  0x13   : > { %p2320_p1 = scmp.eq.s32.totalorder %s1875_s30, 0  ;;  %p246_p3 = scmp.eq.s32.totalorder %s1230_s8, 1 }
  0x14   : > { %p1231_p5 = scmp.ge.s32.totalorder %s1783_s29, 1  ;;  %p253_p7 = scmp.lt.s32.totalorder %s1783_s29, 3 }
  0x15   : > { %p1884_p4 = por %p2320_p1, %p64_p0  ;;  %p1889_p6 = por %p246_p3, %p64_p0 }
  0x16   : > { %p1894_p8 = pnand %p1231_p5, %p253_p7  ;;  %s1785_s12 = smov [#allocation11]  }
  0x17   : > { %s2350_s9 = scalar_select %p1884_p4, 1, 0 }
  0x18   : > { %s2351_s10 = scalar_select %p1889_p6, 1, 0 }
  0x19   : > { %s2353_s11 = scalar_select %p1894_p8, 1, 0 }
  0x1a   : > { %2352 = sst [smem:[#allocation23_spill]] %s2351_s10  ;;  %s265_s13 = sshll.u32 %s1785_s12, 4  ;;  %s266_s13 = int_to_ptr.vmem [resolvable:$true] %s265_s13 }
  0x1b   : > { %p1368_p9 = pneg %p1894_p8  ;;  %s42_s15 = sadd.s32 1, %s1779_s28 }
  0x1c   : > { %s2355_s5 = sld [smem:[#allocation29_spill]] }
  0x1d   : > { %p1903_p11 = pnand %p1368_p9, %p2320_p1 }
  0x1f   : > { %s2354_s14 = scalar_select %p1903_p11, 1, 0 }
  0x20   : > { %p2328_p13 = pneg %p1903_p11 }
  0x22   : > { %s1483_s18 = scalar_lea.hbm %s2355_s5, 256 }
  0x23   : > { %p1484_p12 = scmp.ne.s32.totalorder %s2355_s5, %s1483_s18  ;;  %p1490_p5 = scmp.lt.u32.totalorder %s1483_s18, %s2355_s5 }
  0x25   : > { %p1486_p0 = pnand %p2328_p13, %p1484_p12 }
  0x27   : > { %p1487_p3 = pneg %p1486_p0 }
  0x29   : > { %p1492_p7 = pnand %p1490_p5, %p1487_p3 }
  0x2b   : > { %1495 = shalt.err (!%p1492_p7)
}
  0x2c   : > { %s1496_s23 = scalar_lea.vmem %s266_s13, 256  ;;  %p1504_p2 = scmp.lt.s32.totalorder %s266_s13, %s266_s13 }
  0x2d   : > { %p1497_p9 = scmp.ne.s32.totalorder %s266_s13, %s1496_s23  ;;  %p1505_p6 = scmp.lt.s32.totalorder %s1496_s23, %s1496_s23 }
  0x2f   : > { %p1499_p10 = pnand %p1497_p9, %p2328_p13  ;;  %p1506_p4 = por %p1505_p6, %p1504_p2 }
  0x31   : > { %p1500_p1 = pneg %p1499_p10 }
  0x33   : > { %p1507_p8 = pnand %p1506_p4, %p1500_p1 }
  0x35   : > { %1510 = shalt.err (!%p1507_p8)
}
  0x36   : > { %s1786_s8 = smov 64   ;;  %s1787_s12 = smov 4  }
  0x37   : > { %1371 = dma.hbm_to_vmem [thread:$0]  (!%p1903_p11), %s2355_s5, 256, %s266_s13, [#allocation12], %s1786_s8, %s1786_s8, %s1787_s12  }
  0x38   : > { %p44_p1 = scmp.ge.s32.totalorder %s42_s15, 2  ;;  %s51_s18 = sadd.s32 1, %s1771_s26 }
  0x39   : > { %p58_p2 = scmp.ne.s32.totalorder %s1771_s26, %s1767_s25  ;;  %p59_p4 = scmp.eq.s32.totalorder %s1783_s29, 0 }
  0x3a   : > { %s2396_s15 = smov (%p44_p1, %s42_s15), 0  ;;  %p2357_p8 = scmp.eq.s32.totalorder %s1875_s30, 1 }
  0x3b   : > { %2356 = sst [smem:[#allocation24_spill]] %s2396_s15  ;;  %p60_p6 = por %p59_p4, %p58_p2 }
  0x3c   : > { %p1938_p10 = por %p2357_p8, %p58_p2  ;;  %s46_s20 = ssub.s32 %s1779_s28, %s2396_s15 }
  0x3d   : > { %p1397_p12 = scmp.lt.s32.totalorder %s1783_s29, 2  ;;  %p49_p0 = scmp.eq.s32.totalorder %s46_s20, 0 }
  0x3e   : > { %s2358_s19 = scalar_select %p1938_p10, 1, 0 }
  0x3f   : > { %s1946_s21 = sand.u32 1, %s1771_s26   ;;  %s1952_s22 = sshll.u32 %s1779_s28, 6 }
  0x40   : > { %2359 = sst [smem:[#allocation25_spill]] %s2358_s19  ;;  %s1949_s13 = sshll.u32 %s1946_s21, 2 }
  0x41   : > { %s1955_s23 = scalar_select %p49_p0, %s1771_s26, %s51_s18  }
  0x42   : > { %p1957_p3 = pnand %p1397_p12, %p60_p6  ;;  %s2327_s12 = sand.u32 1, %s1783_s29  }
  0x43   : > { %2360 = sst [smem:[#allocation26_spill]] %s1955_s23  ;;  %s2362_s1 = sld [smem:[#allocation27_spill]] }
  0x44   : > { %s2361_s8 = scalar_select %p1957_p3, 1, 0 }
  0x45   : > { %s313_s5 = scalar_lea.vmem [#allocation5], %s1949_s13  ;;  %s1974_s23 = scalar_lea.sflag [#allocation6], %s2327_s12 }
  0x46   : > { %s320_s15 = sshll.u32 %s313_s5, 4  ;;  %p1980_p7 = pneg %p1957_p3  ;;  %s1969_s15 = int_to_ptr.vmem [resolvable:$true] %s320_s15 }
  0x48   : > { %s2363_s10 = scalar_select %p1980_p7, 1, 0 }
  0x49   : > { %s1966_s20 = scalar_lea.hbm %s2362_s1, %s1952_s22  ;;  %s1516_s5 = scalar_lea.hbm %s2362_s1, 128 }
  0x4a   : > { %s1511_s26 = scalar_lea.hbm %s1966_s20, 64  ;;  %p1517_p2 = scmp.lt.u32.totalorder %s1966_s20, %s2362_s1 }
  0x4b   : > { %p1512_p5 = scmp.ne.s32.totalorder %s1966_s20, %s1511_s26  ;;  %p1518_p4 = scmp.lt.u32.totalorder %s1516_s5, %s1511_s26 }
  0x4c   : > { %p1520_p8 = scmp.lt.u32.totalorder %s1511_s26, %s1966_s20 }
  0x4d   : > { %p1514_p9 = pnand %p1980_p7, %p1512_p5  ;;  %p1519_p6 = por %p1518_p4, %p1517_p2 }
  0x4f   : > { %p1515_p1 = pneg %p1514_p9  ;;  %p1521_p12 = por %p1520_p8, %p1519_p6 }
  0x51   : > { %p1522_p0 = pnand %p1521_p12, %p1515_p1 }
  0x53   : > { %1525 = shalt.err (!%p1522_p0)
}
  0x54   : > { %s1526_s12 = scalar_lea.vmem %s1969_s15, 64  ;;  %s1788_s16 = smov [#allocation5]  }
  0x55   : > { %p1527_p5 = scmp.ne.s32.totalorder %s1969_s15, %s1526_s12  ;;  %s1531_s17 = sshll.u32 %s1788_s16, 4  ;;  %s1532_s17 = int_to_ptr.vmem [resolvable:$false] %s1531_s17 }
  0x56   : > { %s1533_s24 = scalar_lea.vmem %s1532_s17, 128  ;;  %p1534_p10 = scmp.lt.s32.totalorder %s1969_s15, %s1532_s17 }
  0x57   : > { %p1529_p9 = pnand %p1527_p5, %p1980_p7  ;;  %p1535_p11 = scmp.lt.s32.totalorder %s1533_s24, %s1526_s12 }
  0x59   : > { %p1530_p13 = pneg %p1529_p9  ;;  %p1536_p2 = por %p1535_p11, %p1534_p10 }
  0x5b   : > { %p1537_p4 = pnand %p1536_p2, %p1530_p13 }
  0x5d   : > { %1540 = shalt.err (!%p1537_p4)
}
  0x5e   : > { %1381 = dma.hbm_to_vmem [thread:$0]  (!%p1957_p3), %s1966_s20, 64, %s1969_s15, %s1974_s23  }
  0x5f   : > { %s2335_s26 = sshll.u32 %s1779_s28, 7  ;;  %s2364_s3 = sld [smem:[#allocation28_spill]] }
  0x60   : > { %s2365_s16 = sshll.u32 %s1946_s21, 3  ;;  %s2366_s1 = sand.u32 1, %s1783_s29  }
  0x61   : > { %s349_s17 = scalar_lea.vmem [#allocation8], %s2365_s16  ;;  %s2016_s7 = scalar_lea.sflag [#allocation9], %s2366_s1 }
  0x62   : > { %s357_s24 = sshll.u32 %s349_s17, 4  ;;  %s358_s24 = int_to_ptr.vmem [resolvable:$true] %s357_s24 }
  0x65   : > { %s2010_s12 = scalar_lea.hbm %s2364_s3, %s2335_s26  ;;  %s1546_s18 = scalar_lea.hbm %s2364_s3, 256 }
  0x66   : > { %s1541_s19 = scalar_lea.hbm %s2010_s12, 128  ;;  %p1547_p1 = scmp.lt.u32.totalorder %s2010_s12, %s2364_s3 }
  0x67   : > { %p1542_p11 = scmp.ne.s32.totalorder %s2010_s12, %s1541_s19  ;;  %p1548_p6 = scmp.lt.u32.totalorder %s1546_s18, %s1541_s19 }
  0x68   : > { %p1550_p12 = scmp.lt.u32.totalorder %s1541_s19, %s2010_s12 }
  0x69   : > { %p1544_p13 = pnand %p1542_p11, %p1980_p7  ;;  %p1549_p8 = por %p1548_p6, %p1547_p1 }
  0x6b   : > { %p1545_p10 = pneg %p1544_p13  ;;  %p1551_p0 = por %p1550_p12, %p1549_p8 }
  0x6d   : > { %p1552_p5 = pnand %p1551_p0, %p1545_p10 }
  0x6f   : > { %1555 = shalt.err (!%p1552_p5)
}
  0x70   : > { %s1556_s1 = scalar_lea.vmem %s358_s24, 128  ;;  %s1789_s16 = smov [#allocation8]  }
  0x71   : > { %p1557_p9 = scmp.ne.s32.totalorder %s358_s24, %s1556_s1  ;;  %s1561_s17 = sshll.u32 %s1789_s16, 4  ;;  %s1562_s17 = int_to_ptr.vmem [resolvable:$false] %s1561_s17 }
  0x72   : > { %s1563_s15 = scalar_lea.vmem %s1562_s17, 256  ;;  %p1564_p11 = scmp.lt.s32.totalorder %s358_s24, %s1562_s17 }
  0x73   : > { %p1559_p2 = pnand %p1557_p9, %p1980_p7  ;;  %p1565_p13 = scmp.lt.s32.totalorder %s1563_s15, %s1556_s1 }
  0x75   : > { %p1560_p4 = pneg %p1559_p2  ;;  %p1566_p3 = por %p1565_p13, %p1564_p11 }
  0x77   : > { %p1567_p1 = pnand %p1566_p3, %p1560_p4 }
  0x79   : > { %1570 = shalt.err (!%p1567_p1)
}
  0x7a   : > { %p2367_p6 = scmp.ne.s32.totalorder %s2361_s8, 0  ;;  %s2368_s19 = sshll.u32 %s1779_s28, 7 }
  0x7b   : > { %s2041_s18 = scalar_lea.hbm %s2316_s4, %s2368_s19  ;;  %s1790_s5 = smov [#allocation13]  }
  0x7c   : > { %1387 = dma.hbm_to_vmem [thread:$0]  (!%p2367_p6), %s2010_s12, 128, %s358_s24, %s2016_s7  }
  0x7d   : > { %s279_s16 = sshll.u32 %s1790_s5, 4  ;;  %s1571_s15 = scalar_lea.hbm %s2318_s6, 16  ;;  %s280_s16 = int_to_ptr.vmem [resolvable:$true] %s279_s16 }
  0x7e   : > { %p1572_p3 = scmp.ne.s32.totalorder %s2318_s6, %s1571_s15  ;;  %p2369_p10 = scmp.ne.s32.totalorder %s2354_s14, 0 }
  0x7f   : > { %p1578_p5 = scmp.lt.u32.totalorder %s1571_s15, %s2318_s6 }
  0x80   : > { %p2370_p8 = pneg %p2369_p10 }
  0x82   : > { %p1574_p12 = pnand %p1572_p3, %p2370_p8 }
  0x84   : > { %p1575_p0 = pneg %p1574_p12 }
  0x86   : > { %p1580_p9 = pnand %p1578_p5, %p1575_p0 }
  0x88   : > { %1583 = shalt.err (!%p1580_p9)
}
  0x89   : > { %s1584_s19 = scalar_lea.vmem %s280_s16, 16  ;;  %p2371_p4 = pmov %p2370_p8 }
  0x8a   : > { %p1585_p2 = scmp.ne.s32.totalorder %s280_s16, %s1584_s19  ;;  %s1591_s26 = scalar_lea.vmem %s280_s16, 32 }
  0x8b   : > { %p1592_p1 = scmp.lt.s32.totalorder %s280_s16, %s280_s16  ;;  %p1593_p6 = scmp.lt.s32.totalorder %s1591_s26, %s1584_s19 }
  0x8c   : > { %p1587_p11 = pnand %p1585_p2, %p2371_p4 }
  0x8d   : > { %p1594_p7 = por %p1593_p6, %p1592_p1 }
  0x8e   : > { %p1588_p13 = pneg %p1587_p11 }
  0x90   : > { %p1595_p3 = pnand %p1594_p7, %p1588_p13 }
  0x92   : > { %1598 = shalt.err (!%p1595_p3)
}
  0x93   : > { %1374 = dma.hbm_to_vmem [thread:$0]  (!%p2369_p10), %s2318_s6, 16, %s280_s16, [#allocation12]  }
  0x94   : > { %s2067_s1 = scalar_lea.hbm %s2312_s0, %s1952_s22  ;;  %s294_s17 = scalar_lea.vmem [#allocation2], %s1949_s13 }
  0x95   : > { %s302_s15 = sshll.u32 %s294_s17, 4  ;;  %s291_s14 = scalar_lea.sflag [#allocation3], %s1946_s21  ;;  %s303_s15 = int_to_ptr.vmem [resolvable:$true] %s302_s15 }
  0x96   : > { %s1599_s12 = scalar_lea.hbm %s2067_s1, 64  ;;  %p2372_p6 = scmp.ne.s32.totalorder %s2363_s10, 0 }
  0x97   : > { %p1600_p7 = scmp.ne.s32.totalorder %s2067_s1, %s1599_s12  ;;  %s1604_s19 = scalar_lea.hbm %s2312_s0, 128 }
  0x98   : > { %p1605_p10 = scmp.lt.u32.totalorder %s2067_s1, %s2312_s0  ;;  %p1606_p0 = scmp.lt.u32.totalorder %s1604_s19, %s1599_s12 }
  0x99   : > { %p1602_p8 = pnand %p1600_p7, %p2372_p6  ;;  %p1608_p9 = scmp.lt.u32.totalorder %s1599_s12, %s2067_s1 }
  0x9a   : > { %p1607_p5 = por %p1606_p0, %p1605_p10 }
  0x9b   : > { %p1603_p12 = pneg %p1602_p8 }
  0x9c   : > { %p1609_p2 = por %p1608_p9, %p1607_p5 }
  0x9e   : > { %p1610_p4 = pnand %p1609_p2, %p1603_p12 }
  0xa0   : > { %1613 = shalt.err (!%p1610_p4)
}
  0xa1   : > { %s1614_s29 = scalar_lea.vmem %s303_s15, 64  ;;  %s1791_s20 = smov [#allocation2]  }
  0xa2   : > { %p1615_p11 = scmp.ne.s32.totalorder %s303_s15, %s1614_s29  ;;  %s1619_s5 = sshll.u32 %s1791_s20, 4  ;;  %s1620_s5 = int_to_ptr.vmem [resolvable:$false] %s1619_s5 }
  0xa3   : > { %s1621_s17 = scalar_lea.vmem %s1620_s5, 128  ;;  %p1622_p3 = scmp.lt.s32.totalorder %s303_s15, %s1620_s5 }
  0xa4   : > { %p1617_p13 = pnand %p1615_p11, %p2372_p6  ;;  %p1623_p7 = scmp.lt.s32.totalorder %s1621_s17, %s1614_s29 }
  0xa6   : > { %p1618_p1 = pneg %p1617_p13  ;;  %p1624_p8 = por %p1623_p7, %p1622_p3 }
  0xa8   : > { %p1625_p0 = pnand %p1624_p8, %p1618_p1 }
  0xaa   : > { %1628 = shalt.err (!%p1625_p0)
}
  0xab   : > { %p2373_p10 = scmp.ne.s32.totalorder %s2361_s8, 0  ;;  %s2092_s16 = scalar_lea.hbm %s2314_s2, %s1952_s22 }
  0xac   : > { %s331_s19 = scalar_lea.vmem [#allocation7], %s1949_s13  ;;  %s2374_s3 = sshll.u32 %s1946_s21, 3 }
  0xad   : > { %1378 = dma.hbm_to_vmem [thread:$0]  (!%p2373_p10), %s2067_s1, 64, %s303_s15, %s291_s14  }
  0xae   : > { %s338_s26 = sshll.u32 %s331_s19, 4  ;;  %s2099_s29 = scalar_lea.vmem [#allocation10], %s2374_s3  ;;  %s2095_s26 = int_to_ptr.vmem [resolvable:$true] %s338_s26 }
  0xaf   : > { %s376_s20 = sshll.u32 %s2099_s29, 4  ;;  %s1629_s5 = scalar_lea.hbm %s2092_s16, 64  ;;  %s377_s20 = int_to_ptr.vmem [resolvable:$true] %s376_s20 }
  0xb0   : > { %p1630_p12 = scmp.ne.s32.totalorder %s2092_s16, %s1629_s5  ;;  %s1634_s15 = scalar_lea.hbm %s2314_s2, 128 }
  0xb1   : > { %p1635_p2 = scmp.lt.u32.totalorder %s2092_s16, %s2314_s2  ;;  %p1636_p4 = scmp.lt.u32.totalorder %s1634_s15, %s1629_s5 }
  0xb2   : > { %p1632_p5 = pnand %p1630_p12, %p2372_p6  ;;  %p1638_p13 = scmp.lt.u32.totalorder %s1629_s5, %s2092_s16 }
  0xb3   : > { %p1637_p11 = por %p1636_p4, %p1635_p2 }
  0xb4   : > { %p1633_p9 = pneg %p1632_p5 }
  0xb5   : > { %p1639_p1 = por %p1638_p13, %p1637_p11 }
  0xb7   : > { %p1640_p3 = pnand %p1639_p1, %p1633_p9 }
  0xb9   : > { %1643 = shalt.err (!%p1640_p3)
}
  0xba   : > { %s1644_s21 = scalar_lea.vmem %s2095_s26, 64  ;;  %s1792_s13 = smov [#allocation7]  }
  0xbb   : > { %p1645_p7 = scmp.ne.s32.totalorder %s2095_s26, %s1644_s21  ;;  %s1649_s12 = sshll.u32 %s1792_s13, 4  ;;  %s1650_s12 = int_to_ptr.vmem [resolvable:$false] %s1649_s12 }
  0xbc   : > { %s1651_s24 = scalar_lea.vmem %s1650_s12, 128  ;;  %p1652_p12 = scmp.lt.s32.totalorder %s2095_s26, %s1650_s12 }
  0xbd   : > { %p1647_p8 = pnand %p1645_p7, %p2372_p6  ;;  %p1653_p5 = scmp.lt.s32.totalorder %s1651_s24, %s1644_s21 }
  0xbf   : > { %p1648_p0 = pneg %p1647_p8  ;;  %p1654_p2 = por %p1653_p5, %p1652_p12 }
  0xc1   : > { %p1655_p4 = pnand %p1654_p2, %p1648_p0 }
  0xc3   : > { %1658 = shalt.err (!%p1655_p4)
}
  0xc4   : > { %1384 = dma.hbm_to_vmem [thread:$0]  (!%p2373_p10), %s2092_s16, 64, %s2095_s26, %s1974_s23  }
  0xc5   : > { %s1659_s19 = scalar_lea.hbm %s2041_s18, 128  ;;  %s1664_s5 = scalar_lea.hbm %s2316_s4, 256 }
  0xc6   : > { %p1660_p9 = scmp.ne.s32.totalorder %s2041_s18, %s1659_s19  ;;  %p1665_p1 = scmp.lt.u32.totalorder %s2041_s18, %s2316_s4 }
  0xc7   : > { %p1666_p3 = scmp.lt.u32.totalorder %s1664_s5, %s1659_s19  ;;  %p1668_p8 = scmp.lt.u32.totalorder %s1659_s19, %s2041_s18 }
  0xc8   : > { %p1662_p11 = pnand %p1660_p9, %p2372_p6 }
  0xc9   : > { %p1667_p7 = por %p1666_p3, %p1665_p1 }
  0xca   : > { %p1663_p13 = pneg %p1662_p11 }
  0xcb   : > { %p1669_p0 = por %p1668_p8, %p1667_p7 }
  0xcd   : > { %p1670_p12 = pnand %p1669_p0, %p1663_p13 }
  0xcf   : > { %1673 = shalt.err (!%p1670_p12)
}
  0xd0   : > { %s1674_s23 = scalar_lea.vmem %s377_s20, 128  ;;  %s1793_s16 = smov [#allocation10]  }
  0xd1   : > { %p1675_p5 = scmp.ne.s32.totalorder %s377_s20, %s1674_s23  ;;  %s1679_s26 = sshll.u32 %s1793_s16, 4  ;;  %s1680_s26 = int_to_ptr.vmem [resolvable:$false] %s1679_s26 }
  0xd2   : > { %s1681_s15 = scalar_lea.vmem %s1680_s26, 256  ;;  %p1682_p9 = scmp.lt.s32.totalorder %s377_s20, %s1680_s26 }
  0xd3   : > { %p1677_p2 = pnand %p1675_p5, %p2372_p6  ;;  %p1683_p11 = scmp.lt.s32.totalorder %s1681_s15, %s1674_s23 }
  0xd5   : > { %p1678_p4 = pneg %p1677_p2  ;;  %p1684_p10 = por %p1683_p11, %p1682_p9 }
  0xd7   : > { %p1685_p1 = pnand %p1684_p10, %p1678_p4 }
  0xd9   : > { %1688 = shalt.err (!%p1685_p1)
}
  0xda   : > { %p2375_p3 = scmp.ne.s32.totalorder %s2361_s8, 0  ;;  %p2376_p13 = scmp.ne.s32.totalorder %s2353_s11, 0 }
  0xdb   : > { %s2145_s10 = sand.u32 (!%p2376_p13), 1, %s1767_s25   ;;  %p2377_p6 = scmp.ne.s32.totalorder (!%p2376_p13), %s2350_s9, 0 }
  0xdc   : > { %1390 = dma.hbm_to_vmem [thread:$0]  (!%p2375_p3), %s2041_s18, 128, %s377_s20, %s2016_s7  }
  0xdd   : > { %385 = sbr.rel (%p2376_p13) target bundleno = 1927 (0x787), region = 48  ;;  %s2148_s14 = sshll.u32 (!%p2376_p13), %s2145_s10, 2 }
  0xde   : > { %s388_s17 = scalar_lea.sflag (!%p2376_p13), [#allocation3], %s2145_s10  ;;  %s391_s21 = scalar_lea.vmem (!%p2376_p13), [#allocation2], %s2148_s14 }
  0xe4   : > { %1742 = dma.done.wait (%p2377_p6), %s388_s17, 64  }
  0xe5   : > { %1744 = vsyncadd (%p2377_p6), %s388_s17, 4294967232  ;;  %s396_s7 = sand.u32 1, %s1875_s30   ;;  %s400_s8 = scalar_lea.vmem [#allocation5], %s2148_s14 }
  0xe6   : > { %s397_s11 = scalar_lea.sflag [#allocation6], %s396_s7 }
  0xe7   : > { %1746 = dma.done.wait (%p2377_p6), %s397_s11, 128  }
  0xe8   : > { %1748 = vsyncadd (%p2377_p6), %s397_s11, 4294967168  ;;  %s2163_s18 = sshll.u32 %s2145_s10, 3  ;;  %s409_s20 = scalar_lea.vmem [#allocation7], %s2148_s14 }
  0xe9   : > { %s415_s13 = scalar_lea.sflag [#allocation9], %s396_s7  ;;  %s418_s12 = scalar_lea.vmem [#allocation8], %s2163_s18 }
  0xea   : > { %1750 = dma.done.wait (%p2377_p6), %s415_s13, 256  }
  0xeb   : > { %1752 = vsyncadd (%p2377_p6), %s415_s13, 4294967040  ;;  %s427_s24 = scalar_lea.vmem [#allocation10], %s2163_s18  ;;  %p2378_p10 = scmp.eq.s32.totalorder %s1875_s30, 0 }
  0xed   : > { %1754 = dma.done.wait (%p2378_p10), [#allocation12], 272   ;;  %p2379_p7 = pmov %p2378_p10 }
  0xee   : > { %v1794_v0 = vmov 0.0   ;;  %vm1795_vm0 = vmmov 0   ;;  %vm497_vm1 = vcmask 64512   ;;  %v488_v1 = vld [vmem:[%s400_s8] sm:$0xf]  ;;  %v490_v4 = vld [vmem:[%s418_s12] sm:$0xff] }
  0xef   : > { %1756 = vsyncadd (%p2379_p7), [#allocation12], 4294967024  ;;  %1292 = vmatprep.subr.bf16.mxu0 %v1794_v0  ;;  %1294 = vmatprep.mubr.msk.bf16.mxu0 %vm1795_vm0, %v1794_v0  ;;  %v502_v2 = vsel %vm497_vm1, %v488_v1, 0  ;;  %v487_v3 = vld [vmem:[%s391_s21] sm:$0xf]  ;;  %vm491_vm2 = vcmp.ne.f32.partialorder %v490_v4, 0.0  ;;  %v1257_v13 = vcombine.low %v488_v1, %v488_v1 }
  0xf0   : > { %1298 = vmatprep.subr.bf16.mxu1 %v1794_v0  ;;  %1300 = vmatprep.mubr.msk.bf16.mxu1 %vm1795_vm0, %v1794_v0  ;;  %v1796_v5 = vmov -1e+09   ;;  %s1797_s30 = smov 120   ;;  %v1256_v14 = vcombine.low %v487_v3, %v487_v3  ;;  %s1798_s9 = smov 112   ;;  %v2199_v20 = vld [vmem:[%s409_s20] sm:$0xf] }
  0xf1   : > { %1293 = vmatpush3.bf16.xpose.msra.mxu0 %v502_v2  ;;  %v2187_v6 = vsel %vm491_vm2, 0.0, %v1796_v5  ;;  %611 = vrot.lane.b32.xlu1 %v1257_v13, %s1797_s30  ;;  %s1799_s19 = smov 104   ;;  %vm559_vm3 = vcmask 1043456   ;;  %v1259_v4 = vcombine.low %v2199_v20, %v2199_v20  ;;  %s1800_s3 = smov 8   ;;  %vm955_vm4 = vcmask 130048  }
  0xf2   : > { %1310 = vmatprep.subr.bf16.mxu0 %v1794_v0  ;;  %v561_v21 = vsel %vm559_vm3, %v2199_v20, 0  ;;  %s1801_s29 = smov 16   ;;  %s1802_s5 = smov 24   ;;  %vm957_vm5 = vcmask 195584   ;;  %vm981_vm6 = vcmask 261120  }
  0xf3   : > { %1299 = vmatpush3.bf16.msra.mxu1 %v561_v21  ;;  %s2380_s22 = sld [smem:[#allocation25_spill]]  ;;  %s1270_s1 = sshll.u32 %s1775_s27, 7 }
  0xf4   : > { %1304 = vmatprep.subr.bf16.mxu1 %v1794_v0  ;;  %s485_s23 = scalar_lea.vmem [#allocation14], %s2163_s18  ;;  %s2381_s14 = sld [smem:[#allocation30_spill]] }
  0xf5   : > { %606 = vrot.lane.b32.xlu1 %v1256_v14, %s1797_s30  ;;  %s1042_s16 = sshll.u32 %s485_s23, 4  ;;  %s1028_s27 = scalar_lea.sflag [#allocation4], %s2145_s10  ;;  %s2264_s16 = int_to_ptr.vmem [resolvable:$true] %s1042_s16 }
  0xf6   : > { %s1689_s21 = scalar_lea.vmem %s2264_s16, 128  ;;  %s1803_s7 = smov [#allocation14]  }
  0xf7   : > { %p1690_p8 = scmp.ne.s32.totalorder %s2264_s16, %s1689_s21  ;;  %s1693_s11 = sshll.u32 %s1803_s7, 4  ;;  %s1694_s11 = int_to_ptr.vmem [resolvable:$false] %s1693_s11 }
  0xf8   : > { %1295 = vmatmul.mubr.msk.bf16.vlgmr.msra.gmra.mrb[0].mxu0 %vm497_vm1, %v487_v3  ;;  %s1695_s8 = scalar_lea.vmem %s1694_s11, 256  ;;  %p1696_p2 = scmp.lt.s32.totalorder %s2264_s16, %s1694_s11 }
  0xf9   : > { %1312 = vmatprep.mubr.msk.bf16.mxu0 %vm1795_vm0, %v1794_v0  ;;  %722 = vrot.lane.b32.xlu1 %v1256_v14, %s1798_s9  ;;  %p2382_p0 = scmp.ne.s32.totalorder %s2380_s22, 0  ;;  %p1697_p4 = scmp.lt.s32.totalorder %s1695_s8, %s1689_s21 }
  0xfa   : > { %s2262_s17 = scalar_lea.hbm %s2381_s14, %s1270_s1 }
  0xfb   : > { %p1691_p12 = pnand %p1690_p8, %p2382_p0  ;;  %p1698_p9 = por %p1697_p4, %p1696_p2 }
  0xfd   : > { %834 = vrot.lane.b32.xlu1 %v1257_v13, %s1799_s19  ;;  %p1692_p5 = pneg %p1691_p12 }
  0xff   : > { %p1699_p11 = pnand %p1698_p9, %p1692_p5 }
 0x101   : > { %832 = vrot.lane.b32.xlu1 %v1256_v14, %s1799_s19 }
 0x163   : > { %v612_v24 = vpop.permute.xlu1 %611 }
 0x164   : > { %v617_v26 = vsel %vm497_vm1, %v612_v24, 0 }
 0x167   : > { %v607_v28 = vpop.permute.xlu1 %606 }
 0x16b   : > { %v723_v30 = vpop.permute.xlu1 %722 }
 0x16f   : > { %v835_v32 = vpop.permute.xlu1 %834 }
 0x170   : > { %v840_v33 = vsel %vm497_vm1, %v835_v32, 0 }
 0x173   : > { %v833_v34 = vpop.permute.xlu1 %832 }
 0x1cb   : > { %v538_v7 = vpop.f32.mrb[0].mxu0 }
 0x1cc   : > { %v539_v8 = vadd.f32 %v538_v7, %v2187_v6  ;;  %v1296_v9 = vpop.f32.mrb[1].mxu0 }
 0x1cd   : > { %v541_v10 = vpop.f32.mrb[2].mxu0 }
 0x1ce   : > { %v1297_v11 = vpop.f32.mrb[3].mxu0  ;;  %v544_v12 = vsel %vm497_vm1, %v539_v8, -inf }
 0x1cf   : > { %545 = vmax.xlane.f32.xlu0 %v544_v12 }
 0x25c   : > { %v546_v15 = vpop.xlane.xlu0 %545 }
 0x25d   : > { %v547_v16 = vsub.f32 %v539_v8, %v546_v15 }
 0x25f   : > { %v548_v17 = vmul.f32 1.442695, %v547_v16 }
 0x261   : > { %1467 = vpow2.f32 %v548_v17 }
 0x26b   : > { %v1468_v18 = vpop.eup %1467 }
 0x26c   : > { %v550_v19 = vsel %vm497_vm1, %v1468_v18, 0.0 }
 0x26d   : > { %551 = vadd.xlane.f32.xlu0 %v550_v19 }
 0x283   : > { %724 = vrot.lane.b32.xlu0 %v1257_v13, %s1798_s9 }
 0x2fa   : > { %v552_v22 = vpop.xlane.xlu0 %551 }
 0x2fb   : > { %1469 = vrcp.f32 %v552_v22 }
 0x2fe   : > { %v725_v29 = vpop.permute.xlu0 %724 }
 0x2ff   : > { %v730_v31 = vsel %vm497_vm1, %v725_v29, 0  ;;  %v1466_v29 = vld [vmem:[#allocation11 + $0x8] sm:$0xff]  }
 0x305   : > { %v1470_v23 = vpop.eup %1469 }
 0x306   : > { %v554_v25 = vmul.f32 %v1470_v23, %v1468_v18 }
 0x308   : > { %v555_v27 = vpack.c.bf16 %v554_v25, %v554_v25 }
 0x30a   : > { %1301 = vmatmul.mubr.msk.bf16.vlgmr.msra.gmra.mrb[0].mxu1 %vm497_vm1, %v555_v27 }
 0x30b   : > { %1305 = vmatpush3.bf16.xpose.msra.mxu1 %v617_v26  ;;  %1306 = vmatprep.mubr.msk.bf16.mxu1 %vm1795_vm0, %v1794_v0 }
 0x30c   : > { %1316 = vmatprep.subr.bf16.mxu1 %v1794_v0 }
 0x312   : > { %1307 = vmatmul.mubr.msk.bf16.vlgmr.msra.gmra.mrb[4].mxu1 %vm497_vm1, %v607_v28  ;;  %v1465_v28 = vld [vmem:[#allocation11] sm:$0xff]  }
 0x313   : > { %1317 = vmatpush3.bf16.xpose.msra.mxu1 %v730_v31  ;;  %1318 = vmatprep.mubr.msk.bf16.mxu1 %vm1795_vm0, %v1794_v0 }
 0x314   : > { %1328 = vmatprep.subr.bf16.mxu1 %v1794_v0 }
 0x31a   : > { %1319 = vmatmul.mubr.msk.bf16.vlgmr.msra.gmra.mrb[8].mxu1 %vm497_vm1, %v723_v30 }
 0x31b   : > { %1329 = vmatpush3.bf16.xpose.msra.mxu1 %v840_v33  ;;  %1330 = vmatprep.mubr.msk.bf16.mxu1 %vm1795_vm0, %v1794_v0 }
 0x31c   : > { %1340 = vmatprep.subr.bf16.mxu1 %v1794_v0 }
 0x322   : > { %1331 = vmatmul.mubr.msk.bf16.vlgmr.msra.gmra.mrb[12].mxu1 %vm497_vm1, %v833_v34 }
 0x323   : > { %1344 = vmatprep.mubr.msk.bf16.mxu1 %vm1795_vm0, %v1794_v0  ;;  %1341 = vmatpush3.bf16.msra.mxu1 %v1465_v28 }
 0x324   : > { %1342 = vmatprep.subr.bf16.mxu1 %v1794_v0 }
 0x327   : > { %1343 = vmatpush3.bf16.msra.mxu1 %v1466_v29 }
 0x3dd   : > { %v2223_v35 = vpop.f32.mrb[0].mxu1 }
 0x3de   : > { %v1302_v36 = vpop.f32.mrb[1].mxu1 }
 0x3df   : > { %v600_v37 = vpop.f32.mrb[2].mxu1 }
 0x3e0   : > { %v1303_v38 = vpop.f32.mrb[3].mxu1 }
 0x3e5   : > { %v653_v39 = vpop.f32.mrb[4].mxu1 }
 0x3e6   : > { %v654_v40 = vadd.f32 %v653_v39, %v2187_v6  ;;  %v1308_v41 = vpop.f32.mrb[5].mxu1 }
 0x3e7   : > { %v656_v42 = vpop.f32.mrb[6].mxu1 }
 0x3e8   : > { %v1309_v43 = vpop.f32.mrb[7].mxu1  ;;  %v659_v44 = vsel %vm497_vm1, %v654_v40, -inf }
 0x3e9   : > { %660 = vmax.xlane.f32.xlu1 %v659_v44 }
 0x3ed   : > { %v766_v45 = vpop.f32.mrb[8].mxu1 }
 0x3ee   : > { %v767_v46 = vadd.f32 %v766_v45, %v2187_v6  ;;  %v1320_v47 = vpop.f32.mrb[9].mxu1 }
 0x3ef   : > { %v769_v48 = vpop.f32.mrb[10].mxu1 }
 0x3f0   : > { %v772_v49 = vsel %vm497_vm1, %v767_v46, -inf  ;;  %v1321_v50 = vpop.f32.mrb[11].mxu1 }
 0x3f1   : > { %773 = vmax.xlane.f32.xlu0 %v772_v49  ;;  %v960_v49 = vld [vmem:[%s427_s24] sm:$0xff] }
 0x3f2   : > { %v1265_v50 = vld [vmem:[#allocation13] ss:$0 sm:$0xff] }
 0x3f5   : > { %v876_v51 = vpop.f32.mrb[12].mxu1 }
 0x3f6   : > { %v877_v52 = vadd.f32 %v876_v51, %v2187_v6  ;;  %v1332_v53 = vpop.f32.mrb[13].mxu1  ;;  %v968_v51 = vadd.f32 %v1265_v50, %v960_v49 }
 0x3f7   : > { %v879_v54 = vpop.f32.mrb[14].mxu1 }
 0x3f8   : > { %v882_v55 = vsel %vm497_vm1, %v877_v52, -inf  ;;  %v1333_v56 = vpop.f32.mrb[15].mxu1 }
 0x3f9   : > { %883 = vmax.xlane.f32.xlu1 %v882_v55 }
 0x476   : > { %v661_v57 = vpop.xlane.xlu1 %660 }
 0x477   : > { %v662_v58 = vsub.f32 %v654_v40, %v661_v57 }
 0x479   : > { %v663_v59 = vmul.f32 1.442695, %v662_v58 }
 0x47b   : > { %1471 = vpow2.f32 %v663_v59 }
 0x47e   : > { %v774_v60 = vpop.xlane.xlu0 %773 }
 0x47f   : > { %v775_v61 = vsub.f32 %v767_v46, %v774_v60 }
 0x481   : > { %v776_v62 = vmul.f32 1.442695, %v775_v61 }
 0x483   : > { %1473 = vpow2.f32 %v776_v62 }
 0x485   : > { %v1472_v63 = vpop.eup %1471 }
 0x486   : > { %v665_v1 = vsel %vm497_vm1, %v1472_v63, 0.0  ;;  %v884_v5 = vpop.xlane.xlu1 %883 }
 0x487   : > { %666 = vadd.xlane.f32.xlu1 %v665_v1  ;;  %v885_v6 = vsub.f32 %v877_v52, %v884_v5 }
 0x489   : > { %v886_v7 = vmul.f32 1.442695, %v885_v6 }
 0x48b   : > { %1475 = vpow2.f32 %v886_v7 }
 0x48d   : > { %v1474_v2 = vpop.eup %1473 }
 0x48e   : > { %v778_v3 = vsel %vm497_vm1, %v1474_v2, 0.0 }
 0x48f   : > { %779 = vadd.xlane.f32.xlu0 %v778_v3 }
 0x495   : > { %v1476_v8 = vpop.eup %1475 }
 0x496   : > { %v888_v9 = vsel %vm497_vm1, %v1476_v8, 0.0 }
 0x498   : > { %784 = vrot.lane.b32.xlu1 %v1259_v4, %s1798_s9 }
 0x4a5   : > { %674 = vrot.lane.b32.xlu0 %v1259_v4, %s1797_s30 }
 0x4bc   : > { %889 = vadd.xlane.f32.xlu1 %v888_v9 }
 0x4cd   : > { %894 = vrot.lane.b32.xlu1 %v1259_v4, %s1799_s19 }
 0x514   : > { %v667_v10 = vpop.xlane.xlu1 %666 }
 0x515   : > { %1477 = vrcp.f32 %v667_v10 }
 0x518   : > { %v785_v16 = vpop.permute.xlu1 %784 }
 0x519   : > { %v790_v18 = vsel %vm559_vm3, %v785_v16, 0 }
 0x51c   : > { %v780_v11 = vpop.xlane.xlu0 %779 }
 0x51d   : > { %1479 = vrcp.f32 %v780_v11 }
 0x51f   : > { %v1478_v12 = vpop.eup %1477 }
 0x520   : > { %v669_v13 = vmul.f32 %v1478_v12, %v1472_v63  ;;  %v675_v14 = vpop.permute.xlu0 %674 }
 0x521   : > { %v680_v15 = vsel %vm559_vm3, %v675_v14, 0 }
 0x522   : > { %1311 = vmatpush3.bf16.msra.mxu0 %v680_v15  ;;  %v670_v17 = vpack.c.bf16 %v669_v13, %v669_v13 }
 0x523   : > { %1322 = vmatprep.subr.bf16.mxu0 %v1794_v0 }
 0x525   : > { %1313 = vmatmul.mubr.msk.bf16.vlgmr.msra.gmra.mrb[4].mxu0 %vm497_vm1, %v670_v17 }
 0x526   : > { %1323 = vmatpush3.bf16.msra.mxu0 %v790_v18  ;;  %1324 = vmatprep.mubr.msk.bf16.mxu0 %vm1795_vm0, %v1794_v0 }
 0x527   : > { %v1480_v19 = vpop.eup %1479  ;;  %1334 = vmatprep.subr.bf16.mxu0 %v1794_v0 }
 0x528   : > { %v782_v20 = vmul.f32 %v1480_v19, %v1474_v2 }
 0x52a   : > { %v783_v21 = vpack.c.bf16 %v782_v20, %v782_v20 }
 0x52d   : > { %1325 = vmatmul.mubr.msk.bf16.vlgmr.msra.gmra.mrb[8].mxu0 %vm497_vm1, %v783_v21 }
 0x52e   : > { %1336 = vmatprep.mubr.msk.bf16.mxu0 %vm1795_vm0, %v1794_v0 }
 0x549   : > { %v890_v22 = vpop.xlane.xlu1 %889 }
 0x54a   : > { %1481 = vrcp.f32 %v890_v22 }
 0x54d   : > { %v895_v23 = vpop.permute.xlu1 %894 }
 0x54e   : > { %v900_v24 = vsel %vm559_vm3, %v895_v23, 0 }
 0x54f   : > { %1335 = vmatpush3.bf16.msra.mxu0 %v900_v24 }
 0x554   : > { %v1482_v25 = vpop.eup %1481 }
 0x555   : > { %v892_v26 = vmul.f32 %v1482_v25, %v1476_v8 }
 0x557   : > { %v893_v27 = vpack.c.bf16 %v892_v26, %v892_v26 }
 0x559   : > { %1337 = vmatmul.mubr.msk.bf16.vlgmr.msra.gmra.mrb[12].mxu0 %vm497_vm1, %v893_v27 }
 0x5f8   : > { %v716_v30 = vpop.f32.mrb[4].mxu0 }
 0x5f9   : > { %943 = vrot.lane.b32.xlu0 %v716_v30, %s1800_s3  ;;  %v1314_v31 = vpop.f32.mrb[5].mxu0 }
 0x5fa   : > { %v719_v32 = vpop.f32.mrb[6].mxu0 }
 0x5fb   : > { %v1315_v33 = vpop.f32.mrb[7].mxu0 }
 0x600   : > { %v826_v34 = vpop.f32.mrb[8].mxu0 }
 0x601   : > { %947 = vrot.lane.b32.xlu1 %v826_v34, %s1801_s29  ;;  %v1326_v36 = vpop.f32.mrb[9].mxu0 }
 0x602   : > { %v829_v37 = vpop.f32.mrb[10].mxu0 }
 0x603   : > { %v1327_v38 = vpop.f32.mrb[11].mxu0 }
 0x62c   : > { %v936_v39 = vpop.f32.mrb[12].mxu0 }
 0x62d   : > { %951 = vrot.lane.b32.xlu0 %v936_v39, %s1802_s5  ;;  %v1338_v40 = vpop.f32.mrb[13].mxu0 }
 0x62e   : > { %v939_v41 = vpop.f32.mrb[14].mxu0 }
 0x62f   : > { %v1339_v0 = vpop.f32.mrb[15].mxu0 }
 0x66b   : > { %v944_v42 = vpop.permute.xlu0 %943 }
 0x66c   : > { %v954_v44 = vsel %vm497_vm1, %v2223_v35, %v944_v42 }
 0x673   : > { %v948_v43 = vpop.permute.xlu1 %947 }
 0x674   : > { %v956_v45 = vsel %vm955_vm4, %v954_v44, %v948_v43 }
 0x69f   : > { %v952_v46 = vpop.permute.xlu0 %951 }
 0x6a0   : > { %v958_v47 = vsel %vm957_vm5, %v956_v45, %v952_v46 }
 0x6a1   : > { %v959_v48 = vpack.c.bf16 %v958_v47, %v958_v47 }
 0x6a3   : > { %1345 = vmatmul.mubr.msk.bf16.vlgmr.msra.gmra.mrb[16].mxu1 %vm981_vm6, %v959_v48 }
 0x776   : > { %v1019_v52 = vpop.f32.mrb[16].mxu1 }
 0x777   : > { %v1025_v53 = vadd.f32 %v1019_v52, %v968_v51  ;;  %v1346_v54 = vpop.f32.mrb[17].mxu1 }
 0x778   : > { %v1022_v35 = vpop.f32.mrb[18].mxu1 }
 0x779   : > { %v1347_v55 = vpop.f32.mrb[19].mxu1  ;;  %1026 = vst.msk [vmem:[%s485_s23] sm:$0xff] %vm981_vm6, %v1025_v53 }
 0x77a   : > { %1702 = shalt.err (!%p1699_p11)
}
 0x77b   : > { %s1703_s10 = scalar_lea.hbm %s2262_s17, 128  ;;  %s1707_s13 = scalar_lea.hbm %s2381_s14, 256 }
 0x77c   : > { %p1704_p1 = scmp.ne.s32.totalorder %s2262_s17, %s1703_s10  ;;  %p1708_p6 = scmp.lt.u32.totalorder %s2262_s17, %s2381_s14 }
 0x77d   : > { %p1709_p10 = scmp.lt.u32.totalorder %s1707_s13, %s1703_s10  ;;  %p1711_p8 = scmp.lt.u32.totalorder %s1703_s10, %s2262_s17 }
 0x77e   : > { %p1705_p3 = pnand %p1704_p1, %p2382_p0 }
 0x77f   : > { %p1710_p7 = por %p1709_p10, %p1708_p6 }
 0x780   : > { %p1706_p13 = pneg %p1705_p3 }
 0x781   : > { %p1712_p12 = por %p1711_p8, %p1710_p7 }
 0x783   : > { %p1713_p5 = pnand %p1712_p12, %p1706_p13 }
 0x785   : > { %1716 = shalt.err (!%p1713_p5)
}
 0x786   : > { %1366 = dma.vmem_to_hbm [thread:$0]  (%p2382_p0), %s2264_s16, 128, %s2262_s17, %s1028_s27  }
 0x787 PF: > { %s2383_s30 = sld [smem:[#allocation20_spill]]  ;;  %s2384_s9 = sld [smem:[#allocation23_spill]] }
 0x788   : > { %s2385_s19 = sld [smem:[#allocation22_spill]] }
 0x78d   : > { %s1054_s3 = sand.u32 1, %s2383_s30   ;;  %p2386_p2 = scmp.ne.s32.totalorder %s2384_s9, 0 }
 0x78e   : > { %p2387_p4 = scmp.ge.s32.totalorder %s2385_s19, 2  ;;  %s1055_s29 = scalar_lea.sflag [#allocation4], %s1054_s3 }
 0x790   : > { %p1392_p9 = pnand %p2387_p4, %p2386_p2 }
 0x792   : > { %1758 = dma.done.wait (!%p1392_p9), %s1055_s29, 128  }
 0x793   : > { %1760 = vsyncadd (!%p1392_p9), %s1055_s29, 4294967168  ;;  %s30_s29 = sadd.s32 1, %s2385_s19   ;;  %s2388_s5 = sld [smem:[#allocation21_spill]] }
 0x794   : > { %p27_p11 = scmp.ge.s32.totalorder %s30_s29, 4   ;;  %s2389_s26 = sld [smem:[#allocation26_spill]] }
 0x795   : > { %s2390_s22 = sld [smem:[#allocation24_spill]]  ;;  %s2391_s24 = smov %s1767_s25 }
 0x796   : > { %s2393_s27 = smov %s1779_s28  ;;  %29 = sbr.rel (!%p27_p11) target bundleno = 16 (0x10), region = 149 }
 0x799   : > { %s2392_s25 = smov %s2388_s5 }
 0x79b   : > { %s2394_s28 = smov %s2390_s22 }
 0x79d   :  { %1060 = vsyncpa [#allocation3], 1 }
 0x79e   :  { %1062 = vsyncpa [#allocation3 + $0x1], 1 }
 0x79f   :  { %1063 = vsyncpa [#allocation6], 1 }
 0x7a0   :  { %1065 = vsyncpa [#allocation6 + $0x1], 1 }
 0x7a1   :  { %1066 = vsyncpa [#allocation9], 1 }
 0x7a2   :  { %1068 = vsyncpa [#allocation9 + $0x1], 1 }
 0x7a3   :  { %1069 = vsyncpa [#allocation12], 1 }
 0x7a4   :  { %1070 = vsyncpa [#allocation4], 1 }
 0x7a5   :  { %1072 = vsyncpa [#allocation4 + $0x1], 1 }

// kernel: decoder.25
= control target key start
LH: loop header
LB: loop body
LE: loop exit
PB: predicated region body
PF: predicated region fallthrough
CT: control target
= control target key end

     0   :  { %8 = vsyncpa [#allocation3], 0  ;;  %s338_s0 = inlined_call_operand.hbm [shape: f32[16,32], index: 0, kind: input, shape index: {}]   ;;  %s339_s1 = inlined_call_operand.hbm [shape: f32[1,32], index: 1, kind: input, shape index: {}]   ;;  %s340_s2 = inlined_call_operand.hbm [shape: f32[1,32], index: 2, kind: input, shape index: {}]   ;;  %s341_s3 = inlined_call_operand.hbm [shape: f32[16,32], index: 3, kind: output, shape index: {}]  }
   0x1   :  { %9 = vsyncpa [#allocation6], 0 }
   0x2   :  { %10 = vsyncpa [#allocation4], 0  ;;  %s245_s12 = smov [#allocation5]   ;;  %s246_s14 = smov [#allocation2]  }
   0x3   :  { %s29_s13 = sshll.u32 %s245_s12, 4  ;;  %s16_s15 = sshll.u32 %s246_s14, 4  ;;  %s30_s13 = int_to_ptr.vmem [resolvable:$true] %s29_s13  ;;  %s271_s15 = int_to_ptr.vmem [resolvable:$true] %s16_s15 }
   0x4   :  { %s151_s18 = scalar_lea.hbm %s339_s1, 16 }
   0x5   :  { %p152_p0 = scmp.ne.s32.totalorder %s339_s1, %s151_s18  ;;  %p155_p1 = scmp.lt.u32.totalorder %s151_s18, %s339_s1 }
   0x7   :  { %p157_p2 = pnand %p155_p1, %p152_p0 }
   0x9   :  { %160 = shalt.err (!%p157_p2)
}
   0xa   :  { %s161_s23 = scalar_lea.vmem %s30_s13, 16  ;;  %s165_s24 = scalar_lea.vmem %s30_s13, 32 }
   0xb   :  { %p162_p3 = scmp.ne.s32.totalorder %s30_s13, %s161_s23  ;;  %p166_p4 = scmp.lt.s32.totalorder %s30_s13, %s30_s13 }
   0xc   :  { %p167_p5 = scmp.lt.s32.totalorder %s165_s24, %s161_s23 }
   0xe   :  { %p168_p6 = por %p167_p5, %p166_p4 }
  0x10   :  { %p169_p7 = pnand %p168_p6, %p162_p3 }
  0x12   :  { %172 = shalt.err (!%p169_p7)
}
  0x13   :  { %32 = dma.hbm_to_vmem [thread:$0]  %s339_s1, 16, %s30_s13, [#allocation6]  }
  0x14   :  { %s173_s29 = scalar_lea.hbm %s338_s0, 256 }
  0x15   :  { %p174_p8 = scmp.ne.s32.totalorder %s338_s0, %s173_s29  ;;  %p177_p9 = scmp.lt.u32.totalorder %s173_s29, %s338_s0 }
  0x17   :  { %p179_p10 = pnand %p177_p9, %p174_p8 }
  0x19   :  { %182 = shalt.err (!%p179_p10)
}
  0x1a   :  { %s183_s7 = scalar_lea.vmem %s271_s15, 256  ;;  %p188_p12 = scmp.lt.s32.totalorder %s271_s15, %s271_s15 }
  0x1b   :  { %p184_p11 = scmp.ne.s32.totalorder %s271_s15, %s183_s7  ;;  %p189_p13 = scmp.lt.s32.totalorder %s183_s7, %s183_s7 }
  0x1d   :  { %p190_p0 = por %p189_p13, %p188_p12 }
  0x1f   :  { %p191_p1 = pnand %p190_p0, %p184_p11 }
  0x21   :  { %194 = shalt.err (!%p191_p1)
}
  0x22   :  { %s247_s1 = smov 128   ;;  %s248_s8 = smov 8  }
  0x23   :  { %22 = dma.hbm_to_vmem [thread:$0]  %s338_s0, 256, %s271_s15, [#allocation3], %s247_s1, %s247_s1, %s248_s8  }
  0x24   :  { %s249_s11 = smov [#allocation7]   ;;  %s195_s16 = scalar_lea.hbm %s340_s2, 16 }
  0x25   :  { %s39_s12 = sshll.u32 %s249_s11, 4  ;;  %p196_p2 = scmp.ne.s32.totalorder %s340_s2, %s195_s16  ;;  %s40_s12 = int_to_ptr.vmem [resolvable:$true] %s39_s12 }
  0x26   :  { %p199_p3 = scmp.lt.u32.totalorder %s195_s16, %s340_s2 }
  0x28   :  { %p201_p4 = pnand %p199_p3, %p196_p2 }
  0x2a   :  { %204 = shalt.err (!%p201_p4)
}
  0x2b   :  { %s205_s21 = scalar_lea.vmem %s40_s12, 16  ;;  %s209_s0 = scalar_lea.vmem %s40_s12, 32 }
  0x2c   :  { %p206_p5 = scmp.ne.s32.totalorder %s40_s12, %s205_s21  ;;  %p210_p6 = scmp.lt.s32.totalorder %s40_s12, %s40_s12 }
  0x2d   :  { %p211_p7 = scmp.lt.s32.totalorder %s209_s0, %s205_s21 }
  0x2f   :  { %p212_p8 = por %p211_p7, %p210_p6 }
  0x31   :  { %p213_p9 = pnand %p212_p8, %p206_p5 }
  0x33   :  { %216 = shalt.err (!%p213_p9)
}
  0x34   :  { %42 = dma.hbm_to_vmem [thread:$0]  %s340_s2, 16, %s40_s12, [#allocation6]  }
  0x35   :  { %239 = dma.done.wait [#allocation3], 256  }
  0x36   :  { %240 = vsyncadd [#allocation3], 4294967040 }
  0x37   :  { %241 = dma.done.wait [#allocation6], 32  }
  0x38   :  { %242 = vsyncadd [#allocation6], 4294967264  ;;  %vm54_vm0 = vcmask 261120   ;;  %v52_v0 = vld [vmem:[#allocation2] sm:$0xff]  ;;  %v53_v1 = vld [vmem:[#allocation2 + $0x8] sm:$0xff]  ;;  %s250_s2 = smov [#allocation8]  }
  0x39   :  { %v55_v2 = vsel %vm54_vm0, %v52_v0, 0.0  ;;  %v58_v3 = vsel %vm54_vm0, %v53_v1, 0.0  ;;  %v135_v30 = vld [vmem:[#allocation5] ss:$0 sm:$0xff]  ;;  %v136_v33 = vld [vmem:[#allocation7] ss:$0 sm:$0xff] }
  0x3a   :  { %56 = vadd.xlane.f32.xlu0 %v55_v2  ;;  %s122_s23 = sshll.u32 %s250_s2, 4  ;;  %s123_s23 = int_to_ptr.vmem [resolvable:$true] %s122_s23 }
  0x3b   :  { %s217_s24 = scalar_lea.vmem %s123_s23, 256  ;;  %p222_p11 = scmp.lt.s32.totalorder %s123_s23, %s123_s23 }
  0x3c   :  { %p218_p10 = scmp.ne.s32.totalorder %s123_s23, %s217_s24  ;;  %p223_p12 = scmp.lt.s32.totalorder %s217_s24, %s217_s24 }
  0x3e   :  { %59 = vadd.xlane.f32.xlu0 %v58_v3  ;;  %p224_p13 = por %p223_p12, %p222_p11 }
  0x40   :  { %p225_p0 = pnand %p224_p13, %p218_p10 }
  0xc7   :  { %v57_v4 = vpop.xlane.xlu0 %56 }
  0xc8   :  { %v62_v5 = vmul.f32 0.03125, %v57_v4 }
  0xca   :  { %v64_v6 = vsub.f32 %v52_v0, %v62_v5 }
  0xcb   :  { %v60_v7 = vpop.xlane.xlu0 %59 }
  0xcc   :  { %v63_v8 = vmul.f32 0.03125, %v60_v7  ;;  %v66_v9 = vmul.f32 %v64_v6, %v64_v6  ;;  %v98_v31 = vmul.f32 %v135_v30, %v64_v6 }
  0xce   :  { %v65_v10 = vsub.f32 %v53_v1, %v63_v8  ;;  %v68_v11 = vsel %vm54_vm0, %v66_v9, 0.0 }
  0xcf   :  { %69 = vadd.xlane.f32.xlu1 %v68_v11 }
  0xd0   :  { %v67_v12 = vmul.f32 %v65_v10, %v65_v10  ;;  %v99_v35 = vmul.f32 %v135_v30, %v65_v10 }
  0xd2   :  { %v71_v13 = vsel %vm54_vm0, %v67_v12, 0.0 }
  0xd3   :  { %72 = vadd.xlane.f32.xlu1 %v71_v13 }
 0x15c   :  { %v70_v14 = vpop.xlane.xlu1 %69 }
 0x15d   :  { %v75_v15 = vmul.f32 0.032258064, %v70_v14 }
 0x15f   :  { %143 = vrsqrt.f32 %v75_v15  ;;  %vm79_vm1 = vcmp.eq.f32.partialorder %v75_v15, inf  ;;  %v82_v20 = vand.u32 2147483648, %v75_v15  ;;  %vm81_vm2 = vcmp.eq.f32.partialorder %v75_v15, 0.0 }
 0x160   :  { %v73_v16 = vpop.xlane.xlu1 %72 }
 0x161   :  { %v76_v17 = vmul.f32 0.032258064, %v73_v16 }
 0x163   :  { %145 = vrsqrt.f32 %v76_v17  ;;  %vm86_vm3 = vcmp.eq.f32.partialorder %v76_v17, inf  ;;  %v89_v26 = vand.u32 2147483648, %v76_v17  ;;  %vm88_vm4 = vcmp.eq.f32.partialorder %v76_v17, 0.0 }
 0x169   :  { %v144_v18 = vpop.eup %143 }
 0x16a   :  { %v78_v19 = vmul.f32 %v144_v18, %v75_v15 }
 0x16c   :  { %v80_v21 = vsel %vm79_vm1, %v75_v15, %v78_v19 }
 0x16d   :  { %v146_v22 = vpop.eup %145  ;;  %v83_v23 = vsel %vm81_vm2, %v82_v20, %v80_v21 }
 0x16e   :  { %v100_v24 = vadd.f32 1e-06, %v83_v23  ;;  %v85_v25 = vmul.f32 %v146_v22, %v76_v17 }
 0x170   :  { %v87_v27 = vsel %vm86_vm3, %v76_v17, %v85_v25  ;;  %147 = vrcp.f32 %v100_v24 }
 0x171   :  { %v90_v28 = vsel %vm88_vm4, %v89_v26, %v87_v27 }
 0x172   :  { %v101_v29 = vadd.f32 1e-06, %v90_v28 }
 0x174   :  { %149 = vrcp.f32 %v101_v29 }
 0x17a   :  { %v148_v32 = vpop.eup %147 }
 0x17b   :  { %v103_v34 = vmul.f32 %v148_v32, %v98_v31 }
 0x17d   :  { %v113_v36 = vadd.f32 %v136_v33, %v103_v34 }
 0x17e   :  { %v150_v37 = vpop.eup %149 }
 0x17f   :  { %v105_v38 = vmul.f32 %v150_v37, %v99_v35  ;;  %115 = vst.msk [vmem:[#allocation8] sm:$0xff] %vm54_vm0, %v113_v36 }
 0x181   :  { %v114_v39 = vadd.f32 %v136_v33, %v105_v38 }
 0x183   :  { %116 = vst.msk [vmem:[#allocation8 + $0x8] sm:$0xff] %vm54_vm0, %v114_v39 }
 0x184   :  { %228 = shalt.err (!%p225_p0)
}
 0x185   :  { %s229_s27 = scalar_lea.hbm %s341_s3, 256 }
 0x186   :  { %p230_p1 = scmp.ne.s32.totalorder %s341_s3, %s229_s27  ;;  %p233_p2 = scmp.lt.u32.totalorder %s229_s27, %s341_s3 }
 0x188   :  { %p235_p3 = pnand %p233_p2, %p230_p1 }
 0x18a   :  { %238 = shalt.err (!%p235_p3)
}
 0x18b   :  { %128 = dma.vmem_to_hbm [thread:$0]  %s123_s23, 256, %s341_s3, [#allocation4], %s247_s1, %s247_s1, %s248_s8  }
 0x18c   :  { %243 = dma.done.wait [#allocation4], 256  }
 0x18d   :  { %244 = vsyncadd [#allocation4], 4294967040 }
 0x18e   :  { %132 = vsyncpa [#allocation3], 1 }
 0x18f   :  { %133 = vsyncpa [#allocation6], 1 }
 0x190   :  { %134 = vsyncpa [#allocation4], 1 }

// kernel: decoder.18
= control target key start
LH: loop header
LB: loop body
LE: loop exit
PB: predicated region body
PF: predicated region fallthrough
CT: control target
= control target key end

     0   :  { %12 = vsyncpa [#allocation3], 0  ;;  %s800_s0 = inlined_call_operand.hbm [shape: f32[16,32], index: 0, kind: input, shape index: {}, may-alias: {0,7}]   ;;  %s801_s1 = inlined_call_operand.hbm [shape: f32[1,32], index: 1, kind: input, shape index: {}]   ;;  %s802_s2 = inlined_call_operand.hbm [shape: f32[1,32], index: 2, kind: input, shape index: {}]   ;;  %s803_s3 = inlined_call_operand.hbm [shape: bf16[32,64], index: 3, kind: input, shape index: {}]   ;;  %s804_s4 = inlined_call_operand.hbm [shape: f32[1,64], index: 4, kind: input, shape index: {}]   ;;  %s805_s5 = inlined_call_operand.hbm [shape: bf16[64,32], index: 5, kind: input, shape index: {}]   ;;  %s806_s6 = inlined_call_operand.hbm [shape: f32[1,32], index: 6, kind: input, shape index: {}]   ;;  %s807_s7 = inlined_call_operand.hbm [shape: f32[16,32], index: 7, kind: output, shape index: {}, may-alias: {0,7}]  }
   0x1   :  { %13 = vsyncpa [#allocation6], 0 }
   0x2   :  { %14 = vsyncpa [#allocation9], 0 }
   0x3   :  { %15 = vsyncpa [#allocation12], 0 }
   0x4   :  { %16 = vsyncpa [#allocation4], 0  ;;  %s613_s24 = smov [#allocation5]   ;;  %s614_s26 = smov [#allocation8]  }
   0x5   :  { %s35_s25 = sshll.u32 %s613_s24, 4  ;;  %s54_s27 = sshll.u32 %s614_s26, 4  ;;  %s36_s25 = int_to_ptr.vmem [resolvable:$true] %s35_s25  ;;  %s667_s27 = int_to_ptr.vmem [resolvable:$true] %s54_s27 }
   0x6   :  { %s427_s30 = scalar_lea.hbm %s801_s1, 16 }
   0x7   :  { %p428_p0 = scmp.ne.s32.totalorder %s801_s1, %s427_s30  ;;  %p431_p1 = scmp.lt.u32.totalorder %s427_s30, %s801_s1 }
   0x9   :  { %p433_p2 = pnand %p431_p1, %p428_p0 }
   0xb   :  { %436 = shalt.err (!%p433_p2)
}
   0xc   :  { %s437_s12 = scalar_lea.vmem %s36_s25, 16  ;;  %s441_s13 = scalar_lea.vmem %s36_s25, 32 }
   0xd   :  { %p438_p3 = scmp.ne.s32.totalorder %s36_s25, %s437_s12  ;;  %p442_p4 = scmp.lt.s32.totalorder %s36_s25, %s36_s25 }
   0xe   :  { %p443_p5 = scmp.lt.s32.totalorder %s441_s13, %s437_s12 }
  0x10   :  { %p444_p6 = por %p443_p5, %p442_p4 }
  0x12   :  { %p445_p7 = pnand %p444_p6, %p438_p3 }
  0x14   :  { %448 = shalt.err (!%p445_p7)
}
  0x15   :  { %38 = dma.hbm_to_vmem [thread:$0]  %s801_s1, 16, %s36_s25, [#allocation6]  }
  0x16   :  { %s449_s18 = scalar_lea.hbm %s803_s3, 256 }
  0x17   :  { %p450_p8 = scmp.ne.s32.totalorder %s803_s3, %s449_s18  ;;  %p453_p9 = scmp.lt.u32.totalorder %s449_s18, %s803_s3 }
  0x19   :  { %p455_p10 = pnand %p453_p9, %p450_p8 }
  0x1b   :  { %458 = shalt.err (!%p455_p10)
}
  0x1c   :  { %s459_s23 = scalar_lea.vmem %s667_s27, 256  ;;  %p464_p12 = scmp.lt.s32.totalorder %s667_s27, %s667_s27 }
  0x1d   :  { %p460_p11 = scmp.ne.s32.totalorder %s667_s27, %s459_s23  ;;  %p465_p13 = scmp.lt.s32.totalorder %s459_s23, %s459_s23 }
  0x1f   :  { %p466_p0 = por %p465_p13, %p464_p12 }
  0x21   :  { %p467_p1 = pnand %p466_p0, %p460_p11 }
  0x23   :  { %470 = shalt.err (!%p467_p1)
}
  0x24   :  { %s615_s1 = smov 64   ;;  %s616_s24 = smov 4  }
  0x25   :  { %60 = dma.hbm_to_vmem [thread:$0]  %s803_s3, 256, %s667_s27, [#allocation9], %s615_s1, %s615_s1, %s616_s24  }
  0x26   :  { %s617_s28 = smov [#allocation11]   ;;  %s618_s30 = smov [#allocation2]  }
  0x27   :  { %s76_s29 = sshll.u32 %s617_s28, 4  ;;  %s22_s8 = sshll.u32 %s618_s30, 4  ;;  %s77_s29 = int_to_ptr.vmem [resolvable:$true] %s76_s29  ;;  %s698_s8 = int_to_ptr.vmem [resolvable:$true] %s22_s8 }
  0x28   :  { %s471_s11 = scalar_lea.hbm %s805_s5, 512 }
  0x29   :  { %p472_p2 = scmp.ne.s32.totalorder %s805_s5, %s471_s11  ;;  %p475_p3 = scmp.lt.u32.totalorder %s471_s11, %s805_s5 }
  0x2b   :  { %p477_p4 = pnand %p475_p3, %p472_p2 }
  0x2d   :  { %480 = shalt.err (!%p477_p4)
}
  0x2e   :  { %s481_s3 = scalar_lea.vmem %s77_s29, 512  ;;  %p486_p6 = scmp.lt.s32.totalorder %s77_s29, %s77_s29 }
  0x2f   :  { %p482_p5 = scmp.ne.s32.totalorder %s77_s29, %s481_s3  ;;  %p487_p7 = scmp.lt.s32.totalorder %s481_s3, %s481_s3 }
  0x31   :  { %p488_p8 = por %p487_p7, %p486_p6 }
  0x33   :  { %p489_p9 = pnand %p488_p8, %p482_p5 }
  0x35   :  { %492 = shalt.err (!%p489_p9)
}
  0x36   :  { %82 = dma.hbm_to_vmem [thread:$0]  %s805_s5, 512, %s77_s29, [#allocation12], %s615_s1, %s615_s1, %s616_s24  }
  0x37   :  { %s493_s19 = scalar_lea.hbm %s800_s0, 256 }
  0x38   :  { %p494_p10 = scmp.ne.s32.totalorder %s800_s0, %s493_s19  ;;  %p497_p11 = scmp.lt.u32.totalorder %s493_s19, %s800_s0 }
  0x3a   :  { %p499_p12 = pnand %p497_p11, %p494_p10 }
  0x3c   :  { %502 = shalt.err (!%p499_p12)
}
  0x3d   :  { %s503_s25 = scalar_lea.vmem %s698_s8, 256  ;;  %p508_p0 = scmp.lt.s32.totalorder %s698_s8, %s698_s8 }
  0x3e   :  { %p504_p13 = scmp.ne.s32.totalorder %s698_s8, %s503_s25  ;;  %p509_p1 = scmp.lt.s32.totalorder %s503_s25, %s503_s25 }
  0x40   :  { %p510_p2 = por %p509_p1, %p508_p0 }
  0x42   :  { %p511_p3 = pnand %p510_p2, %p504_p13 }
  0x44   :  { %514 = shalt.err (!%p511_p3)
}
  0x45   :  { %s619_s5 = smov 128   ;;  %s620_s1 = smov 8  }
  0x46   :  { %28 = dma.hbm_to_vmem [thread:$0]  %s800_s0, 256, %s698_s8, [#allocation3], %s619_s5, %s619_s5, %s620_s1  }
  0x47   :  { %s621_s28 = smov [#allocation7]   ;;  %s622_s30 = smov [#allocation10]  }
  0x48   :  { %s45_s29 = sshll.u32 %s621_s28, 4  ;;  %s67_s9 = sshll.u32 %s622_s30, 4  ;;  %s46_s29 = int_to_ptr.vmem [resolvable:$true] %s45_s29  ;;  %s68_s9 = int_to_ptr.vmem [resolvable:$true] %s67_s9 }
  0x49   :  { %s515_s12 = scalar_lea.hbm %s802_s2, 16 }
  0x4a   :  { %p516_p4 = scmp.ne.s32.totalorder %s802_s2, %s515_s12  ;;  %p519_p5 = scmp.lt.u32.totalorder %s515_s12, %s802_s2 }
  0x4c   :  { %p521_p6 = pnand %p519_p5, %p516_p4 }
  0x4e   :  { %524 = shalt.err (!%p521_p6)
}
  0x4f   :  { %s525_s0 = scalar_lea.vmem %s46_s29, 16  ;;  %s529_s8 = scalar_lea.vmem %s46_s29, 32 }
  0x50   :  { %p526_p7 = scmp.ne.s32.totalorder %s46_s29, %s525_s0  ;;  %p530_p8 = scmp.lt.s32.totalorder %s46_s29, %s46_s29 }
  0x51   :  { %p531_p9 = scmp.lt.s32.totalorder %s529_s8, %s525_s0 }
  0x53   :  { %p532_p10 = por %p531_p9, %p530_p8 }
  0x55   :  { %p533_p11 = pnand %p532_p10, %p526_p7 }
  0x57   :  { %536 = shalt.err (!%p533_p11)
}
  0x58   :  { %48 = dma.hbm_to_vmem [thread:$0]  %s802_s2, 16, %s46_s29, [#allocation6]  }
  0x59   :  { %s537_s19 = scalar_lea.hbm %s804_s4, 16 }
  0x5a   :  { %p538_p12 = scmp.ne.s32.totalorder %s804_s4, %s537_s19  ;;  %p541_p13 = scmp.lt.u32.totalorder %s537_s19, %s804_s4 }
  0x5c   :  { %p543_p0 = pnand %p541_p13, %p538_p12 }
  0x5e   :  { %546 = shalt.err (!%p543_p0)
}
  0x5f   :  { %s547_s25 = scalar_lea.vmem %s68_s9, 16  ;;  %s551_s24 = scalar_lea.vmem %s68_s9, 32 }
  0x60   :  { %p548_p1 = scmp.ne.s32.totalorder %s68_s9, %s547_s25  ;;  %p552_p2 = scmp.lt.s32.totalorder %s68_s9, %s68_s9 }
  0x61   :  { %p553_p3 = scmp.lt.s32.totalorder %s551_s24, %s547_s25 }
  0x63   :  { %p554_p4 = por %p553_p3, %p552_p2 }
  0x65   :  { %p555_p5 = pnand %p554_p4, %p548_p1 }
  0x67   :  { %558 = shalt.err (!%p555_p5)
}
  0x68   :  { %70 = dma.hbm_to_vmem [thread:$0]  %s804_s4, 16, %s68_s9, [#allocation9]  }
  0x69   :  { %s623_s28 = smov [#allocation13]   ;;  %s559_s11 = scalar_lea.hbm %s806_s6, 16 }
  0x6a   :  { %s89_s29 = sshll.u32 %s623_s28, 4  ;;  %p560_p6 = scmp.ne.s32.totalorder %s806_s6, %s559_s11  ;;  %s90_s29 = int_to_ptr.vmem [resolvable:$true] %s89_s29 }
  0x6b   :  { %p563_p7 = scmp.lt.u32.totalorder %s559_s11, %s806_s6 }
  0x6d   :  { %p565_p8 = pnand %p563_p7, %p560_p6 }
  0x6f   :  { %568 = shalt.err (!%p565_p8)
}
  0x70   :  { %s569_s3 = scalar_lea.vmem %s90_s29, 16  ;;  %s573_s4 = scalar_lea.vmem %s90_s29, 32 }
  0x71   :  { %p570_p9 = scmp.ne.s32.totalorder %s90_s29, %s569_s3  ;;  %p574_p10 = scmp.lt.s32.totalorder %s90_s29, %s90_s29 }
  0x72   :  { %p575_p11 = scmp.lt.s32.totalorder %s573_s4, %s569_s3 }
  0x74   :  { %p576_p12 = por %p575_p11, %p574_p10 }
  0x76   :  { %p577_p13 = pnand %p576_p12, %p570_p9 }
  0x78   :  { %580 = shalt.err (!%p577_p13)
}
  0x79   :  { %92 = dma.hbm_to_vmem [thread:$0]  %s806_s6, 16, %s90_s29, [#allocation12]  }
  0x7a   :  { %603 = dma.done.wait [#allocation3], 256  }
  0x7b   :  { %604 = vsyncadd [#allocation3], 4294967040 }
  0x7c   :  { %605 = dma.done.wait [#allocation6], 32  }
  0x7d   :  { %606 = vsyncadd [#allocation6], 4294967264 }
  0x7e   :  { %607 = dma.done.wait [#allocation9], 272  }
  0x7f   :  { %608 = vsyncadd [#allocation9], 4294967024 }
  0x80   :  { %609 = dma.done.wait [#allocation12], 528  }
  0x81   :  { %610 = vsyncadd [#allocation12], 4294966768  ;;  %vm117_vm0 = vcmask 261120   ;;  %v768_v0 = vld [vmem:[#allocation2] sm:$0xff]  ;;  %v770_v1 = vld [vmem:[#allocation2 + $0x8] sm:$0xff]  ;;  %v624_v15 = vmov 0.0  }
  0x82   :  { %v118_v2 = vsel %vm117_vm0, %v768_v0, 0.0  ;;  %v121_v3 = vsel %vm117_vm0, %v770_v1, 0.0  ;;  %v413_v14 = vld [vmem:[#allocation8] sm:$0xff]   ;;  %379 = vmatprep.subr.bf16.mxu0 %v624_v15  ;;  %vm625_vm1 = vmmov 0   ;;  %v414_v16 = vld [vmem:[#allocation8 + $0x8] sm:$0xff]   ;;  %387 = vmatprep.subr.bf16.mxu1 %v624_v15  ;;  %v415_v17 = vld [vmem:[#allocation11] sm:$0xff]  }
  0x83   :  { %119 = vadd.xlane.f32.xlu0 %v118_v2  ;;  %383 = vmatprep.mubr.msk.bf16.mxu0 %vm625_vm1, %v624_v15  ;;  %v416_v18 = vld [vmem:[#allocation11 + $0x8] sm:$0xff]   ;;  %v417_v46 = vld [vmem:[#allocation11 + $0x10] sm:$0xff]   ;;  %v418_v47 = vld [vmem:[#allocation11 + $0x18] sm:$0xff]   ;;  %vm281_vm6 = vcmask 523264   ;;  %s626_s6 = smov [#allocation14]  }
  0x84   :  { %380 = vmatpush3.bf16.msra.mxu0 %v413_v14  ;;  %395 = vmatprep.mubr.msk.bf16.mxu1 %vm625_vm1, %v624_v15  ;;  %v359_v35 = vld [vmem:[#allocation5] ss:$0 sm:$0xff]  ;;  %v360_v41 = vld [vmem:[#allocation7] ss:$0 sm:$0xff]  ;;  %v361_v48 = vld [vmem:[#allocation10] ss:$0 sm:$0xff] }
  0x85   :  { %381 = vmatprep.subr.bf16.mxu0 %v624_v15  ;;  %388 = vmatpush3.bf16.msra.mxu1 %v415_v17  ;;  %v370_v59 = vld [vmem:[#allocation13] ss:$0 sm:$0xff]  ;;  %s344_s8 = sshll.u32 %s626_s6, 4  ;;  %s345_s8 = int_to_ptr.vmem [resolvable:$true] %s344_s8 }
  0x86   :  { %389 = vmatprep.subr.bf16.mxu1 %v624_v15  ;;  %s581_s27 = scalar_lea.vmem %s345_s8, 256  ;;  %p586_p1 = scmp.lt.s32.totalorder %s345_s8, %s345_s8 }
  0x87   :  { %122 = vadd.xlane.f32.xlu0 %v121_v3  ;;  %p582_p0 = scmp.ne.s32.totalorder %s345_s8, %s581_s27  ;;  %p587_p2 = scmp.lt.s32.totalorder %s581_s27, %s581_s27 }
  0x88   :  { %382 = vmatpush3.bf16.msra.mxu0 %v414_v16 }
  0x89   :  { %390 = vmatpush3.bf16.msra.mxu1 %v416_v18  ;;  %p588_p3 = por %p587_p2, %p586_p1 }
  0x8a   :  { %391 = vmatprep.subr.bf16.mxu1 %v624_v15 }
  0x8b   :  { %p589_p4 = pnand %p588_p3, %p582_p0 }
  0x8d   :  { %392 = vmatpush3.bf16.msra.mxu1 %v417_v46 }
  0x8e   :  { %393 = vmatprep.subr.bf16.mxu1 %v624_v15 }
  0x91   :  { %394 = vmatpush3.bf16.msra.mxu1 %v418_v47 }
 0x110   :  { %v120_v4 = vpop.xlane.xlu0 %119 }
 0x111   :  { %v125_v5 = vmul.f32 0.03125, %v120_v4 }
 0x113   :  { %v127_v6 = vsub.f32 %v768_v0, %v125_v5 }
 0x114   :  { %v123_v7 = vpop.xlane.xlu0 %122 }
 0x115   :  { %v126_v8 = vmul.f32 0.03125, %v123_v7  ;;  %v129_v9 = vmul.f32 %v127_v6, %v127_v6  ;;  %v161_v37 = vmul.f32 %v359_v35, %v127_v6 }
 0x117   :  { %v128_v10 = vsub.f32 %v770_v1, %v126_v8  ;;  %v131_v11 = vsel %vm117_vm0, %v129_v9, 0.0 }
 0x118   :  { %132 = vadd.xlane.f32.xlu1 %v131_v11 }
 0x119   :  { %v130_v12 = vmul.f32 %v128_v10, %v128_v10  ;;  %v162_v38 = vmul.f32 %v359_v35, %v128_v10 }
 0x11b   :  { %v134_v13 = vsel %vm117_vm0, %v130_v12, 0.0 }
 0x11c   :  { %135 = vadd.xlane.f32.xlu1 %v134_v13 }
 0x1a5   :  { %v133_v19 = vpop.xlane.xlu1 %132 }
 0x1a6   :  { %v138_v20 = vmul.f32 0.032258064, %v133_v19 }
 0x1a8   :  { %419 = vrsqrt.f32 %v138_v20  ;;  %vm142_vm2 = vcmp.eq.f32.partialorder %v138_v20, inf  ;;  %v145_v25 = vand.u32 2147483648, %v138_v20  ;;  %vm144_vm3 = vcmp.eq.f32.partialorder %v138_v20, 0.0 }
 0x1a9   :  { %v136_v21 = vpop.xlane.xlu1 %135 }
 0x1aa   :  { %v139_v22 = vmul.f32 0.032258064, %v136_v21 }
 0x1ac   :  { %421 = vrsqrt.f32 %v139_v22  ;;  %vm149_vm4 = vcmp.eq.f32.partialorder %v139_v22, inf  ;;  %v152_v31 = vand.u32 2147483648, %v139_v22  ;;  %vm151_vm5 = vcmp.eq.f32.partialorder %v139_v22, 0.0 }
 0x1b2   :  { %v420_v23 = vpop.eup %419 }
 0x1b3   :  { %v141_v24 = vmul.f32 %v420_v23, %v138_v20 }
 0x1b5   :  { %v143_v26 = vsel %vm142_vm2, %v138_v20, %v141_v24 }
 0x1b6   :  { %v422_v27 = vpop.eup %421  ;;  %v146_v28 = vsel %vm144_vm3, %v145_v25, %v143_v26 }
 0x1b7   :  { %v163_v29 = vadd.f32 1e-06, %v146_v28  ;;  %v148_v30 = vmul.f32 %v422_v27, %v139_v22 }
 0x1b9   :  { %423 = vrcp.f32 %v163_v29  ;;  %v150_v32 = vsel %vm149_vm4, %v139_v22, %v148_v30 }
 0x1ba   :  { %v153_v33 = vsel %vm151_vm5, %v152_v31, %v150_v32 }
 0x1bb   :  { %v164_v34 = vadd.f32 1e-06, %v153_v33 }
 0x1bd   :  { %425 = vrcp.f32 %v164_v34 }
 0x1c3   :  { %v424_v36 = vpop.eup %423 }
 0x1c4   :  { %v166_v39 = vmul.f32 %v424_v36, %v161_v37 }
 0x1c6   :  { %v176_v43 = vadd.f32 %v360_v41, %v166_v39 }
 0x1c7   :  { %v426_v40 = vpop.eup %425 }
 0x1c8   :  { %v168_v42 = vmul.f32 %v426_v40, %v162_v38 }
 0x1ca   :  { %v177_v44 = vadd.f32 %v360_v41, %v168_v42 }
 0x1cc   :  { %v178_v45 = vpack.c.bf16 %v177_v44, %v176_v43 }
 0x1ce   :  { %384 = vmatmul.mubr.msk.bf16.vlgmr.msra.gmra.mrb[0].mxu0 %vm117_vm0, %v178_v45 }
 0x2a1   :  { %v239_v49 = vpop.f32.mrb[0].mxu0 }
 0x2a2   :  { %v240_v50 = vadd.f32 %v361_v48, %v239_v49  ;;  %v385_v51 = vpop.f32.mrb[1].mxu0 }
 0x2a3   :  { %v242_v52 = vpop.f32.mrb[2].mxu0 }
 0x2a4   :  { %v243_v53 = vadd.f32 %v361_v48, %v242_v52  ;;  %v386_v54 = vpop.f32.mrb[3].mxu0  ;;  %v246_v55 = vmax.f32 %v240_v50, 0.0 }
 0x2a6   :  { %v247_v56 = vmax.f32 %v243_v53, 0.0 }
 0x2a8   :  { %v248_v57 = vpack.c.bf16 %v247_v56, %v246_v55 }
 0x2aa   :  { %396 = vmatmul.mubr.msk.bf16.vlgmr.msra.gmra.mrb[0].mxu1 %vm281_vm6, %v248_v57 }
 0x37d   :  { %v319_v58 = vpop.f32.mrb[0].mxu1 }
 0x37e   :  { %v326_v60 = vadd.f32 %v319_v58, %v768_v0  ;;  %v397_v61 = vpop.f32.mrb[1].mxu1 }
 0x37f   :  { %v322_v62 = vpop.f32.mrb[2].mxu1 }
 0x380   :  { %v335_v63 = vadd.f32 %v370_v59, %v326_v60  ;;  %v327_v2 = vadd.f32 %v322_v62, %v770_v1  ;;  %v398_v3 = vpop.f32.mrb[3].mxu1 }
 0x382   :  { %337 = vst.msk [vmem:[#allocation14] sm:$0xff] %vm117_vm0, %v335_v63  ;;  %v336_v4 = vadd.f32 %v370_v59, %v327_v2 }
 0x384   :  { %338 = vst.msk [vmem:[#allocation14 + $0x8] sm:$0xff] %vm117_vm0, %v336_v4 }
 0x385   :  { %592 = shalt.err (!%p589_p4)
}
 0x386   :  { %s593_s18 = scalar_lea.hbm %s807_s7, 256 }
 0x387   :  { %p594_p5 = scmp.ne.s32.totalorder %s807_s7, %s593_s18  ;;  %p597_p6 = scmp.lt.u32.totalorder %s593_s18, %s807_s7 }
 0x389   :  { %p599_p7 = pnand %p597_p6, %p594_p5 }
 0x38b   :  { %602 = shalt.err (!%p599_p7)
}
 0x38c   :  { %350 = dma.vmem_to_hbm [thread:$0]  %s345_s8, 256, %s807_s7, [#allocation4], %s619_s5, %s619_s5, %s620_s1  }
 0x38d   :  { %611 = dma.done.wait [#allocation4], 256  }
 0x38e   :  { %612 = vsyncadd [#allocation4], 4294967040 }
 0x38f   :  { %354 = vsyncpa [#allocation3], 1 }
 0x390   :  { %355 = vsyncpa [#allocation6], 1 }
 0x391   :  { %356 = vsyncpa [#allocation9], 1 }
 0x392   :  { %357 = vsyncpa [#allocation12], 1 }
 0x393   :  { %358 = vsyncpa [#allocation4], 1 }

// kernel: decoder.17
= control target key start
LH: loop header
LB: loop body
LE: loop exit
PB: predicated region body
PF: predicated region fallthrough
CT: control target
= control target key end

     0   :  { %s2293_s0 = inlined_call_operand.hbm [shape: bf16[2,8,32], index: 0, kind: input, shape index: {}]   ;;  %s2294_s1 = inlined_call_operand.hbm [shape: bf16[2,8,32], index: 1, kind: input, shape index: {}]   ;;  %s2295_s2 = inlined_call_operand.hbm [shape: bf16[2,8,32], index: 2, kind: input, shape index: {}]   ;;  %s2296_s3 = inlined_call_operand.hbm [shape: f32[2,1,8], index: 3, kind: input, shape index: {}]   ;;  %s2297_s4 = inlined_call_operand.hbm [shape: f32[2,8,32], index: 4, kind: input, shape index: {}, may-alias: {4,7}]   ;;  %s2298_s5 = inlined_call_operand.hbm [shape: bf16[32,32], index: 5, kind: input, shape index: {}]   ;;  %s2299_s6 = inlined_call_operand.hbm [shape: f32[1,32], index: 6, kind: input, shape index: {}]   ;;  %s2300_s7 = inlined_call_operand.hbm [shape: f32[2,8,32], index: 7, kind: output, shape index: {}, may-alias: {4,7}]  }
   0x1   :  { %2320 = sst [smem:[#allocation26_spill]] %s2294_s1 }
   0x2   :  { %2321 = sst [smem:[#allocation27_spill]] %s2296_s3 }
   0x3   :  { %2322 = sst [smem:[#allocation28_spill]] %s2298_s5 }
   0x4   :  { %2323 = sst [smem:[#allocation29_spill]] %s2300_s7 }
   0x5   :  { %12 = vsyncpa [#allocation3], 0 }
   0x6   :  { %14 = vsyncpa [#allocation3 + $0x1], 0 }
   0x7   :  { %15 = vsyncpa [#allocation6], 0 }
   0x8   :  { %17 = vsyncpa [#allocation6 + $0x1], 0 }
   0x9   :  { %18 = vsyncpa [#allocation9], 0 }
   0xa   :  { %20 = vsyncpa [#allocation9 + $0x1], 0 }
   0xb   :  { %21 = vsyncpa [#allocation12], 0 }
   0xc   :  { %22 = vsyncpa [#allocation4], 0 }
   0xd   :  { %24 = vsyncpa [#allocation4 + $0x1], 0  ;;  %s1838_s24 = smov 0   ;;  %s1840_s25 = smov 0  }
   0xe   :  { %s1842_s26 = smov 0   ;;  %s1844_s27 = smov 0  }
   0xf   :  { %s1846_s28 = smov 0   ;;  %s1848_s29 = smov 0  }
  0x10 LB: > { %2324 = sst [smem:[#allocation20_spill]] %s1757_s24  ;;  %s1869_s30 = sadd.s32 4294967295, %s1777_s29   ;;  %s1777_s29 = sphi %s1848_s29, %s30_s29   ;;  %s1773_s28 = sphi %s1846_s28, %s2367_s28   ;;  %s1769_s27 = sphi %s1844_s27, %s2366_s27   ;;  %s1765_s26 = sphi %s1842_s26, %s2362_s26   ;;  %s1761_s25 = sphi %s1840_s25, %s2365_s25   ;;  %s1757_s24 = sphi %s1838_s24, %s2364_s24  }
  0x11   : > { %2325 = sst [smem:[#allocation21_spill]] %s1765_s26  ;;  %s1226_s8 = sadd.s32 4294967294, %s1777_s29  }
  0x12   : > { %2326 = sst [smem:[#allocation22_spill]] %s1777_s29  ;;  %p64_p0 = scmp.ne.s32.totalorder %s1761_s25, %s1757_s24 }
  0x13   : > { %p2301_p1 = scmp.eq.s32.totalorder %s1869_s30, 0  ;;  %p244_p3 = scmp.eq.s32.totalorder %s1226_s8, 1 }
  0x14   : > { %p1227_p5 = scmp.ge.s32.totalorder %s1777_s29, 1  ;;  %p251_p7 = scmp.lt.s32.totalorder %s1777_s29, 3 }
  0x15   : > { %p1878_p4 = por %p2301_p1, %p64_p0  ;;  %p1883_p6 = por %p244_p3, %p64_p0 }
  0x16   : > { %p1888_p8 = pnand %p1227_p5, %p251_p7  ;;  %s1779_s12 = smov [#allocation11]  }
  0x17   : > { %s2327_s9 = scalar_select %p1878_p4, 1, 0 }
  0x18   : > { %s2328_s10 = scalar_select %p1883_p6, 1, 0 }
  0x19   : > { %s2330_s11 = scalar_select %p1888_p8, 1, 0 }
  0x1a   : > { %2329 = sst [smem:[#allocation23_spill]] %s2328_s10  ;;  %s263_s13 = sshll.u32 %s1779_s12, 4  ;;  %s264_s13 = int_to_ptr.vmem [resolvable:$true] %s263_s13 }
  0x1b   : > { %p1362_p9 = pneg %p1888_p8  ;;  %s42_s15 = sadd.s32 1, %s1773_s28 }
  0x1c   : > { %s2332_s5 = sld [smem:[#allocation28_spill]] }
  0x1d   : > { %p1897_p11 = pnand %p1362_p9, %p2301_p1 }
  0x1f   : > { %s2331_s14 = scalar_select %p1897_p11, 1, 0 }
  0x20   : > { %p2309_p13 = pneg %p1897_p11 }
  0x22   : > { %s1477_s18 = scalar_lea.hbm %s2332_s5, 256 }
  0x23   : > { %p1478_p12 = scmp.ne.s32.totalorder %s2332_s5, %s1477_s18  ;;  %p1484_p5 = scmp.lt.u32.totalorder %s1477_s18, %s2332_s5 }
  0x25   : > { %p1480_p0 = pnand %p2309_p13, %p1478_p12 }
  0x27   : > { %p1481_p3 = pneg %p1480_p0 }
  0x29   : > { %p1486_p7 = pnand %p1484_p5, %p1481_p3 }
  0x2b   : > { %1489 = shalt.err (!%p1486_p7)
}
  0x2c   : > { %s1490_s23 = scalar_lea.vmem %s264_s13, 256  ;;  %p1498_p2 = scmp.lt.s32.totalorder %s264_s13, %s264_s13 }
  0x2d   : > { %p1491_p9 = scmp.ne.s32.totalorder %s264_s13, %s1490_s23  ;;  %p1499_p6 = scmp.lt.s32.totalorder %s1490_s23, %s1490_s23 }
  0x2f   : > { %p1493_p10 = pnand %p1491_p9, %p2309_p13  ;;  %p1500_p4 = por %p1499_p6, %p1498_p2 }
  0x31   : > { %p1494_p1 = pneg %p1493_p10 }
  0x33   : > { %p1501_p8 = pnand %p1500_p4, %p1494_p1 }
  0x35   : > { %1504 = shalt.err (!%p1501_p8)
}
  0x36   : > { %s1780_s8 = smov 64   ;;  %s1781_s12 = smov 4  }
  0x37   : > { %1365 = dma.hbm_to_vmem [thread:$0]  (!%p1897_p11), %s2332_s5, 256, %s264_s13, [#allocation12], %s1780_s8, %s1780_s8, %s1781_s12  }
  0x38   : > { %p44_p1 = scmp.ge.s32.totalorder %s42_s15, 2  ;;  %s51_s18 = sadd.s32 1, %s1765_s26 }
  0x39   : > { %p58_p2 = scmp.ne.s32.totalorder %s1765_s26, %s1761_s25  ;;  %p59_p4 = scmp.eq.s32.totalorder %s1777_s29, 0 }
  0x3a   : > { %s2369_s15 = smov (%p44_p1, %s42_s15), 0  ;;  %p2334_p8 = scmp.eq.s32.totalorder %s1869_s30, 1 }
  0x3b   : > { %2333 = sst [smem:[#allocation24_spill]] %s2369_s15  ;;  %p60_p6 = por %p59_p4, %p58_p2 }
  0x3c   : > { %p1932_p10 = por %p2334_p8, %p58_p2  ;;  %s46_s20 = ssub.s32 %s1773_s28, %s2369_s15 }
  0x3d   : > { %p1391_p12 = scmp.lt.s32.totalorder %s1777_s29, 2  ;;  %p49_p0 = scmp.eq.s32.totalorder %s46_s20, 0 }
  0x3e   : > { %s2335_s19 = scalar_select %p1932_p10, 1, 0 }
  0x3f   : > { %s1940_s21 = sand.u32 1, %s1765_s26   ;;  %s1946_s22 = sshll.u32 %s1773_s28, 6 }
  0x40   : > { %s1943_s13 = sshll.u32 %s1940_s21, 2  ;;  %p1951_p3 = pnand %p1391_p12, %p60_p6 }
  0x41   : > { %s1949_s23 = scalar_select %p49_p0, %s1765_s26, %s51_s18  }
  0x42   : > { %s2337_s8 = scalar_select %p1951_p3, 1, 0 }
  0x43   : > { %2336 = sst [smem:[#allocation25_spill]] %s1949_s23  ;;  %s2308_s12 = sand.u32 1, %s1777_s29  }
  0x44   : > { %s2338_s1 = sld [smem:[#allocation26_spill]]  ;;  %s311_s5 = scalar_lea.vmem [#allocation5], %s1943_s13 }
  0x45   : > { %s318_s15 = sshll.u32 %s311_s5, 4  ;;  %s1967_s18 = scalar_lea.sflag [#allocation6], %s2308_s12  ;;  %s1963_s15 = int_to_ptr.vmem [resolvable:$true] %s318_s15 }
  0x46   : > { %p1973_p7 = pneg %p1951_p3 }
  0x48   : > { %s2339_s26 = scalar_select %p1973_p7, 1, 0 }
  0x4a   : > { %s1960_s20 = scalar_lea.hbm %s2338_s1, %s1946_s22  ;;  %s1510_s5 = scalar_lea.hbm %s2338_s1, 128 }
  0x4b   : > { %s1505_s23 = scalar_lea.hbm %s1960_s20, 64  ;;  %p1511_p2 = scmp.lt.u32.totalorder %s1960_s20, %s2338_s1 }
  0x4c   : > { %p1506_p5 = scmp.ne.s32.totalorder %s1960_s20, %s1505_s23  ;;  %p1512_p4 = scmp.lt.u32.totalorder %s1510_s5, %s1505_s23 }
  0x4d   : > { %p1514_p8 = scmp.lt.u32.totalorder %s1505_s23, %s1960_s20 }
  0x4e   : > { %p1508_p9 = pnand %p1973_p7, %p1506_p5  ;;  %p1513_p6 = por %p1512_p4, %p1511_p2 }
  0x50   : > { %p1509_p1 = pneg %p1508_p9  ;;  %p1515_p12 = por %p1514_p8, %p1513_p6 }
  0x52   : > { %p1516_p0 = pnand %p1515_p12, %p1509_p1 }
  0x54   : > { %1519 = shalt.err (!%p1516_p0)
}
  0x55   : > { %s1520_s12 = scalar_lea.vmem %s1963_s15, 64  ;;  %s1782_s16 = smov [#allocation5]  }
  0x56   : > { %p1521_p5 = scmp.ne.s32.totalorder %s1963_s15, %s1520_s12  ;;  %s1525_s17 = sshll.u32 %s1782_s16, 4  ;;  %s1526_s17 = int_to_ptr.vmem [resolvable:$false] %s1525_s17 }
  0x57   : > { %s1527_s24 = scalar_lea.vmem %s1526_s17, 128  ;;  %p1528_p10 = scmp.lt.s32.totalorder %s1963_s15, %s1526_s17 }
  0x58   : > { %p1523_p9 = pnand %p1521_p5, %p1973_p7  ;;  %p1529_p11 = scmp.lt.s32.totalorder %s1527_s24, %s1520_s12 }
  0x5a   : > { %p1524_p13 = pneg %p1523_p9  ;;  %p1530_p2 = por %p1529_p11, %p1528_p10 }
  0x5c   : > { %p1531_p4 = pnand %p1530_p2, %p1524_p13 }
  0x5e   : > { %1534 = shalt.err (!%p1531_p4)
}
  0x5f   : > { %1375 = dma.hbm_to_vmem [thread:$0]  (!%p1951_p3), %s1960_s20, 64, %s1963_s15, %s1967_s18  }
  0x60   : > { %s1237_s10 = sshll.u32 %s1773_s28, 4  ;;  %s346_s23 = scalar_lea.vmem [#allocation8], %s1940_s21 }
  0x61   : > { %s353_s5 = sshll.u32 %s346_s23, 4  ;;  %s2340_s3 = sld [smem:[#allocation27_spill]]  ;;  %s354_s5 = int_to_ptr.vmem [resolvable:$true] %s353_s5 }
  0x62   : > { %s2341_s17 = sand.u32 1, %s1777_s29  }
  0x63   : > { %s2006_s24 = scalar_lea.sflag [#allocation9], %s2341_s17 }
  0x67   : > { %s2002_s12 = scalar_lea.hbm %s2340_s3, %s1237_s10  ;;  %s1540_s23 = scalar_lea.hbm %s2340_s3, 32 }
  0x68   : > { %s1535_s7 = scalar_lea.hbm %s2002_s12, 16  ;;  %p1541_p1 = scmp.lt.u32.totalorder %s2002_s12, %s2340_s3 }
  0x69   : > { %p1536_p11 = scmp.ne.s32.totalorder %s2002_s12, %s1535_s7  ;;  %p1542_p6 = scmp.lt.u32.totalorder %s1540_s23, %s1535_s7 }
  0x6a   : > { %p1544_p12 = scmp.lt.u32.totalorder %s1535_s7, %s2002_s12 }
  0x6b   : > { %p1538_p13 = pnand %p1536_p11, %p1973_p7  ;;  %p1543_p8 = por %p1542_p6, %p1541_p1 }
  0x6d   : > { %p1539_p10 = pneg %p1538_p13  ;;  %p1545_p0 = por %p1544_p12, %p1543_p8 }
  0x6f   : > { %p1546_p5 = pnand %p1545_p0, %p1539_p10 }
  0x71   : > { %1549 = shalt.err (!%p1546_p5)
}
  0x72   : > { %s1550_s16 = scalar_lea.vmem %s354_s5, 16  ;;  %s1783_s17 = smov [#allocation8]  }
  0x73   : > { %p1551_p9 = scmp.ne.s32.totalorder %s354_s5, %s1550_s16  ;;  %s1555_s29 = sshll.u32 %s1783_s17, 4  ;;  %s1556_s29 = int_to_ptr.vmem [resolvable:$false] %s1555_s29 }
  0x74   : > { %s1557_s15 = scalar_lea.vmem %s1556_s29, 32  ;;  %p1558_p11 = scmp.lt.s32.totalorder %s354_s5, %s1556_s29 }
  0x75   : > { %p1553_p2 = pnand %p1551_p9, %p1973_p7  ;;  %p1559_p13 = scmp.lt.s32.totalorder %s1557_s15, %s1550_s16 }
  0x77   : > { %p1554_p4 = pneg %p1553_p2  ;;  %p1560_p3 = por %p1559_p13, %p1558_p11 }
  0x79   : > { %p1561_p1 = pnand %p1560_p3, %p1554_p4 }
  0x7b   : > { %1564 = shalt.err (!%p1561_p1)
}
  0x7c   : > { %p2342_p6 = scmp.ne.s32.totalorder %s2337_s8, 0  ;;  %s1784_s7 = smov [#allocation13]  }
  0x7d   : > { %s277_s20 = sshll.u32 %s1784_s7, 4  ;;  %s2030_s10 = scalar_lea.hbm %s2293_s0, %s1946_s22  ;;  %s278_s20 = int_to_ptr.vmem [resolvable:$true] %s277_s20 }
  0x7e   : > { %1381 = dma.hbm_to_vmem [thread:$0]  (!%p2342_p6), %s2002_s12, 16, %s354_s5, %s2006_s24  }
  0x7f   : > { %s1565_s17 = scalar_lea.hbm %s2299_s6, 16  ;;  %p2343_p10 = scmp.ne.s32.totalorder %s2331_s14, 0 }
  0x80   : > { %p1566_p3 = scmp.ne.s32.totalorder %s2299_s6, %s1565_s17  ;;  %p1572_p5 = scmp.lt.u32.totalorder %s1565_s17, %s2299_s6 }
  0x81   : > { %p2344_p8 = pneg %p2343_p10 }
  0x83   : > { %p1568_p12 = pnand %p1566_p3, %p2344_p8 }
  0x85   : > { %p1569_p0 = pneg %p1568_p12 }
  0x87   : > { %p1574_p9 = pnand %p1572_p5, %p1569_p0 }
  0x89   : > { %1577 = shalt.err (!%p1574_p9)
}
  0x8a   : > { %s1578_s7 = scalar_lea.vmem %s278_s20, 16  ;;  %p2345_p4 = pmov %p2344_p8 }
  0x8b   : > { %p1579_p2 = scmp.ne.s32.totalorder %s278_s20, %s1578_s7  ;;  %s1585_s23 = scalar_lea.vmem %s278_s20, 32 }
  0x8c   : > { %p1586_p1 = scmp.lt.s32.totalorder %s278_s20, %s278_s20  ;;  %p1587_p6 = scmp.lt.s32.totalorder %s1585_s23, %s1578_s7 }
  0x8d   : > { %p1581_p11 = pnand %p1579_p2, %p2345_p4 }
  0x8e   : > { %p1588_p7 = por %p1587_p6, %p1586_p1 }
  0x8f   : > { %p1582_p13 = pneg %p1581_p11 }
  0x91   : > { %p1589_p3 = pnand %p1588_p7, %p1582_p13 }
  0x93   : > { %1592 = shalt.err (!%p1589_p3)
}
  0x94   : > { %1368 = dma.hbm_to_vmem [thread:$0]  (!%p2343_p10), %s2299_s6, 16, %s278_s20, [#allocation12]  }
  0x95   : > { %s292_s29 = scalar_lea.vmem [#allocation2], %s1943_s13  ;;  %s2059_s14 = scalar_lea.hbm %s2295_s2, %s1946_s22 }
  0x96   : > { %s300_s16 = sshll.u32 %s292_s29, 4  ;;  %s289_s5 = scalar_lea.sflag [#allocation3], %s1940_s21  ;;  %s2053_s16 = int_to_ptr.vmem [resolvable:$true] %s300_s16 }
  0x97   : > { %s1593_s12 = scalar_lea.hbm %s2030_s10, 64  ;;  %p2346_p6 = scmp.ne.s32.totalorder %s2339_s26, 0 }
  0x98   : > { %p1594_p7 = scmp.ne.s32.totalorder %s2030_s10, %s1593_s12  ;;  %s1598_s3 = scalar_lea.hbm %s2293_s0, 128 }
  0x99   : > { %p1599_p10 = scmp.lt.u32.totalorder %s2030_s10, %s2293_s0  ;;  %p1600_p0 = scmp.lt.u32.totalorder %s1598_s3, %s1593_s12 }
  0x9a   : > { %p1596_p8 = pnand %p1594_p7, %p2346_p6  ;;  %p1602_p9 = scmp.lt.u32.totalorder %s1593_s12, %s2030_s10 }
  0x9b   : > { %p1601_p5 = por %p1600_p0, %p1599_p10 }
  0x9c   : > { %p1597_p12 = pneg %p1596_p8 }
  0x9d   : > { %p1603_p2 = por %p1602_p9, %p1601_p5 }
  0x9f   : > { %p1604_p4 = pnand %p1603_p2, %p1597_p12 }
  0xa1   : > { %1607 = shalt.err (!%p1604_p4)
}
  0xa2   : > { %s1608_s22 = scalar_lea.vmem %s2053_s16, 64  ;;  %s1785_s29 = smov [#allocation2]  }
  0xa3   : > { %p1609_p11 = scmp.ne.s32.totalorder %s2053_s16, %s1608_s22  ;;  %s1613_s17 = sshll.u32 %s1785_s29, 4  ;;  %s1614_s17 = int_to_ptr.vmem [resolvable:$false] %s1613_s17 }
  0xa4   : > { %s1615_s15 = scalar_lea.vmem %s1614_s17, 128  ;;  %p1616_p3 = scmp.lt.s32.totalorder %s2053_s16, %s1614_s17 }
  0xa5   : > { %p1611_p13 = pnand %p1609_p11, %p2346_p6  ;;  %p1617_p7 = scmp.lt.s32.totalorder %s1615_s15, %s1608_s22 }
  0xa7   : > { %p1612_p1 = pneg %p1611_p13  ;;  %p1618_p8 = por %p1617_p7, %p1616_p3 }
  0xa9   : > { %p1619_p10 = pnand %p1618_p8, %p1612_p1 }
  0xab   : > { %1622 = shalt.err (!%p1619_p10)
}
  0xac   : > { %p2347_p12 = scmp.ne.s32.totalorder %s2337_s8, 0  ;;  %s329_s12 = scalar_lea.vmem [#allocation7], %s1943_s13 }
  0xad   : > { %s336_s7 = sshll.u32 %s329_s12, 4  ;;  %s1238_s23 = sshll.u32 %s1940_s21, 3  ;;  %s337_s7 = int_to_ptr.vmem [resolvable:$true] %s336_s7 }
  0xae   : > { %1372 = dma.hbm_to_vmem [thread:$0]  (!%p2347_p12), %s2030_s10, 64, %s2053_s16, %s289_s5  }
  0xaf   : > { %s1623_s3 = scalar_lea.hbm %s2059_s14, 64  ;;  %s1628_s22 = scalar_lea.hbm %s2295_s2, 128 }
  0xb0   : > { %p1624_p0 = scmp.ne.s32.totalorder %s2059_s14, %s1623_s3  ;;  %p1629_p2 = scmp.lt.u32.totalorder %s2059_s14, %s2295_s2 }
  0xb1   : > { %p1630_p4 = scmp.lt.u32.totalorder %s1628_s22, %s1623_s3  ;;  %p1632_p13 = scmp.lt.u32.totalorder %s1623_s3, %s2059_s14 }
  0xb2   : > { %p1626_p5 = pnand %p1624_p0, %p2346_p6 }
  0xb3   : > { %p1631_p11 = por %p1630_p4, %p1629_p2 }
  0xb4   : > { %p1627_p9 = pneg %p1626_p5 }
  0xb5   : > { %p1633_p1 = por %p1632_p13, %p1631_p11 }
  0xb7   : > { %p1634_p3 = pnand %p1633_p1, %p1627_p9 }
  0xb9   : > { %1637 = shalt.err (!%p1634_p3)
}
  0xba   : > { %s1638_s13 = scalar_lea.vmem %s337_s7, 64  ;;  %s1786_s10 = smov [#allocation7]  }
  0xbb   : > { %p1639_p7 = scmp.ne.s32.totalorder %s337_s7, %s1638_s13  ;;  %s1643_s16 = sshll.u32 %s1786_s10, 4  ;;  %s1644_s16 = int_to_ptr.vmem [resolvable:$false] %s1643_s16 }
  0xbc   : > { %s1645_s5 = scalar_lea.vmem %s1644_s16, 128  ;;  %p1646_p0 = scmp.lt.s32.totalorder %s337_s7, %s1644_s16 }
  0xbd   : > { %p1641_p8 = pnand %p1639_p7, %p2346_p6  ;;  %p1647_p5 = scmp.lt.s32.totalorder %s1645_s5, %s1638_s13 }
  0xbf   : > { %p1642_p10 = pneg %p1641_p8  ;;  %p1648_p12 = por %p1647_p5, %p1646_p0 }
  0xc1   : > { %p1649_p2 = pnand %p1648_p12, %p1642_p10 }
  0xc3   : > { %1652 = shalt.err (!%p1649_p2)
}
  0xc4   : > { %p2348_p4 = scmp.ne.s32.totalorder %s2337_s8, 0  ;;  %s1239_s15 = sshll.u32 %s1773_s28, 7 }
  0xc5   : > { %s364_s12 = scalar_lea.vmem [#allocation10], %s1238_s23  ;;  %s370_s22 = scalar_lea.hbm %s2297_s4, %s1239_s15 }
  0xc6   : > { %1378 = dma.hbm_to_vmem [thread:$0]  (!%p2348_p4), %s2059_s14, 64, %s337_s7, %s1967_s18  }
  0xc7   : > { %s372_s3 = sshll.u32 %s364_s12, 4  ;;  %s1653_s29 = scalar_lea.hbm %s370_s22, 128  ;;  %s373_s3 = int_to_ptr.vmem [resolvable:$true] %s372_s3 }
  0xc8   : > { %p1654_p12 = scmp.ne.s32.totalorder %s370_s22, %s1653_s29  ;;  %s1658_s10 = scalar_lea.hbm %s2297_s4, 256 }
  0xc9   : > { %p1659_p13 = scmp.lt.u32.totalorder %s370_s22, %s2297_s4  ;;  %p1660_p1 = scmp.lt.u32.totalorder %s1658_s10, %s1653_s29 }
  0xca   : > { %p1656_p9 = pnand %p1654_p12, %p2346_p6  ;;  %p1662_p7 = scmp.lt.u32.totalorder %s1653_s29, %s370_s22 }
  0xcb   : > { %p1661_p3 = por %p1660_p1, %p1659_p13 }
  0xcc   : > { %p1657_p11 = pneg %p1656_p9 }
  0xcd   : > { %p1663_p8 = por %p1662_p7, %p1661_p3 }
  0xcf   : > { %p1664_p10 = pnand %p1663_p8, %p1657_p11 }
  0xd1   : > { %1667 = shalt.err (!%p1664_p10)
}
  0xd2   : > { %s1668_s21 = scalar_lea.vmem %s373_s3, 128  ;;  %s1787_s14 = smov [#allocation10]  }
  0xd3   : > { %p1669_p0 = scmp.ne.s32.totalorder %s373_s3, %s1668_s21  ;;  %s1673_s7 = sshll.u32 %s1787_s14, 4  ;;  %s1674_s7 = int_to_ptr.vmem [resolvable:$false] %s1673_s7 }
  0xd4   : > { %s1675_s23 = scalar_lea.vmem %s1674_s7, 256  ;;  %p1676_p12 = scmp.lt.s32.totalorder %s373_s3, %s1674_s7 }
  0xd5   : > { %p1671_p5 = pnand %p1669_p0, %p2346_p6  ;;  %p1677_p9 = scmp.lt.s32.totalorder %s1675_s23, %s1668_s21 }
  0xd7   : > { %p1672_p2 = pneg %p1671_p5  ;;  %p1678_p4 = por %p1677_p9, %p1676_p12 }
  0xd9   : > { %p1679_p1 = pnand %p1678_p4, %p1672_p2 }
  0xdb   : > { %1682 = shalt.err (!%p1679_p1)
}
  0xdc   : > { %p2349_p13 = scmp.ne.s32.totalorder %s2337_s8, 0  ;;  %p2350_p11 = scmp.ne.s32.totalorder %s2330_s11, 0 }
  0xdd   : > { %s2125_s26 = sand.u32 (!%p2350_p11), 1, %s1761_s25   ;;  %p2351_p6 = scmp.ne.s32.totalorder (!%p2350_p11), %s2327_s9, 0 }
  0xde   : > { %1384 = dma.hbm_to_vmem [thread:$0]  (!%p2349_p13), %s370_s22, 128, %s373_s3, %s2006_s24  }
  0xdf   : > { %381 = sbr.rel (%p2350_p11) target bundleno = 1929 (0x789), region = 48  ;;  %s2128_s5 = sshll.u32 (!%p2350_p11), %s2125_s26, 2 }
  0xe0   : > { %s384_s15 = scalar_lea.sflag (!%p2350_p11), [#allocation3], %s2125_s26  ;;  %s387_s12 = scalar_lea.vmem (!%p2350_p11), [#allocation2], %s2128_s5 }
  0xe6   : > { %1736 = dma.done.wait (%p2351_p6), %s384_s15, 64  }
  0xe7   : > { %1738 = vsyncadd (%p2351_p6), %s384_s15, 4294967232  ;;  %s392_s11 = sand.u32 1, %s1869_s30   ;;  %s396_s24 = scalar_lea.vmem [#allocation5], %s2128_s5 }
  0xe8   : > { %s393_s8 = scalar_lea.sflag [#allocation6], %s392_s11 }
  0xe9   : > { %1740 = dma.done.wait (%p2351_p6), %s393_s8, 128  }
  0xea   : > { %1742 = vsyncadd (%p2351_p6), %s393_s8, 4294967168  ;;  %s405_s3 = scalar_lea.vmem [#allocation7], %s2128_s5  ;;  %s411_s20 = scalar_lea.sflag [#allocation9], %s392_s11 }
  0xeb   : > { %s413_s1 = scalar_lea.vmem [#allocation8], %s2125_s26 }
  0xec   : > { %1744 = dma.done.wait (%p2351_p6), %s411_s20, 144  }
  0xed   : > { %1746 = vsyncadd (%p2351_p6), %s411_s20, 4294967152  ;;  %s1244_s22 = sshll.u32 %s2125_s26, 3  ;;  %p2352_p4 = scmp.eq.s32.totalorder %s1869_s30, 0 }
  0xee   : > { %s2151_s29 = scalar_lea.vmem [#allocation10], %s1244_s22 }
  0xef   : > { %1748 = dma.done.wait (%p2352_p4), [#allocation12], 272   ;;  %p2353_p3 = pmov %p2352_p4 }
  0xf0   : > { %v1788_v0 = vmov 0.0   ;;  %vm1789_vm0 = vmmov 0   ;;  %vm497_vm1 = vcmask 64512   ;;  %v482_v1 = vld [vmem:[%s396_s24] sm:$0xf]  ;;  %v492_v4 = vlaneseq  ;;  %s1791_s30 = smov 120  }
  0xf1   : > { %1750 = vsyncadd (%p2353_p3), [#allocation12], 4294967024  ;;  %1286 = vmatprep.subr.bf16.mxu0 %v1788_v0  ;;  %1288 = vmatprep.mubr.msk.bf16.mxu0 %vm1789_vm0, %v1788_v0  ;;  %v502_v2 = vsel %vm497_vm1, %v482_v1, 0  ;;  %v481_v3 = vld [vmem:[%s387_s12] sm:$0xf]  ;;  %v1251_v17 = vcombine.low %v482_v1, %v482_v1  ;;  %s1792_s9 = smov 112  }
  0xf2   : > { %1292 = vmatprep.subr.bf16.mxu1 %v1788_v0  ;;  %1294 = vmatprep.mubr.msk.bf16.mxu1 %vm1789_vm0, %v1788_v0  ;;  %v484_v5 = vld [vmem:[%s413_s1] sm:$0x1]  ;;  %v493_v6 = vshrl.u32 %v492_v4, 7  ;;  %v1790_v8 = vmov -1e+09   ;;  %v1250_v18 = vcombine.low %v481_v3, %v481_v3  ;;  %s1793_s17 = smov 104  }
  0xf3   : > { %1287 = vmatpush3.bf16.xpose.msra.mxu0 %v502_v2  ;;  %vm485_vm2 = vcmp.ne.f32.partialorder %v484_v5, 0.0  ;;  %611 = vrot.lane.b32.xlu1 %v1251_v17, %s1791_s30  ;;  %v2180_v24 = vld [vmem:[%s405_s3] sm:$0xf]  ;;  %vm559_vm3 = vcmask 1043456   ;;  %s1794_s13 = smov 8   ;;  %s1795_s10 = smov 16  }
  0xf4   : > { %1304 = vmatprep.subr.bf16.mxu0 %v1788_v0  ;;  %v494_v7 = vsub.s32 0, %v493_v6  ;;  %v486_v9 = vsel %vm485_vm2, 0.0, %v1790_v8  ;;  %v561_v25 = vsel %vm559_vm3, %v2180_v24, 0  ;;  %v1253_v8 = vcombine.low %v2180_v24, %v2180_v24  ;;  %s1796_s16 = smov 24   ;;  %s1264_s18 = sshll.u32 %s1769_s27, 7 }
  0xf5   : > { %1293 = vmatpush3.bf16.msra.mxu1 %v561_v25  ;;  %vm955_vm4 = vcmask 130048   ;;  %vm957_vm5 = vcmask 195584   ;;  %vm981_vm6 = vcmask 261120   ;;  %s479_s21 = scalar_lea.vmem [#allocation14], %s1244_s22  ;;  %s2354_s5 = sld [smem:[#allocation29_spill]] }
  0xf6   : > { %v2168_v10 = vrot.slane %v486_v9, %v494_v7  ;;  %1298 = vmatprep.subr.bf16.mxu1 %v1788_v0  ;;  %s1042_s14 = sshll.u32 %s479_s21, 4  ;;  %s1028_s27 = scalar_lea.sflag [#allocation4], %s2125_s26  ;;  %s2245_s14 = int_to_ptr.vmem [resolvable:$true] %s1042_s14 }
  0xf7   : > { %606 = vrot.lane.b32.xlu1 %v1250_v18, %s1791_s30  ;;  %s1683_s12 = scalar_lea.vmem %s2245_s14, 128  ;;  %p2355_p8 = scmp.ne.s32.totalorder %s2335_s19, 0 }
  0xf8   : > { %p1684_p7 = scmp.ne.s32.totalorder %s2245_s14, %s1683_s12  ;;  %s1797_s11 = smov [#allocation14]  }
  0xf9   : > { %s1687_s8 = sshll.u32 %s1797_s11, 4  ;;  %s1688_s8 = int_to_ptr.vmem [resolvable:$false] %s1687_s8 }
  0xfa   : > { %1289 = vmatmul.mubr.msk.bf16.vlgmr.msra.gmra.mrb[0].mxu0 %vm497_vm1, %v481_v3  ;;  %p1685_p10 = pnand %p1684_p7, %p2355_p8  ;;  %s1689_s24 = scalar_lea.vmem %s1688_s8, 256 }
  0xfb   : > { %1306 = vmatprep.mubr.msk.bf16.mxu0 %vm1789_vm0, %v1788_v0  ;;  %722 = vrot.lane.b32.xlu1 %v1250_v18, %s1792_s9  ;;  %s2243_s15 = scalar_lea.hbm %s2354_s5, %s1264_s18  ;;  %p1690_p5 = scmp.lt.s32.totalorder %s2245_s14, %s1688_s8 }
  0xfc   : > { %p1686_p0 = pneg %p1685_p10  ;;  %p1691_p2 = scmp.lt.s32.totalorder %s1689_s24, %s1683_s12 }
  0xfe   : > { %p1692_p12 = por %p1691_p2, %p1690_p5 }
  0xff   : > { %834 = vrot.lane.b32.xlu1 %v1251_v17, %s1793_s17 }
 0x100   : > { %p1693_p9 = pnand %p1692_p12, %p1686_p0 }
 0x103   : > { %832 = vrot.lane.b32.xlu1 %v1250_v18, %s1793_s17 }
 0x165   : > { %v612_v28 = vpop.permute.xlu1 %611 }
 0x166   : > { %v617_v30 = vsel %vm497_vm1, %v612_v28, 0 }
 0x169   : > { %v607_v32 = vpop.permute.xlu1 %606 }
 0x16d   : > { %v723_v34 = vpop.permute.xlu1 %722 }
 0x171   : > { %v835_v36 = vpop.permute.xlu1 %834 }
 0x172   : > { %v840_v37 = vsel %vm497_vm1, %v835_v36, 0 }
 0x175   : > { %v833_v38 = vpop.permute.xlu1 %832 }
 0x1cd   : > { %v538_v11 = vpop.f32.mrb[0].mxu0 }
 0x1ce   : > { %v539_v12 = vadd.f32 %v538_v11, %v2168_v10  ;;  %v1290_v13 = vpop.f32.mrb[1].mxu0 }
 0x1cf   : > { %v541_v14 = vpop.f32.mrb[2].mxu0 }
 0x1d0   : > { %v1291_v15 = vpop.f32.mrb[3].mxu0  ;;  %v544_v16 = vsel %vm497_vm1, %v539_v12, -inf }
 0x1d1   : > { %545 = vmax.xlane.f32.xlu0 %v544_v16 }
 0x25e   : > { %v546_v19 = vpop.xlane.xlu0 %545 }
 0x25f   : > { %v547_v20 = vsub.f32 %v539_v12, %v546_v19 }
 0x261   : > { %v548_v21 = vmul.f32 1.442695, %v547_v20 }
 0x263   : > { %1461 = vpow2.f32 %v548_v21 }
 0x26d   : > { %v1462_v22 = vpop.eup %1461 }
 0x26e   : > { %v550_v23 = vsel %vm497_vm1, %v1462_v22, 0.0 }
 0x26f   : > { %551 = vadd.xlane.f32.xlu0 %v550_v23 }
 0x285   : > { %724 = vrot.lane.b32.xlu0 %v1251_v17, %s1792_s9 }
 0x2fc   : > { %v552_v26 = vpop.xlane.xlu0 %551 }
 0x2fd   : > { %1463 = vrcp.f32 %v552_v26 }
 0x300   : > { %v725_v33 = vpop.permute.xlu0 %724 }
 0x301   : > { %v730_v35 = vsel %vm497_vm1, %v725_v33, 0  ;;  %v1460_v33 = vld [vmem:[#allocation11 + $0x8] sm:$0xff]  }
 0x307   : > { %v1464_v27 = vpop.eup %1463 }
 0x308   : > { %v554_v29 = vmul.f32 %v1464_v27, %v1462_v22 }
 0x30a   : > { %v555_v31 = vpack.c.bf16 %v554_v29, %v554_v29 }
 0x30c   : > { %1295 = vmatmul.mubr.msk.bf16.vlgmr.msra.gmra.mrb[0].mxu1 %vm497_vm1, %v555_v31 }
 0x30d   : > { %1299 = vmatpush3.bf16.xpose.msra.mxu1 %v617_v30  ;;  %1300 = vmatprep.mubr.msk.bf16.mxu1 %vm1789_vm0, %v1788_v0 }
 0x30e   : > { %1310 = vmatprep.subr.bf16.mxu1 %v1788_v0 }
 0x314   : > { %1301 = vmatmul.mubr.msk.bf16.vlgmr.msra.gmra.mrb[4].mxu1 %vm497_vm1, %v607_v32  ;;  %v1459_v32 = vld [vmem:[#allocation11] sm:$0xff]  }
 0x315   : > { %1311 = vmatpush3.bf16.xpose.msra.mxu1 %v730_v35  ;;  %1312 = vmatprep.mubr.msk.bf16.mxu1 %vm1789_vm0, %v1788_v0 }
 0x316   : > { %1322 = vmatprep.subr.bf16.mxu1 %v1788_v0 }
 0x31c   : > { %1313 = vmatmul.mubr.msk.bf16.vlgmr.msra.gmra.mrb[8].mxu1 %vm497_vm1, %v723_v34 }
 0x31d   : > { %1323 = vmatpush3.bf16.xpose.msra.mxu1 %v840_v37  ;;  %1324 = vmatprep.mubr.msk.bf16.mxu1 %vm1789_vm0, %v1788_v0 }
 0x31e   : > { %1334 = vmatprep.subr.bf16.mxu1 %v1788_v0 }
 0x324   : > { %1325 = vmatmul.mubr.msk.bf16.vlgmr.msra.gmra.mrb[12].mxu1 %vm497_vm1, %v833_v38 }
 0x325   : > { %1338 = vmatprep.mubr.msk.bf16.mxu1 %vm1789_vm0, %v1788_v0  ;;  %1335 = vmatpush3.bf16.msra.mxu1 %v1459_v32 }
 0x326   : > { %1336 = vmatprep.subr.bf16.mxu1 %v1788_v0 }
 0x329   : > { %1337 = vmatpush3.bf16.msra.mxu1 %v1460_v33 }
 0x3df   : > { %v2204_v39 = vpop.f32.mrb[0].mxu1 }
 0x3e0   : > { %v1296_v40 = vpop.f32.mrb[1].mxu1 }
 0x3e1   : > { %v600_v41 = vpop.f32.mrb[2].mxu1 }
 0x3e2   : > { %v1297_v42 = vpop.f32.mrb[3].mxu1 }
 0x3e7   : > { %v653_v43 = vpop.f32.mrb[4].mxu1 }
 0x3e8   : > { %v654_v44 = vadd.f32 %v653_v43, %v2168_v10  ;;  %v1302_v45 = vpop.f32.mrb[5].mxu1 }
 0x3e9   : > { %v656_v46 = vpop.f32.mrb[6].mxu1 }
 0x3ea   : > { %v1303_v47 = vpop.f32.mrb[7].mxu1  ;;  %v659_v48 = vsel %vm497_vm1, %v654_v44, -inf }
 0x3eb   : > { %660 = vmax.xlane.f32.xlu1 %v659_v48 }
 0x3ef   : > { %v766_v49 = vpop.f32.mrb[8].mxu1 }
 0x3f0   : > { %v767_v50 = vadd.f32 %v766_v49, %v2168_v10  ;;  %v1314_v51 = vpop.f32.mrb[9].mxu1 }
 0x3f1   : > { %v769_v52 = vpop.f32.mrb[10].mxu1 }
 0x3f2   : > { %v772_v53 = vsel %vm497_vm1, %v767_v50, -inf  ;;  %v1315_v54 = vpop.f32.mrb[11].mxu1 }
 0x3f3   : > { %773 = vmax.xlane.f32.xlu0 %v772_v53  ;;  %v960_v53 = vld [vmem:[%s2151_s29] sm:$0xff] }
 0x3f4   : > { %v1259_v54 = vld [vmem:[#allocation13] ss:$0 sm:$0xff] }
 0x3f7   : > { %v876_v55 = vpop.f32.mrb[12].mxu1 }
 0x3f8   : > { %v877_v56 = vadd.f32 %v876_v55, %v2168_v10  ;;  %v1326_v57 = vpop.f32.mrb[13].mxu1  ;;  %v968_v55 = vadd.f32 %v1259_v54, %v960_v53 }
 0x3f9   : > { %v879_v58 = vpop.f32.mrb[14].mxu1 }
 0x3fa   : > { %v882_v59 = vsel %vm497_vm1, %v877_v56, -inf  ;;  %v1327_v60 = vpop.f32.mrb[15].mxu1 }
 0x3fb   : > { %883 = vmax.xlane.f32.xlu1 %v882_v59 }
 0x478   : > { %v661_v61 = vpop.xlane.xlu1 %660 }
 0x479   : > { %v662_v62 = vsub.f32 %v654_v44, %v661_v61 }
 0x47b   : > { %v663_v63 = vmul.f32 1.442695, %v662_v62 }
 0x47d   : > { %1465 = vpow2.f32 %v663_v63 }
 0x480   : > { %v774_v1 = vpop.xlane.xlu0 %773 }
 0x481   : > { %v775_v2 = vsub.f32 %v767_v50, %v774_v1 }
 0x483   : > { %v776_v3 = vmul.f32 1.442695, %v775_v2 }
 0x485   : > { %1467 = vpow2.f32 %v776_v3 }
 0x487   : > { %v1466_v4 = vpop.eup %1465 }
 0x488   : > { %v665_v5 = vsel %vm497_vm1, %v1466_v4, 0.0  ;;  %v884_v9 = vpop.xlane.xlu1 %883 }
 0x489   : > { %666 = vadd.xlane.f32.xlu1 %v665_v5  ;;  %v885_v10 = vsub.f32 %v877_v56, %v884_v9 }
 0x48b   : > { %v886_v11 = vmul.f32 1.442695, %v885_v10 }
 0x48d   : > { %1469 = vpow2.f32 %v886_v11 }
 0x48f   : > { %v1468_v6 = vpop.eup %1467 }
 0x490   : > { %v778_v7 = vsel %vm497_vm1, %v1468_v6, 0.0 }
 0x491   : > { %779 = vadd.xlane.f32.xlu0 %v778_v7 }
 0x497   : > { %v1470_v12 = vpop.eup %1469 }
 0x498   : > { %v888_v13 = vsel %vm497_vm1, %v1470_v12, 0.0 }
 0x49a   : > { %784 = vrot.lane.b32.xlu1 %v1253_v8, %s1792_s9 }
 0x4a7   : > { %674 = vrot.lane.b32.xlu0 %v1253_v8, %s1791_s30 }
 0x4be   : > { %889 = vadd.xlane.f32.xlu1 %v888_v13 }
 0x4cf   : > { %894 = vrot.lane.b32.xlu1 %v1253_v8, %s1793_s17 }
 0x516   : > { %v667_v14 = vpop.xlane.xlu1 %666 }
 0x517   : > { %1471 = vrcp.f32 %v667_v14 }
 0x51a   : > { %v785_v20 = vpop.permute.xlu1 %784 }
 0x51b   : > { %v790_v22 = vsel %vm559_vm3, %v785_v20, 0 }
 0x51e   : > { %v780_v15 = vpop.xlane.xlu0 %779 }
 0x51f   : > { %1473 = vrcp.f32 %v780_v15 }
 0x521   : > { %v1472_v16 = vpop.eup %1471 }
 0x522   : > { %v669_v17 = vmul.f32 %v1472_v16, %v1466_v4  ;;  %v675_v18 = vpop.permute.xlu0 %674 }
 0x523   : > { %v680_v19 = vsel %vm559_vm3, %v675_v18, 0 }
 0x524   : > { %1305 = vmatpush3.bf16.msra.mxu0 %v680_v19  ;;  %v670_v21 = vpack.c.bf16 %v669_v17, %v669_v17 }
 0x525   : > { %1316 = vmatprep.subr.bf16.mxu0 %v1788_v0 }
 0x527   : > { %1307 = vmatmul.mubr.msk.bf16.vlgmr.msra.gmra.mrb[4].mxu0 %vm497_vm1, %v670_v21 }
 0x528   : > { %1317 = vmatpush3.bf16.msra.mxu0 %v790_v22  ;;  %1318 = vmatprep.mubr.msk.bf16.mxu0 %vm1789_vm0, %v1788_v0 }
 0x529   : > { %v1474_v23 = vpop.eup %1473  ;;  %1328 = vmatprep.subr.bf16.mxu0 %v1788_v0 }
 0x52a   : > { %v782_v24 = vmul.f32 %v1474_v23, %v1468_v6 }
 0x52c   : > { %v783_v25 = vpack.c.bf16 %v782_v24, %v782_v24 }
 0x52f   : > { %1319 = vmatmul.mubr.msk.bf16.vlgmr.msra.gmra.mrb[8].mxu0 %vm497_vm1, %v783_v25 }
 0x530   : > { %1330 = vmatprep.mubr.msk.bf16.mxu0 %vm1789_vm0, %v1788_v0 }
 0x54b   : > { %v890_v26 = vpop.xlane.xlu1 %889 }
 0x54c   : > { %1475 = vrcp.f32 %v890_v26 }
 0x54f   : > { %v895_v27 = vpop.permute.xlu1 %894 }
 0x550   : > { %v900_v28 = vsel %vm559_vm3, %v895_v27, 0 }
 0x551   : > { %1329 = vmatpush3.bf16.msra.mxu0 %v900_v28 }
 0x556   : > { %v1476_v29 = vpop.eup %1475 }
 0x557   : > { %v892_v30 = vmul.f32 %v1476_v29, %v1470_v12 }
 0x559   : > { %v893_v31 = vpack.c.bf16 %v892_v30, %v892_v30 }
 0x55b   : > { %1331 = vmatmul.mubr.msk.bf16.vlgmr.msra.gmra.mrb[12].mxu0 %vm497_vm1, %v893_v31 }
 0x5fa   : > { %v716_v34 = vpop.f32.mrb[4].mxu0 }
 0x5fb   : > { %943 = vrot.lane.b32.xlu0 %v716_v34, %s1794_s13  ;;  %v1308_v35 = vpop.f32.mrb[5].mxu0 }
 0x5fc   : > { %v719_v36 = vpop.f32.mrb[6].mxu0 }
 0x5fd   : > { %v1309_v37 = vpop.f32.mrb[7].mxu0 }
 0x602   : > { %v826_v38 = vpop.f32.mrb[8].mxu0 }
 0x603   : > { %947 = vrot.lane.b32.xlu1 %v826_v38, %s1795_s10  ;;  %v1320_v40 = vpop.f32.mrb[9].mxu0 }
 0x604   : > { %v829_v41 = vpop.f32.mrb[10].mxu0 }
 0x605   : > { %v1321_v42 = vpop.f32.mrb[11].mxu0 }
 0x62e   : > { %v936_v43 = vpop.f32.mrb[12].mxu0 }
 0x62f   : > { %951 = vrot.lane.b32.xlu0 %v936_v43, %s1796_s16  ;;  %v1332_v44 = vpop.f32.mrb[13].mxu0 }
 0x630   : > { %v939_v45 = vpop.f32.mrb[14].mxu0 }
 0x631   : > { %v1333_v0 = vpop.f32.mrb[15].mxu0 }
 0x66d   : > { %v944_v46 = vpop.permute.xlu0 %943 }
 0x66e   : > { %v954_v48 = vsel %vm497_vm1, %v2204_v39, %v944_v46 }
 0x675   : > { %v948_v47 = vpop.permute.xlu1 %947 }
 0x676   : > { %v956_v49 = vsel %vm955_vm4, %v954_v48, %v948_v47 }
 0x6a1   : > { %v952_v50 = vpop.permute.xlu0 %951 }
 0x6a2   : > { %v958_v51 = vsel %vm957_vm5, %v956_v49, %v952_v50 }
 0x6a3   : > { %v959_v52 = vpack.c.bf16 %v958_v51, %v958_v51 }
 0x6a5   : > { %1339 = vmatmul.mubr.msk.bf16.vlgmr.msra.gmra.mrb[16].mxu1 %vm981_vm6, %v959_v52 }
 0x778   : > { %v1019_v56 = vpop.f32.mrb[16].mxu1 }
 0x779   : > { %v1025_v57 = vadd.f32 %v1019_v56, %v968_v55  ;;  %v1340_v58 = vpop.f32.mrb[17].mxu1 }
 0x77a   : > { %v1022_v39 = vpop.f32.mrb[18].mxu1 }
 0x77b   : > { %v1341_v59 = vpop.f32.mrb[19].mxu1  ;;  %1026 = vst.msk [vmem:[%s479_s21] sm:$0xff] %vm981_vm6, %v1025_v57 }
 0x77c   : > { %1696 = shalt.err (!%p1693_p9)
}
 0x77d   : > { %s1697_s26 = scalar_lea.hbm %s2243_s15, 128  ;;  %s1701_s1 = scalar_lea.hbm %s2354_s5, 256 }
 0x77e   : > { %p1698_p1 = scmp.ne.s32.totalorder %s2243_s15, %s1697_s26  ;;  %p1702_p6 = scmp.lt.u32.totalorder %s2243_s15, %s2354_s5 }
 0x77f   : > { %p1703_p4 = scmp.lt.u32.totalorder %s1701_s1, %s1697_s26  ;;  %p1705_p7 = scmp.lt.u32.totalorder %s1697_s26, %s2243_s15 }
 0x780   : > { %p1699_p13 = pnand %p1698_p1, %p2355_p8 }
 0x781   : > { %p1704_p3 = por %p1703_p4, %p1702_p6 }
 0x782   : > { %p1700_p11 = pneg %p1699_p13 }
 0x783   : > { %p1706_p10 = por %p1705_p7, %p1704_p3 }
 0x785   : > { %p1707_p0 = pnand %p1706_p10, %p1700_p11 }
 0x787   : > { %1710 = shalt.err (!%p1707_p0)
}
 0x788   : > { %1360 = dma.vmem_to_hbm [thread:$0]  (%p2355_p8), %s2245_s14, 128, %s2243_s15, %s1028_s27  }
 0x789 PF: > { %s2356_s30 = sld [smem:[#allocation20_spill]]  ;;  %s2357_s9 = sld [smem:[#allocation23_spill]] }
 0x78a   : > { %s2358_s17 = sld [smem:[#allocation22_spill]] }
 0x78f   : > { %s1054_s13 = sand.u32 1, %s2356_s30   ;;  %p2359_p5 = scmp.ne.s32.totalorder %s2357_s9, 0 }
 0x790   : > { %p2360_p2 = scmp.ge.s32.totalorder %s2358_s17, 2  ;;  %s1055_s10 = scalar_lea.sflag [#allocation4], %s1054_s13 }
 0x792   : > { %p1386_p12 = pnand %p2360_p2, %p2359_p5 }
 0x794   : > { %1752 = dma.done.wait (!%p1386_p12), %s1055_s10, 128  }
 0x795   : > { %1754 = vsyncadd (!%p1386_p12), %s1055_s10, 4294967168  ;;  %s30_s29 = sadd.s32 1, %s2358_s17   ;;  %s2361_s16 = sld [smem:[#allocation21_spill]] }
 0x796   : > { %p27_p9 = scmp.ge.s32.totalorder %s30_s29, 4   ;;  %s2362_s26 = sld [smem:[#allocation25_spill]] }
 0x797   : > { %s2363_s19 = sld [smem:[#allocation24_spill]]  ;;  %s2364_s24 = smov %s1761_s25 }
 0x798   : > { %s2366_s27 = smov %s1773_s28  ;;  %29 = sbr.rel (!%p27_p9) target bundleno = 16 (0x10), region = 149 }
 0x79b   : > { %s2365_s25 = smov %s2361_s16 }
 0x79d   : > { %s2367_s28 = smov %s2363_s19 }
 0x79f   :  { %1060 = vsyncpa [#allocation3], 1 }
 0x7a0   :  { %1062 = vsyncpa [#allocation3 + $0x1], 1 }
 0x7a1   :  { %1063 = vsyncpa [#allocation6], 1 }
 0x7a2   :  { %1065 = vsyncpa [#allocation6 + $0x1], 1 }
 0x7a3   :  { %1066 = vsyncpa [#allocation9], 1 }
 0x7a4   :  { %1068 = vsyncpa [#allocation9 + $0x1], 1 }
 0x7a5   :  { %1069 = vsyncpa [#allocation12], 1 }
 0x7a6   :  { %1070 = vsyncpa [#allocation4], 1 }
 0x7a7   :  { %1072 = vsyncpa [#allocation4 + $0x1], 1 }

</bundles_post_ra>
